<compile_context>
chip_gen: v7x
topology: tpu7x:2x2x1
jax: 0.10.0
libtpu: 0.0.40
codegen_flags: <defaults>
</compile_context>

<pallas_src>
import functools

import jax
import jax.numpy as jnp
from jax.experimental import pallas as pl
from jax.experimental.pallas import tpu as pltpu

LANE = 128


def _rup(x, m):
    return ((x + m - 1) // m) * m


def _images_per_step(n):
    """Largest divisor of n that is <= 4 and keeps the grid length >= 2 when possible."""
    cap = min(4, max(1, n // 2))
    for d in range(cap, 0, -1):
        if n % d == 0:
            return d
    return 1


# ------------------------- Pallas kernels -------------------------

def _conv_relu_pool_kernel(p_ref, w_ref, b_ref, o_ref):
    """Fused im2col-matmul conv + bias + ReLU + 2x2 max-pool.

    p_ref : (nch, 2*OW, K)  bf16  -- nch = images_per_step * PH pool-row chunks;
                                     dim1 index = (oh parity)*OW + ow
    w_ref : (K, OCP)        bf16  -- OCP = out-channels zero-padded to 128 lanes
    b_ref : (1, OCP)        f32
    o_ref : (nch, PW, OCP)  bf16  -- pooled NHWC rows, lane-dense
    """
    nch, tow, k = p_ref.shape
    ow = tow // 2
    pw = ow // 2
    ocp = o_ref.shape[-1]

    p = p_ref[...].reshape(nch * tow, k)
    acc = jnp.dot(p, w_ref[...], preferred_element_type=jnp.float32)
    acc = jnp.maximum(acc + b_ref[...], 0.0)                 # bias + ReLU (f32)

    # 2x2 / stride-2 max pool, done on the lane-dense f32 accumulator.
    y = acc.reshape(nch, 2, ow, ocp)
    m = jnp.maximum(y[:, 0], y[:, 1])                        # max over oh parity
    m = m.reshape(nch, pw, 2, ocp)
    m = jnp.maximum(m[:, :, 0, :], m[:, :, 1, :])            # max over ow parity
    o_ref[...] = m.astype(o_ref.dtype)


def _fc_fused_kernel(x_ref, w1_ref, b1_ref, w2_ref, b2_ref, w3_ref, b3_ref,
                     o_ref, *, num_classes):
    """relu(x@W1+b1) -> relu(.@W2+b2) -> .@W3+b3 -> log_softmax over valid classes."""
    h = jnp.dot(x_ref[...], w1_ref[...], preferred_element_type=jnp.float32)
    h = jnp.maximum(h + b1_ref[...], 0.0).astype(w2_ref.dtype)
    h = jnp.dot(h, w2_ref[...], preferred_element_type=jnp.float32)
    h = jnp.maximum(h + b2_ref[...], 0.0).astype(w3_ref.dtype)
    z = jnp.dot(h, w3_ref[...], preferred_element_type=jnp.float32) + b3_ref[...]

    # Mask the zero-padded class columns explicitly (f32-safe, no -1e30 bias hack).
    col = jax.lax.broadcasted_iota(jnp.int32, z.shape, 1)
    valid = col < num_classes
    z = jnp.where(valid, z, -jnp.inf)
    m = jnp.max(z, axis=-1, keepdims=True)
    e = jnp.where(valid, jnp.exp(z - m), 0.0)
    lse = jnp.log(jnp.sum(e, axis=-1, keepdims=True)) + m
    o_ref[...] = (z - lse).astype(o_ref.dtype)


# ------------------------- wrappers -------------------------

def _im2col_nhwc(x, kh, kw, cin):
    """NHWC im2col; column order (kh, kw, c).  Returns the patch matrix viewed as
    (N*OH//2, 2*OW, kh*kw*cin) pool-row chunks (a free, contiguous reshape)."""
    n, h, w, _ = x.shape
    oh, ow = h - kh + 1, w - kw + 1
    cols = [x[:, i:i + oh, j:j + ow, :cin] for i in range(kh) for j in range(kw)]
    p = jnp.concatenate(cols, axis=-1)                       # (N, OH, OW, kh*kw*cin)
    return p.reshape(n * (oh // 2), 2 * ow, kh * kw * cin), oh, ow


def conv_relu_pool(x_nhwc, w_mat, b_row, cin, kh=5, kw=5):
    """x_nhwc: (N, H, W, C) bf16 (C may be lane-padded; only first `cin` are used).
    Returns the pooled NHWC slab (N*PH, PW, OCP) in bf16."""
    n = x_nhwc.shape[0]
    p, oh, ow = _im2col_nhwc(x_nhwc, kh, kw, cin)
    ph, pw = oh // 2, ow // 2
    k = p.shape[-1]
    ocp = w_mat.shape[1]
    ips = _images_per_step(n)
    nch = ips * ph                                           # pool-row chunks per step
    return pl.pallas_call(
        _conv_relu_pool_kernel,
        out_shape=jax.ShapeDtypeStruct((n * ph, pw, ocp), jnp.bfloat16),
        grid=(n // ips,),
        in_specs=[
            pl.BlockSpec((nch, 2 * ow, k), lambda i: (i, 0, 0)),
            pl.BlockSpec((k, ocp), lambda i: (0, 0)),
            pl.BlockSpec((1, ocp), lambda i: (0, 0)),
        ],
        out_specs=pl.BlockSpec((nch, pw, ocp), lambda i: (i, 0, 0)),
        compiler_params=pltpu.CompilerParams(dimension_semantics=("parallel",)),
    )(p, w_mat, b_row)


def fc_head(x2d, w1, b1, w2, b2, w3, b3, num_classes):
    """Single fused pallas_call for fc1+relu, fc2+relu, fc3+log_softmax."""
    n, k = x2d.shape
    tm = min(256, _rup(max(n, 8), 8))
    n_pad = _rup(max(n, 8), tm)
    xp = jnp.pad(x2d, ((0, n_pad - n), (0, 0)))
    ncp = w3.shape[1]
    kernel = functools.partial(_fc_fused_kernel, num_classes=num_classes)
    out = pl.pallas_call(
        kernel,
        out_shape=jax.ShapeDtypeStruct((n_pad, ncp), jnp.float32),
        grid=(n_pad // tm,),
        in_specs=[
            pl.BlockSpec((tm, k), lambda i: (i, 0)),
            pl.BlockSpec(w1.shape, lambda i: (0, 0)),
            pl.BlockSpec(b1.shape, lambda i: (0, 0)),
            pl.BlockSpec(w2.shape, lambda i: (0, 0)),
            pl.BlockSpec(b2.shape, lambda i: (0, 0)),
            pl.BlockSpec(w3.shape, lambda i: (0, 0)),
            pl.BlockSpec(b3.shape, lambda i: (0, 0)),
        ],
        out_specs=pl.BlockSpec((tm, ncp), lambda i: (i, 0)),
        compiler_params=pltpu.CompilerParams(dimension_semantics=("parallel",)),
    )(xp, w1, b1, w2, b2, w3, b3)
    return out[:n, :num_classes]


# ------------------------- weight preparation (tiny, done once per call) -------------------------

def _prep_conv(w, b):
    """torch (OC, C, KH, KW) -> (KH*KW*C, OCP) bf16 matmul weight + (1, OCP) f32 bias."""
    oc, c, kh, kw = w.shape
    ocp = _rup(oc, LANE)
    wm = jnp.transpose(w, (2, 3, 1, 0)).reshape(kh * kw * c, oc)
    wm = jnp.pad(wm, ((0, 0), (0, ocp - oc))).astype(jnp.bfloat16)
    br = jnp.pad(b, (0, ocp - oc)).astype(jnp.float32).reshape(1, ocp)
    return wm, br


def _prep_fc(params, ph, pw, cin, cpad):
    """Reorder/zero-expand FC weights so the padded NHWC pool2 slab can be consumed
    directly (no activation slicing/repacking): fc1 rows are laid out (h, w, c_pad)."""
    f1 = params["fc1_w"]                          # (H1, cin*ph*pw), torch (c,h,w) order
    h1 = f1.shape[0]
    h1p = _rup(h1, LANE)
    w1 = f1.reshape(h1, cin, ph, pw).transpose(2, 3, 1, 0)          # (ph, pw, cin, H1)
    w1 = jnp.pad(w1, ((0, 0), (0, 0), (0, cpad - cin), (0, h1p - h1)))
    w1 = w1.reshape(ph * pw * cpad, h1p).astype(jnp.bfloat16)
    b1 = jnp.pad(params["fc1_b"], (0, h1p - h1)).astype(jnp.float32).reshape(1, h1p)

    f2 = params["fc2_w"]                          # (H2, H1)
    h2 = f2.shape[0]
    h2p = _rup(h2, LANE)
    w2 = jnp.pad(f2.T, ((0, h1p - h1), (0, h2p - h2))).astype(jnp.bfloat16)
    b2 = jnp.pad(params["fc2_b"], (0, h2p - h2)).astype(jnp.float32).reshape(1, h2p)

    f3 = params["fc3_w"]                          # (NC, H2)
    nc = f3.shape[0]
    ncp = _rup(nc, LANE)
    w3 = jnp.pad(f3.T, ((0, h2p - h2), (0, ncp - nc))).astype(jnp.bfloat16)
    b3 = jnp.pad(params["fc3_b"], (0, ncp - nc)).astype(jnp.float32).reshape(1, ncp)
    return w1, b1, w2, b2, w3, b3


# ------------------------- model -------------------------

def init_params(key, num_classes=10):
    ks = jax.random.split(key, 10)

    def u(k, shape, fan_in):
        bound = 1.0 / (fan_in ** 0.5)
        return jax.random.uniform(k, shape, jnp.float32, -bound, bound)

    return {
        "conv1_w": u(ks[0], (6, 3, 5, 5), 3 * 25),
        "conv1_b": u(ks[1], (6,), 3 * 25),
        "conv2_w": u(ks[2], (16, 6, 5, 5), 6 * 25),
        "conv2_b": u(ks[3], (16,), 6 * 25),
        "fc1_w": u(ks[4], (120, 400), 400),
        "fc1_b": u(ks[5], (120,), 400),
        "fc2_w": u(ks[6], (84, 120), 120),
        "fc2_b": u(ks[7], (84,), 120),
        "fc3_w": u(ks[8], (num_classes, 84), 84),
        "fc3_b": u(ks[9], (num_classes,), 84),
    }


@jax.jit
def cnn_cifar_forward(params, x):
    """x: (N, 3, 32, 32) NCHW float32, matching the PyTorch module."""
    n = x.shape[0]
    num_classes = params["fc3_b"].shape[0]

    # One NCHW -> NHWC conversion of the (small) input; everything downstream stays
    # in a lane-dense channel-last-padded layout, bf16 on the matmul path.
    xh = jnp.transpose(x, (0, 2, 3, 1)).astype(jnp.bfloat16)

    # conv1 + relu + pool  -> (N*14, 14, 128) bf16
    w1c, b1c = _prep_conv(params["conv1_w"], params["conv1_b"])
    y = conv_relu_pool(xh, w1c, b1c, cin=params["conv1_w"].shape[1])
    cpad = y.shape[-1]
    y = y.reshape(n, y.shape[0] // n, y.shape[1], cpad)       # (N, 14, 14, 128), free

    # conv2 + relu + pool  -> (N*5, 5, 128) bf16
    w2c, b2c = _prep_conv(params["conv2_w"], params["conv2_b"])
    y = conv_relu_pool(y, w2c, b2c, cin=params["conv2_w"].shape[1])
    ph2 = y.shape[0] // n
    pw2 = y.shape[1]
    cpad = y.shape[-1]

    # Fused fc1/fc2/fc3 head.  The padded pool2 slab is fed directly (free reshape);
    # the zero-padded channels are absorbed by zero rows of the expanded fc1 weight.
    cin_fc = params["fc1_w"].shape[1] // (ph2 * pw2)          # 16 (torch 16*5*5 flatten)
    w1, b1, w2, b2, w3, b3 = _prep_fc(params, ph2, pw2, cin_fc, cpad)
    xf = y.reshape(n, ph2 * pw2 * cpad)                       # (N, 3200), contiguous
    return fc_head(xf, w1, b1, w2, b2, w3, b3, num_classes)


if __name__ == "__main__":
    key = jax.random.PRNGKey(0)
    kp, kx = jax.random.split(key)
    params = init_params(kp, num_classes=10)
    # CIFAR geometry is required by the 16*5*5 flatten: input must be (N, 3, 32, 32)
    x = jax.random.normal(kx, (2, 3, 32, 32), jnp.float32)
    out = jax.block_until_ready(cnn_cifar_forward(params, x))
    assert out.shape == (2, 10), out.shape
    assert bool(jnp.all(jnp.isfinite(out)))
    print("KERNEL_OK")
</pallas_src>

<mosaic_0001>
module attributes {stable_mosaic.version = 11 : i64} {
  func.func @_conv_relu_pool_kernel(%arg0: i32, %arg1: memref<14x56x75xbf16, #tpu.memory_space<vmem>>, %arg2: memref<75x128xbf16, #tpu.memory_space<vmem>>, %arg3: memref<1x128xf32, #tpu.memory_space<vmem>>, %arg4: memref<14x14x128xbf16, #tpu.memory_space<vmem>>) attributes {dimension_semantics = [#tpu.dimension_semantics<parallel>], iteration_bounds = array<i64: 2>, scalar_prefetch = 0 : i64, scratch_operands = 0 : i64, tpu.core_type = #tpu.core_type<tc>, window_params = [{transform_indices = @transform_0, window_bounds = array<i64: 14, 56, 75>}, {pipeline_mode = #tpu.pipeline_mode<synchronous>, transform_indices = @transform_1, window_bounds = array<i64: 75, 128>}, {pipeline_mode = #tpu.pipeline_mode<synchronous>, transform_indices = @transform_2, window_bounds = array<i64: 1, 128>}, {transform_indices = @transform_3, window_bounds = array<i64: 14, 14, 128>}]} {
    %c0 = arith.constant 0 : index
    %c0_0 = arith.constant 0 : index
    %c0_1 = arith.constant 0 : index
    %0 = vector.load %arg1[%c0, %c0_0, %c0_1] : memref<14x56x75xbf16, #tpu.memory_space<vmem>>, vector<14x56x75xbf16>
    %1 = vector.shape_cast %0 : vector<14x56x75xbf16> to vector<784x75xbf16>
    %c0_2 = arith.constant 0 : index
    %c0_3 = arith.constant 0 : index
    %2 = vector.load %arg2[%c0_2, %c0_3] : memref<75x128xbf16, #tpu.memory_space<vmem>>, vector<75x128xbf16>
    %cst = arith.constant dense<0.000000e+00> : vector<784x128xf32>
    %3 = tpu.matmul %1, %2, %cst {dimension_numbers = #tpu.dot_dimension_numbers<[1], [0], [0], [1], [0, 0, 1, 1], [], []>} : vector<784x75xbf16>, vector<75x128xbf16>, vector<784x128xf32> -> vector<784x128xf32>
    %c0_4 = arith.constant 0 : index
    %c0_5 = arith.constant 0 : index
    %4 = vector.load %arg3[%c0_4, %c0_5] : memref<1x128xf32, #tpu.memory_space<vmem>>, vector<1x128xf32>
    %5 = vector.broadcast %4 : vector<1x128xf32> to vector<784x128xf32>
    %6 = arith.addf %3, %5 : vector<784x128xf32>
    %cst_6 = arith.constant 0.000000e+00 : f32
    %7 = vector.broadcast %cst_6 : f32 to vector<784x128xf32>
    %8 = arith.maximumf %6, %7 : vector<784x128xf32>
    %9 = vector.shape_cast %8 : vector<784x128xf32> to vector<14x2x28x128xf32>
    %10 = vector.extract_strided_slice %9 {offsets = [0, 0, 0, 0], sizes = [14, 1, 28, 128], strides = [1, 1, 1, 1]} : vector<14x2x28x128xf32> to vector<14x1x28x128xf32>
    %11 = vector.shape_cast %10 : vector<14x1x28x128xf32> to vector<14x28x128xf32>
    %12 = vector.extract_strided_slice %9 {offsets = [0, 1, 0, 0], sizes = [14, 1, 28, 128], strides = [1, 1, 1, 1]} : vector<14x2x28x128xf32> to vector<14x1x28x128xf32>
    %13 = vector.shape_cast %12 : vector<14x1x28x128xf32> to vector<14x28x128xf32>
    %14 = arith.maximumf %11, %13 : vector<14x28x128xf32>
    %15 = vector.shape_cast %14 : vector<14x28x128xf32> to vector<14x14x2x128xf32>
    %16 = vector.extract_strided_slice %15 {offsets = [0, 0, 0, 0], sizes = [14, 14, 1, 128], strides = [1, 1, 1, 1]} : vector<14x14x2x128xf32> to vector<14x14x1x128xf32>
    %17 = vector.shape_cast %16 : vector<14x14x1x128xf32> to vector<14x14x128xf32>
    %18 = vector.extract_strided_slice %15 {offsets = [0, 0, 1, 0], sizes = [14, 14, 1, 128], strides = [1, 1, 1, 1]} : vector<14x14x2x128xf32> to vector<14x14x1x128xf32>
    %19 = vector.shape_cast %18 : vector<14x14x1x128xf32> to vector<14x14x128xf32>
    %20 = arith.maximumf %17, %19 : vector<14x14x128xf32>
    %21 = arith.truncf %20 : vector<14x14x128xf32> to vector<14x14x128xbf16>
    %c0_7 = arith.constant 0 : index
    %c0_8 = arith.constant 0 : index
    %c0_9 = arith.constant 0 : index
    %22 = vector.load %arg4[%c0_7, %c0_8, %c0_9] : memref<14x14x128xbf16, #tpu.memory_space<vmem>>, vector<14x14x128xbf16>
    tpu.vector_store %arg4[%c0_7, %c0_8, %c0_9], %21 {strides = array<i32>} : memref<14x14x128xbf16, #tpu.memory_space<vmem>>, vector<14x14x128xbf16>,
    return
  }
  func.func @transform_0(%arg0: i32) -> (i32, i32, i32) {
    %c0_i32 = arith.constant 0 : i32
    %c0_i32_0 = arith.constant 0 : i32
    %c0_i32_1 = arith.constant 0 : i32
    return %arg0, %c0_i32, %c0_i32_0 : i32, i32, i32
  }
  func.func @transform_1(%arg0: i32) -> (i32, i32) {
    %c0_i32 = arith.constant 0 : i32
    %c0_i32_0 = arith.constant 0 : i32
    %c0_i32_1 = arith.constant 0 : i32
    return %c0_i32, %c0_i32_0 : i32, i32
  }
  func.func @transform_2(%arg0: i32) -> (i32, i32) {
    %c0_i32 = arith.constant 0 : i32
    %c0_i32_0 = arith.constant 0 : i32
    %c0_i32_1 = arith.constant 0 : i32
    return %c0_i32, %c0_i32_0 : i32, i32
  }
  func.func @transform_3(%arg0: i32) -> (i32, i32, i32) {
    %c0_i32 = arith.constant 0 : i32
    %c0_i32_0 = arith.constant 0 : i32
    %c0_i32_1 = arith.constant 0 : i32
    return %arg0, %c0_i32, %c0_i32_0 : i32, i32, i32
  }
}

module attributes {stable_mosaic.version = 11 : i64} {
  func.func @_conv_relu_pool_kernel(%arg0: i32, %arg1: memref<5x20x150xbf16, #tpu.memory_space<vmem>>, %arg2: memref<150x128xbf16, #tpu.memory_space<vmem>>, %arg3: memref<1x128xf32, #tpu.memory_space<vmem>>, %arg4: memref<5x5x128xbf16, #tpu.memory_space<vmem>>) attributes {dimension_semantics = [#tpu.dimension_semantics<parallel>], iteration_bounds = array<i64: 2>, scalar_prefetch = 0 : i64, scratch_operands = 0 : i64, tpu.core_type = #tpu.core_type<tc>, window_params = [{transform_indices = @transform_0, window_bounds = array<i64: 5, 20, 150>}, {pipeline_mode = #tpu.pipeline_mode<synchronous>, transform_indices = @transform_1, window_bounds = array<i64: 150, 128>}, {pipeline_mode = #tpu.pipeline_mode<synchronous>, transform_indices = @transform_2, window_bounds = array<i64: 1, 128>}, {transform_indices = @transform_3, window_bounds = array<i64: 5, 5, 128>}]} {
    %c0 = arith.constant 0 : index
    %c0_0 = arith.constant 0 : index
    %c0_1 = arith.constant 0 : index
    %0 = vector.load %arg1[%c0, %c0_0, %c0_1] : memref<5x20x150xbf16, #tpu.memory_space<vmem>>, vector<5x20x150xbf16>
    %1 = vector.shape_cast %0 : vector<5x20x150xbf16> to vector<100x150xbf16>
    %c0_2 = arith.constant 0 : index
    %c0_3 = arith.constant 0 : index
    %2 = vector.load %arg2[%c0_2, %c0_3] : memref<150x128xbf16, #tpu.memory_space<vmem>>, vector<150x128xbf16>
    %cst = arith.constant dense<0.000000e+00> : vector<100x128xf32>
    %3 = tpu.matmul %1, %2, %cst {dimension_numbers = #tpu.dot_dimension_numbers<[1], [0], [0], [1], [0, 0, 1, 1], [], []>} : vector<100x150xbf16>, vector<150x128xbf16>, vector<100x128xf32> -> vector<100x128xf32>
    %c0_4 = arith.constant 0 : index
    %c0_5 = arith.constant 0 : index
    %4 = vector.load %arg3[%c0_4, %c0_5] : memref<1x128xf32, #tpu.memory_space<vmem>>, vector<1x128xf32>
    %5 = vector.broadcast %4 : vector<1x128xf32> to vector<100x128xf32>
    %6 = arith.addf %3, %5 : vector<100x128xf32>
    %cst_6 = arith.constant 0.000000e+00 : f32
    %7 = vector.broadcast %cst_6 : f32 to vector<100x128xf32>
    %8 = arith.maximumf %6, %7 : vector<100x128xf32>
    %9 = vector.shape_cast %8 : vector<100x128xf32> to vector<5x2x10x128xf32>
    %10 = vector.extract_strided_slice %9 {offsets = [0, 0, 0, 0], sizes = [5, 1, 10, 128], strides = [1, 1, 1, 1]} : vector<5x2x10x128xf32> to vector<5x1x10x128xf32>
    %11 = vector.shape_cast %10 : vector<5x1x10x128xf32> to vector<5x10x128xf32>
    %12 = vector.extract_strided_slice %9 {offsets = [0, 1, 0, 0], sizes = [5, 1, 10, 128], strides = [1, 1, 1, 1]} : vector<5x2x10x128xf32> to vector<5x1x10x128xf32>
    %13 = vector.shape_cast %12 : vector<5x1x10x128xf32> to vector<5x10x128xf32>
    %14 = arith.maximumf %11, %13 : vector<5x10x128xf32>
    %15 = vector.shape_cast %14 : vector<5x10x128xf32> to vector<5x5x2x128xf32>
    %16 = vector.extract_strided_slice %15 {offsets = [0, 0, 0, 0], sizes = [5, 5, 1, 128], strides = [1, 1, 1, 1]} : vector<5x5x2x128xf32> to vector<5x5x1x128xf32>
    %17 = vector.shape_cast %16 : vector<5x5x1x128xf32> to vector<5x5x128xf32>
    %18 = vector.extract_strided_slice %15 {offsets = [0, 0, 1, 0], sizes = [5, 5, 1, 128], strides = [1, 1, 1, 1]} : vector<5x5x2x128xf32> to vector<5x5x1x128xf32>
    %19 = vector.shape_cast %18 : vector<5x5x1x128xf32> to vector<5x5x128xf32>
    %20 = arith.maximumf %17, %19 : vector<5x5x128xf32>
    %21 = arith.truncf %20 : vector<5x5x128xf32> to vector<5x5x128xbf16>
    %c0_7 = arith.constant 0 : index
    %c0_8 = arith.constant 0 : index
    %c0_9 = arith.constant 0 : index
    %22 = vector.load %arg4[%c0_7, %c0_8, %c0_9] : memref<5x5x128xbf16, #tpu.memory_space<vmem>>, vector<5x5x128xbf16>
    tpu.vector_store %arg4[%c0_7, %c0_8, %c0_9], %21 {strides = array<i32>} : memref<5x5x128xbf16, #tpu.memory_space<vmem>>, vector<5x5x128xbf16>,
    return
  }
  func.func @transform_0(%arg0: i32) -> (i32, i32, i32) {
    %c0_i32 = arith.constant 0 : i32
    %c0_i32_0 = arith.constant 0 : i32
    %c0_i32_1 = arith.constant 0 : i32
    return %arg0, %c0_i32, %c0_i32_0 : i32, i32, i32
  }
  func.func @transform_1(%arg0: i32) -> (i32, i32) {
    %c0_i32 = arith.constant 0 : i32
    %c0_i32_0 = arith.constant 0 : i32
    %c0_i32_1 = arith.constant 0 : i32
    return %c0_i32, %c0_i32_0 : i32, i32
  }
  func.func @transform_2(%arg0: i32) -> (i32, i32) {
    %c0_i32 = arith.constant 0 : i32
    %c0_i32_0 = arith.constant 0 : i32
    %c0_i32_1 = arith.constant 0 : i32
    return %c0_i32, %c0_i32_0 : i32, i32
  }
  func.func @transform_3(%arg0: i32) -> (i32, i32, i32) {
    %c0_i32 = arith.constant 0 : i32
    %c0_i32_0 = arith.constant 0 : i32
    %c0_i32_1 = arith.constant 0 : i32
    return %arg0, %c0_i32, %c0_i32_0 : i32, i32, i32
  }
}

module attributes {stable_mosaic.version = 11 : i64} {
  func.func @_fc_fused_kernel(%arg0: i32, %arg1: memref<8x3200xbf16, #tpu.memory_space<vmem>>, %arg2: memref<3200x128xbf16, #tpu.memory_space<vmem>>, %arg3: memref<1x128xf32, #tpu.memory_space<vmem>>, %arg4: memref<128x128xbf16, #tpu.memory_space<vmem>>, %arg5: memref<1x128xf32, #tpu.memory_space<vmem>>, %arg6: memref<128x128xbf16, #tpu.memory_space<vmem>>, %arg7: memref<1x128xf32, #tpu.memory_space<vmem>>, %arg8: memref<8x128xf32, #tpu.memory_space<vmem>>) attributes {dimension_semantics = [#tpu.dimension_semantics<parallel>], iteration_bounds = array<i64: 1>, scalar_prefetch = 0 : i64, scratch_operands = 0 : i64, tpu.core_type = #tpu.core_type<tc>, window_params = [{transform_indices = @transform_0, window_bounds = array<i64: 8, 3200>}, {pipeline_mode = #tpu.pipeline_mode<synchronous>, transform_indices = @transform_1, window_bounds = array<i64: 3200, 128>}, {pipeline_mode = #tpu.pipeline_mode<synchronous>, transform_indices = @transform_2, window_bounds = array<i64: 1, 128>}, {pipeline_mode = #tpu.pipeline_mode<synchronous>, transform_indices = @transform_3, window_bounds = array<i64: 128, 128>}, {pipeline_mode = #tpu.pipeline_mode<synchronous>, transform_indices = @transform_4, window_bounds = array<i64: 1, 128>}, {pipeline_mode = #tpu.pipeline_mode<synchronous>, transform_indices = @transform_5, window_bounds = array<i64: 128, 128>}, {pipeline_mode = #tpu.pipeline_mode<synchronous>, transform_indices = @transform_6, window_bounds = array<i64: 1, 128>}, {transform_indices = @transform_7, window_bounds = array<i64: 8, 128>}]} {
    %c0 = arith.constant 0 : index
    %c0_0 = arith.constant 0 : index
    %0 = vector.load %arg1[%c0, %c0_0] : memref<8x3200xbf16, #tpu.memory_space<vmem>>, vector<8x3200xbf16>
    %c0_1 = arith.constant 0 : index
    %c0_2 = arith.constant 0 : index
    %1 = vector.load %arg2[%c0_1, %c0_2] : memref<3200x128xbf16, #tpu.memory_space<vmem>>, vector<3200x128xbf16>
    %cst = arith.constant dense<0.000000e+00> : vector<8x128xf32>
    %2 = tpu.matmul %0, %1, %cst {dimension_numbers = #tpu.dot_dimension_numbers<[1], [0], [0], [1], [0, 0, 1, 1], [], []>} : vector<8x3200xbf16>, vector<3200x128xbf16>, vector<8x128xf32> -> vector<8x128xf32>
    %c0_3 = arith.constant 0 : index
    %c0_4 = arith.constant 0 : index
    %3 = vector.load %arg3[%c0_3, %c0_4] : memref<1x128xf32, #tpu.memory_space<vmem>>, vector<1x128xf32>
    %4 = vector.broadcast %3 : vector<1x128xf32> to vector<8x128xf32>
    %5 = arith.addf %2, %4 : vector<8x128xf32>
    %cst_5 = arith.constant 0.000000e+00 : f32
    %6 = vector.broadcast %cst_5 : f32 to vector<8x128xf32>
    %7 = arith.maximumf %5, %6 : vector<8x128xf32>
    %8 = arith.truncf %7 : vector<8x128xf32> to vector<8x128xbf16>
    %c0_6 = arith.constant 0 : index
    %c0_7 = arith.constant 0 : index
    %9 = vector.load %arg4[%c0_6, %c0_7] : memref<128x128xbf16, #tpu.memory_space<vmem>>, vector<128x128xbf16>
    %cst_8 = arith.constant dense<0.000000e+00> : vector<8x128xf32>
    %10 = tpu.matmul %8, %9, %cst_8 {dimension_numbers = #tpu.dot_dimension_numbers<[1], [0], [0], [1], [0, 0, 1, 1], [], []>} : vector<8x128xbf16>, vector<128x128xbf16>, vector<8x128xf32> -> vector<8x128xf32>
    %c0_9 = arith.constant 0 : index
    %c0_10 = arith.constant 0 : index
    %11 = vector.load %arg5[%c0_9, %c0_10] : memref<1x128xf32, #tpu.memory_space<vmem>>, vector<1x128xf32>
    %12 = vector.broadcast %11 : vector<1x128xf32> to vector<8x128xf32>
    %13 = arith.addf %10, %12 : vector<8x128xf32>
    %cst_11 = arith.constant 0.000000e+00 : f32
    %14 = vector.broadcast %cst_11 : f32 to vector<8x128xf32>
    %15 = arith.maximumf %13, %14 : vector<8x128xf32>
    %16 = arith.truncf %15 : vector<8x128xf32> to vector<8x128xbf16>
    %c0_12 = arith.constant 0 : index
    %c0_13 = arith.constant 0 : index
    %17 = vector.load %arg6[%c0_12, %c0_13] : memref<128x128xbf16, #tpu.memory_space<vmem>>, vector<128x128xbf16>
    %cst_14 = arith.constant dense<0.000000e+00> : vector<8x128xf32>
    %18 = tpu.matmul %16, %17, %cst_14 {dimension_numbers = #tpu.dot_dimension_numbers<[1], [0], [0], [1], [0, 0, 1, 1], [], []>} : vector<8x128xbf16>, vector<128x128xbf16>, vector<8x128xf32> -> vector<8x128xf32>
    %c0_15 = arith.constant 0 : index
    %c0_16 = arith.constant 0 : index
    %19 = vector.load %arg7[%c0_15, %c0_16] : memref<1x128xf32, #tpu.memory_space<vmem>>, vector<1x128xf32>
    %20 = vector.broadcast %19 : vector<1x128xf32> to vector<8x128xf32>
    %21 = arith.addf %18, %20 : vector<8x128xf32>
    %22 = tpu.iota {dimensions = array<i32: 1>} : vector<8x128xi32>
    %c10_i32 = arith.constant 10 : i32
    %23 = vector.broadcast %c10_i32 : i32 to vector<8x128xi32>
    %24 = arith.cmpi slt, %22, %23 : vector<8x128xi32>
    %cst_17 = arith.constant 0xFF800000 : f32
    %25 = vector.broadcast %cst_17 : f32 to vector<8x128xf32>
    %26 = arith.select %24, %21, %25 : vector<8x128xi1>, vector<8x128xf32>
    %cst_18 = arith.constant dense<0xFF800000> : vector<8xf32>
    %27 = vector.multi_reduction <maximumf>, %26, %cst_18 [1] : vector<8x128xf32> to vector<8xf32>
    %28 = vector.shape_cast %27 : vector<8xf32> to vector<8x1xf32>
    %29 = vector.broadcast %28 : vector<8x1xf32> to vector<8x128xf32>
    %30 = arith.subf %26, %29 : vector<8x128xf32>
    %31 = math.exp %30 : vector<8x128xf32>
    %cst_19 = arith.constant 0.000000e+00 : f32
    %32 = vector.broadcast %cst_19 : f32 to vector<8x128xf32>
    %33 = arith.select %24, %31, %32 : vector<8x128xi1>, vector<8x128xf32>
    %cst_20 = arith.constant dense<0.000000e+00> : vector<8xf32>
    %34 = vector.multi_reduction <add>, %33, %cst_20 [1] : vector<8x128xf32> to vector<8xf32>
    %35 = vector.shape_cast %34 : vector<8xf32> to vector<8x1xf32>
    %36 = math.log %35 : vector<8x1xf32>
    %37 = arith.addf %36, %28 : vector<8x1xf32>
    %38 = vector.broadcast %37 : vector<8x1xf32> to vector<8x128xf32>
    %39 = arith.subf %26, %38 : vector<8x128xf32>
    %c0_21 = arith.constant 0 : index
    %c0_22 = arith.constant 0 : index
    %40 = vector.load %arg8[%c0_21, %c0_22] : memref<8x128xf32, #tpu.memory_space<vmem>>, vector<8x128xf32>
    tpu.vector_store %arg8[%c0_21, %c0_22], %39 {strides = array<i32>} : memref<8x128xf32, #tpu.memory_space<vmem>>, vector<8x128xf32>,
    return
  }
  func.func @transform_0(%arg0: i32) -> (i32, i32) {
    %c0_i32 = arith.constant 0 : i32
    %c0_i32_0 = arith.constant 0 : i32
    return %arg0, %c0_i32 : i32, i32
  }
  func.func @transform_1(%arg0: i32) -> (i32, i32) {
    %c0_i32 = arith.constant 0 : i32
    %c0_i32_0 = arith.constant 0 : i32
    %c0_i32_1 = arith.constant 0 : i32
    return %c0_i32, %c0_i32_0 : i32, i32
  }
  func.func @transform_2(%arg0: i32) -> (i32, i32) {
    %c0_i32 = arith.constant 0 : i32
    %c0_i32_0 = arith.constant 0 : i32
    %c0_i32_1 = arith.constant 0 : i32
    return %c0_i32, %c0_i32_0 : i32, i32
  }
  func.func @transform_3(%arg0: i32) -> (i32, i32) {
    %c0_i32 = arith.constant 0 : i32
    %c0_i32_0 = arith.constant 0 : i32
    %c0_i32_1 = arith.constant 0 : i32
    return %c0_i32, %c0_i32_0 : i32, i32
  }
  func.func @transform_4(%arg0: i32) -> (i32, i32) {
    %c0_i32 = arith.constant 0 : i32
    %c0_i32_0 = arith.constant 0 : i32
    %c0_i32_1 = arith.constant 0 : i32
    return %c0_i32, %c0_i32_0 : i32, i32
  }
  func.func @transform_5(%arg0: i32) -> (i32, i32) {
    %c0_i32 = arith.constant 0 : i32
    %c0_i32_0 = arith.constant 0 : i32
    %c0_i32_1 = arith.constant 0 : i32
    return %c0_i32, %c0_i32_0 : i32, i32
  }
  func.func @transform_6(%arg0: i32) -> (i32, i32) {
    %c0_i32 = arith.constant 0 : i32
    %c0_i32_0 = arith.constant 0 : i32
    %c0_i32_1 = arith.constant 0 : i32
    return %c0_i32, %c0_i32_0 : i32, i32
  }
  func.func @transform_7(%arg0: i32) -> (i32, i32) {
    %c0_i32 = arith.constant 0 : i32
    %c0_i32_0 = arith.constant 0 : i32
    return %arg0, %c0_i32 : i32, i32
  }
}

</mosaic_0001>

<bundles_post_ra>
// kernel: cnn_cifar_forward.3
= control target key start
LH: loop header
LB: loop body
LE: loop exit
PB: predicated region body
PF: predicated region fallthrough
CT: control target
= control target key end

     0   :  { %s6041_s12 = smov 0   ;;  %s7374_s0 = inlined_call_operand.vmem [shape: bf16[28,56,75], index: 0, kind: input, shape index: {}]   ;;  %s7375_s1 = inlined_call_operand.vmem [shape: bf16[75,128], index: 1, kind: input, shape index: {}]   ;;  %s7376_s2 = inlined_call_operand.vmem [shape: f32[1,128], index: 2, kind: input, shape index: {}]   ;;  %s7377_s3 = inlined_call_operand.vmem [shape: bf16[28,14,128], index: 3, kind: output, shape index: {}]  }
   0x1 LB: > { %s4966_s13 = sadd.s32 4294967295, %s6015_s12   ;;  %p4970_p0 = scmp.ge.s32.totalorder %s6015_s12, 1  ;;  %s6015_s12 = sphi %s6041_s12, %s13_s12  }
   0x2   : > { %p139_p1 = scmp.lt.s32.totalorder %s6015_s12, 3 }
   0x4   : > { %p140_p2 = pnand %p4970_p0, %p139_p1 }
   0x6   : > { %143 = sbr.rel (%p140_p2) target bundleno = 708 (0x2c4), region = 32 }
   0xd   : > { %v5952_v0 = vld [vmem:[%s7375_s1] sm:$0xff]   ;;  %v6017_v1 = vmov 0.0   ;;  %v5953_v2 = vld [vmem:[%s7375_s1 + $0x8] sm:$0xff]   ;;  %vm717_vm0 = vcmask 1044480   ;;  %s165_s18 = smul.u32 14, %s4966_s13  ;;  %v5954_v3 = vld [vmem:[%s7375_s1 + $0x10] sm:$0xff]  }
   0xe   : > { %5723 = vmatprep.subr.bf16.mxu0 %v6017_v1  ;;  %5929 = vmatprep.subr.bf16.mxu1 %v6017_v1  ;;  %vm718_vm1 = vcmask 1045504   ;;  %v6018_v4 = vmov 65535   ;;  %vm6019_vm2 = vmmov 0   ;;  %v5955_v6 = vld [vmem:[%s7375_s1 + $0x18] sm:$0xff]   ;;  %v5956_v7 = vld [vmem:[%s7375_s1 + $0x20] sm:$0x3f]  }
   0xf   : > { %5724 = vmatpush3.bf16.msra.mxu0 %v5952_v0  ;;  %5934 = vmatpush3.bf16.msra.mxu1 %v5952_v0  ;;  %p166_p3 = scmp.lt.s32.totalorder %s165_s18, 27  ;;  %v719_v5 = vsel %vm717_vm0, 4294967295, %v6018_v4  ;;  %vm569_vm3 = vcmask 613376   ;;  %v6020_v4 = vmov 1983009808   ;;  %vm4482_vm4 = vcmask 1041409  }
  0x10   : > { %5725 = vmatprep.subr.bf16.mxu0 %v6017_v1  ;;  %5930 = vmatprep.subr.bf16.mxu1 %v6017_v1  ;;  %v720_v8 = vsel %vm718_vm1, %v719_v5, 0  ;;  %v1738_v5 = vunpack.c.l.s4 %v6020_v4  ;;  %vm4485_vm5 = vcmask 1042434   ;;  %vm4488_vm6 = vcmask 1043459  }
  0x11   : > { %5733 = vmatprep.mubr.msk.bf16.mxu0 %vm6019_vm2, %v6017_v1  ;;  %5833 = vmatprep.mubr.msk.bf16.mxu1 %vm6019_vm2, %v6017_v1  ;;  %s7447_s18 = smov (!%p166_p3, %s165_s18), 27  ;;  %v722_v9 = vand.u32 %v5956_v7, %v720_v8  ;;  %v6281_v7 = vld [vmem:[%s7376_s2] ss:$0 sm:$0xff]  ;;  %vm4491_vm7 = vcmask 1044484   ;;  %vm4494_vm8 = vcmask 1045509   ;;  %vm4497_vm9 = vcmask 1046534  }
  0x12   : > { %s5939_s25 = smul.u32 28, %s7447_s18  ;;  %vm4500_vm10 = vcmask 1047559   ;;  %s5472_s4 = sshll.u32 %s7447_s18, 3 }
  0x13   : > { %5726 = vmatpush3.bf16.msra.mxu0 %v5953_v2  ;;  %5935 = vmatpush3.bf16.msra.mxu1 %v5953_v2  ;;  %s6416_s7 = scalar_lea.vmem %s7377_s3, %s5472_s4 }
  0x14   : > { %5727 = vmatprep.subr.bf16.mxu0 %v6017_v1  ;;  %5931 = vmatprep.subr.bf16.mxu1 %v6017_v1  ;;  %s6082_s28 = scalar_lea.vmem %s7374_s0, %s5939_s25 }
  0x15   : > { %v5957_v10 = vld [vmem:[%s6082_s28] sm:$0xff]   ;;  %v5958_v11 = vld [vmem:[%s6082_s28 + $0xc8] sm:$0xff]   ;;  %v5960_v13 = vld [vmem:[%s6082_s28 + $0xd0] sm:$0xff]  }
  0x16   : > { %v5959_v12 = vld [vmem:[%s6082_s28 + $0x8] sm:$0xff]   ;;  %v5961_v14 = vld [vmem:[%s6082_s28 + $0x10] sm:$0xff]   ;;  %v5962_v15 = vld [vmem:[%s6082_s28 + $0xd8] sm:$0xff]  }
  0x17   : > { %5728 = vmatpush3.bf16.msra.mxu0 %v5954_v3  ;;  %5936 = vmatpush3.bf16.msra.mxu1 %v5954_v3  ;;  %v5963_v16 = vld [vmem:[%s6082_s28 + $0x18] sm:$0xff]   ;;  %v5964_v17 = vld [vmem:[%s6082_s28 + $0xe0] sm:$0xff]   ;;  %v5966_v19 = vld [vmem:[%s6082_s28 + $0xe8] sm:$0xff]  }
  0x18   : > { %5729 = vmatprep.subr.bf16.mxu0 %v6017_v1  ;;  %5932 = vmatprep.subr.bf16.mxu1 %v6017_v1  ;;  %v5965_v18 = vld [vmem:[%s6082_s28 + $0x20] sm:$0xff]   ;;  %v5967_v20 = vld [vmem:[%s6082_s28 + $0x28] sm:$0xff]   ;;  %v5968_v21 = vld [vmem:[%s6082_s28 + $0xf0] sm:$0xff]  }
  0x19   : > { %v5969_v22 = vld [vmem:[%s6082_s28 + $0x30] sm:$0xff]   ;;  %v5970_v23 = vld [vmem:[%s6082_s28 + $0xf8] sm:$0xff]   ;;  %v5972_v25 = vld [vmem:[%s6082_s28 + $0x100] sm:$0xff]  }
  0x1a   : > { %v5971_v24 = vld [vmem:[%s6082_s28 + $0x38] sm:$0xff]   ;;  %v5973_v26 = vld [vmem:[%s6082_s28 + $0x40] sm:$0xff]   ;;  %v5974_v27 = vld [vmem:[%s6082_s28 + $0x108] sm:$0xff]  }
  0x1b   : > { %5730 = vmatpush3.bf16.msra.mxu0 %v5955_v6  ;;  %5937 = vmatpush3.bf16.msra.mxu1 %v5955_v6  ;;  %v5975_v28 = vld [vmem:[%s6082_s28 + $0x48] sm:$0xff]   ;;  %v5976_v29 = vld [vmem:[%s6082_s28 + $0x110] sm:$0xff]   ;;  %v5978_v31 = vld [vmem:[%s6082_s28 + $0x118] sm:$0xff]   ;;  %v1740_v6 = vlaneseq }
  0x1c   : > { %5731 = vmatprep.subr.bf16.mxu0 %v6017_v1  ;;  %5933 = vmatprep.subr.bf16.mxu1 %v6017_v1  ;;  %v5977_v30 = vld [vmem:[%s6082_s28 + $0x50] sm:$0xff]   ;;  %v5979_v32 = vld [vmem:[%s6082_s28 + $0x58] sm:$0xff]   ;;  %v5980_v33 = vld [vmem:[%s6082_s28 + $0x120] sm:$0xff]  }
  0x1d   : > { %v5981_v34 = vld [vmem:[%s6082_s28 + $0x60] sm:$0xff]   ;;  %v5982_v35 = vld [vmem:[%s6082_s28 + $0x128] sm:$0xff]   ;;  %v5984_v37 = vld [vmem:[%s6082_s28 + $0x130] sm:$0xff]  }
  0x1e   : > { %v5983_v36 = vld [vmem:[%s6082_s28 + $0x68] sm:$0xff]   ;;  %v5985_v38 = vld [vmem:[%s6082_s28 + $0x70] sm:$0xff]   ;;  %v5986_v39 = vld [vmem:[%s6082_s28 + $0x138] sm:$0xff]  }
  0x1f   : > { %5732 = vmatpush3.bf16.msra.mxu0 %v722_v9  ;;  %5938 = vmatpush3.bf16.msra.mxu1 %v722_v9  ;;  %v5987_v40 = vld [vmem:[%s6082_s28 + $0x78] sm:$0xff]   ;;  %v5988_v41 = vld [vmem:[%s6082_s28 + $0x140] sm:$0xff]   ;;  %v5990_v43 = vld [vmem:[%s6082_s28 + $0x148] sm:$0xff]  }
  0x20   : > { %v5989_v42 = vld [vmem:[%s6082_s28 + $0x80] sm:$0xff]   ;;  %v5991_v44 = vld [vmem:[%s6082_s28 + $0x88] sm:$0xff]   ;;  %v5992_v45 = vld [vmem:[%s6082_s28 + $0x150] sm:$0xff]  }
  0x21   : > { %v5993_v46 = vld [vmem:[%s6082_s28 + $0x90] sm:$0xff]   ;;  %v5994_v47 = vld [vmem:[%s6082_s28 + $0x158] sm:$0xff]   ;;  %v5996_v49 = vld [vmem:[%s6082_s28 + $0x160] sm:$0xff]  }
  0x22   : > { %5734 = vmatmul.mubr.msk.bf16.vlgmr.msra.gmra.mrb[0].mxu0 %vm569_vm3, %v5957_v10  ;;  %5834 = vmatmul.mubr.msk.bf16.vlgmr.msra.gmra.mrb[0].mxu1 %vm569_vm3, %v5958_v11  ;;  %v5995_v48 = vld [vmem:[%s6082_s28 + $0x98] sm:$0xff]   ;;  %v5997_v50 = vld [vmem:[%s6082_s28 + $0xa0] sm:$0xff]   ;;  %v5998_v51 = vld [vmem:[%s6082_s28 + $0x168] sm:$0xff]  }
  0x23   : > { %5737 = vmatprep.mubr.msk.bf16.mxu0 %vm6019_vm2, %v6017_v1  ;;  %5837 = vmatprep.mubr.msk.bf16.mxu1 %vm6019_vm2, %v6017_v1  ;;  %v5999_v52 = vld [vmem:[%s6082_s28 + $0xa8] sm:$0xff]   ;;  %v6000_v53 = vld [vmem:[%s6082_s28 + $0x170] sm:$0xff]   ;;  %v6002_v55 = vld [vmem:[%s6082_s28 + $0x178] sm:$0xff]  }
  0x24   : > { %v6001_v54 = vld [vmem:[%s6082_s28 + $0xb0] sm:$0xff]   ;;  %v6003_v56 = vld [vmem:[%s6082_s28 + $0xb8] sm:$0xff]   ;;  %v6004_v57 = vld [vmem:[%s6082_s28 + $0x180] sm:$0xff]  }
  0x25   : > { %v6005_v58 = vld [vmem:[%s6082_s28 + $0xc0] sm:$0xff]  }
  0x2a   : > { %5738 = vmatmul.mubr.msk.bf16.gmra.mrb[4].mxu0 %vm569_vm3, %v5959_v12  ;;  %5838 = vmatmul.mubr.msk.bf16.gmra.mrb[4].mxu1 %vm569_vm3, %v5960_v13  ;;  %v1739_v12 = vunpack.c.0.s8 %v1738_v5  ;;  %v1741_v13 = vshrl.u32 %v1740_v6, 7 }
  0x2b   : > { %5741 = vmatprep.mubr.msk.bf16.mxu0 %vm6019_vm2, %v6017_v1  ;;  %5841 = vmatprep.mubr.msk.bf16.mxu1 %vm6019_vm2, %v6017_v1 }
  0x32   : > { %5742 = vmatmul.mubr.msk.bf16.gmra.mrb[8].mxu0 %vm569_vm3, %v5961_v14  ;;  %5842 = vmatmul.mubr.msk.bf16.gmra.mrb[8].mxu1 %vm569_vm3, %v5962_v15 }
  0x33   : > { %5745 = vmatprep.mubr.msk.bf16.mxu0 %vm6019_vm2, %v6017_v1  ;;  %5845 = vmatprep.mubr.msk.bf16.mxu1 %vm6019_vm2, %v6017_v1 }
  0x3a   : > { %5746 = vmatmul.mubr.msk.bf16.gmra.mrb[12].mxu0 %vm569_vm3, %v5963_v16  ;;  %5846 = vmatmul.mubr.msk.bf16.gmra.mrb[12].mxu1 %vm569_vm3, %v5964_v17 }
  0x3b   : > { %5749 = vmatprep.mubr.msk.bf16.mxu0 %vm6019_vm2, %v6017_v1  ;;  %5849 = vmatprep.mubr.msk.bf16.mxu1 %vm6019_vm2, %v6017_v1 }
  0x42   : > { %5750 = vmatmul.mubr.msk.bf16.gmra.mrb[16].mxu0 %vm569_vm3, %v5965_v18  ;;  %5850 = vmatmul.mubr.msk.bf16.gmra.mrb[16].mxu1 %vm569_vm3, %v5966_v19 }
  0x43   : > { %5753 = vmatprep.mubr.msk.bf16.mxu0 %vm6019_vm2, %v6017_v1  ;;  %5853 = vmatprep.mubr.msk.bf16.mxu1 %vm6019_vm2, %v6017_v1 }
  0x4a   : > { %5754 = vmatmul.mubr.msk.bf16.gmra.mrb[20].mxu0 %vm569_vm3, %v5967_v20  ;;  %5854 = vmatmul.mubr.msk.bf16.gmra.mrb[20].mxu1 %vm569_vm3, %v5968_v21 }
  0x4b   : > { %5757 = vmatprep.mubr.msk.bf16.mxu0 %vm6019_vm2, %v6017_v1  ;;  %5857 = vmatprep.mubr.msk.bf16.mxu1 %vm6019_vm2, %v6017_v1 }
  0x52   : > { %5758 = vmatmul.mubr.msk.bf16.gmra.mrb[24].mxu0 %vm569_vm3, %v5969_v22  ;;  %5858 = vmatmul.mubr.msk.bf16.gmra.mrb[24].mxu1 %vm569_vm3, %v5970_v23  ;;  %v6293_v23 = vsub.s32 %v1739_v12, %v1741_v13 }
  0x53   : > { %5761 = vmatprep.mubr.msk.bf16.mxu0 %vm6019_vm2, %v6017_v1  ;;  %5861 = vmatprep.mubr.msk.bf16.mxu1 %vm6019_vm2, %v6017_v1 }
  0x5a   : > { %5762 = vmatmul.mubr.msk.bf16.gmra.mrb[28].mxu0 %vm569_vm3, %v5971_v24  ;;  %5862 = vmatmul.mubr.msk.bf16.gmra.mrb[28].mxu1 %vm569_vm3, %v5972_v25 }
  0x5b   : > { %5765 = vmatprep.mubr.msk.bf16.mxu0 %vm6019_vm2, %v6017_v1  ;;  %5865 = vmatprep.mubr.msk.bf16.mxu1 %vm6019_vm2, %v6017_v1 }
  0x62   : > { %5766 = vmatmul.mubr.msk.bf16.gmra.mrb[32].mxu0 %vm569_vm3, %v5973_v26  ;;  %5866 = vmatmul.mubr.msk.bf16.gmra.mrb[32].mxu1 %vm569_vm3, %v5974_v27 }
  0x63   : > { %5769 = vmatprep.mubr.msk.bf16.mxu0 %vm6019_vm2, %v6017_v1  ;;  %5869 = vmatprep.mubr.msk.bf16.mxu1 %vm6019_vm2, %v6017_v1 }
  0x6a   : > { %5770 = vmatmul.mubr.msk.bf16.gmra.mrb[36].mxu0 %vm569_vm3, %v5975_v28  ;;  %5870 = vmatmul.mubr.msk.bf16.gmra.mrb[36].mxu1 %vm569_vm3, %v5976_v29 }
  0x6b   : > { %5773 = vmatprep.mubr.msk.bf16.mxu0 %vm6019_vm2, %v6017_v1  ;;  %5873 = vmatprep.mubr.msk.bf16.mxu1 %vm6019_vm2, %v6017_v1 }
  0x72   : > { %5774 = vmatmul.mubr.msk.bf16.gmra.mrb[40].mxu0 %vm569_vm3, %v5977_v30  ;;  %5874 = vmatmul.mubr.msk.bf16.gmra.mrb[40].mxu1 %vm569_vm3, %v5978_v31 }
  0x73   : > { %5777 = vmatprep.mubr.msk.bf16.mxu0 %vm6019_vm2, %v6017_v1  ;;  %5877 = vmatprep.mubr.msk.bf16.mxu1 %vm6019_vm2, %v6017_v1 }
  0x7a   : > { %5778 = vmatmul.mubr.msk.bf16.gmra.mrb[44].mxu0 %vm569_vm3, %v5979_v32  ;;  %5878 = vmatmul.mubr.msk.bf16.gmra.mrb[44].mxu1 %vm569_vm3, %v5980_v33 }
  0x7b   : > { %5781 = vmatprep.mubr.msk.bf16.mxu0 %vm6019_vm2, %v6017_v1  ;;  %5881 = vmatprep.mubr.msk.bf16.mxu1 %vm6019_vm2, %v6017_v1 }
  0x82   : > { %5782 = vmatmul.mubr.msk.bf16.gmra.mrb[48].mxu0 %vm569_vm3, %v5981_v34  ;;  %5882 = vmatmul.mubr.msk.bf16.gmra.mrb[48].mxu1 %vm569_vm3, %v5982_v35 }
  0x83   : > { %5785 = vmatprep.mubr.msk.bf16.mxu0 %vm6019_vm2, %v6017_v1  ;;  %5885 = vmatprep.mubr.msk.bf16.mxu1 %vm6019_vm2, %v6017_v1 }
  0x8a   : > { %5786 = vmatmul.mubr.msk.bf16.gmra.mrb[52].mxu0 %vm569_vm3, %v5983_v36  ;;  %5886 = vmatmul.mubr.msk.bf16.gmra.mrb[52].mxu1 %vm569_vm3, %v5984_v37 }
  0x8b   : > { %5789 = vmatprep.mubr.msk.bf16.mxu0 %vm6019_vm2, %v6017_v1  ;;  %5889 = vmatprep.mubr.msk.bf16.mxu1 %vm6019_vm2, %v6017_v1 }
  0x92   : > { %5790 = vmatmul.mubr.msk.bf16.gmra.mrb[56].mxu0 %vm569_vm3, %v5985_v38  ;;  %5890 = vmatmul.mubr.msk.bf16.gmra.mrb[56].mxu1 %vm569_vm3, %v5986_v39 }
  0x93   : > { %5793 = vmatprep.mubr.msk.bf16.mxu0 %vm6019_vm2, %v6017_v1  ;;  %5893 = vmatprep.mubr.msk.bf16.mxu1 %vm6019_vm2, %v6017_v1 }
  0x9a   : > { %5794 = vmatmul.mubr.msk.bf16.gmra.mrb[60].mxu0 %vm569_vm3, %v5987_v40  ;;  %5894 = vmatmul.mubr.msk.bf16.gmra.mrb[60].mxu1 %vm569_vm3, %v5988_v41 }
  0x9b   : > { %5797 = vmatprep.mubr.msk.bf16.mxu0 %vm6019_vm2, %v6017_v1  ;;  %5897 = vmatprep.mubr.msk.bf16.mxu1 %vm6019_vm2, %v6017_v1 }
  0xa2   : > { %5798 = vmatmul.mubr.msk.bf16.gmra.mrb[64].mxu0 %vm569_vm3, %v5989_v42  ;;  %5898 = vmatmul.mubr.msk.bf16.gmra.mrb[64].mxu1 %vm569_vm3, %v5990_v43 }
  0xa3   : > { %5801 = vmatprep.mubr.msk.bf16.mxu0 %vm6019_vm2, %v6017_v1  ;;  %5901 = vmatprep.mubr.msk.bf16.mxu1 %vm6019_vm2, %v6017_v1 }
  0xaa   : > { %5802 = vmatmul.mubr.msk.bf16.gmra.mrb[68].mxu0 %vm569_vm3, %v5991_v44  ;;  %5902 = vmatmul.mubr.msk.bf16.gmra.mrb[68].mxu1 %vm569_vm3, %v5992_v45 }
  0xab   : > { %5805 = vmatprep.mubr.msk.bf16.mxu0 %vm6019_vm2, %v6017_v1  ;;  %5905 = vmatprep.mubr.msk.bf16.mxu1 %vm6019_vm2, %v6017_v1 }
  0xb2   : > { %5806 = vmatmul.mubr.msk.bf16.gmra.mrb[72].mxu0 %vm569_vm3, %v5993_v46  ;;  %5906 = vmatmul.mubr.msk.bf16.gmra.mrb[72].mxu1 %vm569_vm3, %v5994_v47 }
  0xb3   : > { %5809 = vmatprep.mubr.msk.bf16.mxu0 %vm6019_vm2, %v6017_v1  ;;  %5909 = vmatprep.mubr.msk.bf16.mxu1 %vm6019_vm2, %v6017_v1 }
  0xba   : > { %5810 = vmatmul.mubr.msk.bf16.gmra.mrb[76].mxu0 %vm569_vm3, %v5995_v48  ;;  %5910 = vmatmul.mubr.msk.bf16.gmra.mrb[76].mxu1 %vm569_vm3, %v5996_v49 }
  0xbb   : > { %5813 = vmatprep.mubr.msk.bf16.mxu0 %vm6019_vm2, %v6017_v1  ;;  %5913 = vmatprep.mubr.msk.bf16.mxu1 %vm6019_vm2, %v6017_v1 }
  0xc2   : > { %5814 = vmatmul.mubr.msk.bf16.gmra.mrb[80].mxu0 %vm569_vm3, %v5997_v50  ;;  %5914 = vmatmul.mubr.msk.bf16.gmra.mrb[80].mxu1 %vm569_vm3, %v5998_v51 }
  0xc3   : > { %5817 = vmatprep.mubr.msk.bf16.mxu0 %vm6019_vm2, %v6017_v1  ;;  %5917 = vmatprep.mubr.msk.bf16.mxu1 %vm6019_vm2, %v6017_v1 }
  0xca   : > { %5818 = vmatmul.mubr.msk.bf16.gmra.mrb[84].mxu0 %vm569_vm3, %v5999_v52  ;;  %5918 = vmatmul.mubr.msk.bf16.gmra.mrb[84].mxu1 %vm569_vm3, %v6000_v53 }
  0xcb   : > { %5821 = vmatprep.mubr.msk.bf16.mxu0 %vm6019_vm2, %v6017_v1  ;;  %5921 = vmatprep.mubr.msk.bf16.mxu1 %vm6019_vm2, %v6017_v1 }
  0xd2   : > { %5822 = vmatmul.mubr.msk.bf16.gmra.mrb[88].mxu0 %vm569_vm3, %v6001_v54  ;;  %5922 = vmatmul.mubr.msk.bf16.gmra.mrb[88].mxu1 %vm569_vm3, %v6002_v55 }
  0xd3   : > { %5825 = vmatprep.mubr.msk.bf16.mxu0 %vm6019_vm2, %v6017_v1  ;;  %5925 = vmatprep.mubr.msk.bf16.mxu1 %vm6019_vm2, %v6017_v1 }
  0xda   : > { %5826 = vmatmul.mubr.msk.bf16.gmra.mrb[92].mxu0 %vm569_vm3, %v6003_v56  ;;  %5926 = vmatmul.mubr.msk.bf16.gmra.mrb[92].mxu1 %vm569_vm3, %v6004_v57 }
  0xdb   : > { %5829 = vmatprep.mubr.msk.bf16.mxu0 %vm6019_vm2, %v6017_v1 }
  0xe2   : > { %5830 = vmatmul.mubr.msk.bf16.gmra.mrb[96].mxu0 %vm569_vm3, %v6005_v58 }
  0xf5   : > { %v758_v59 = vpop.f32.mrb[0].mxu0  ;;  %v958_v60 = vpop.f32.mrb[0].mxu1 }
  0xf6   : > { %v5735_v61 = vpop.f32.mrb[1].mxu0  ;;  %v5835_v62 = vpop.f32.mrb[1].mxu1  ;;  %v759_v15 = vadd.f32 %v6281_v7, %v758_v59  ;;  %v959_v16 = vadd.f32 %v6281_v7, %v958_v60 }
  0xf7   : > { %v761_v63 = vpop.f32.mrb[2].mxu0  ;;  %v961_v0 = vpop.f32.mrb[2].mxu1 }
  0xf8   : > { %v5736_v2 = vpop.f32.mrb[3].mxu0  ;;  %v5836_v3 = vpop.f32.mrb[3].mxu1  ;;  %v1149_v24 = vmax.f32 %v759_v15, 0.0  ;;  %v1199_v25 = vmax.f32 %v959_v16, 0.0  ;;  %v762_v28 = vadd.f32 %v6281_v7, %v761_v63  ;;  %v962_v29 = vadd.f32 %v6281_v7, %v961_v0 }
  0xfa   : > { %v1345_v45 = vcombine.high %v1149_v24, %v1149_v24  ;;  %v1395_v46 = vcombine.high %v1199_v25, %v1199_v25  ;;  %v6308_v47 = vmax.f32 %v762_v28, 0.0  ;;  %v6310_v48 = vmax.f32 %v962_v29, 0.0 }
  0xfd   : > { %v766_v1 = vpop.f32.mrb[4].mxu0  ;;  %v6283_v8 = vpop.f32.mrb[4].mxu1 }
  0xfe   : > { %v5739_v9 = vpop.f32.mrb[5].mxu0  ;;  %v5839_v10 = vpop.f32.mrb[5].mxu1  ;;  %v767_v62 = vadd.f32 %v6281_v7, %v766_v1 }
  0xff   : > { %v769_v11 = vpop.f32.mrb[6].mxu0  ;;  %v969_v14 = vpop.f32.mrb[6].mxu1  ;;  %v1346_v10 = vcombine.high %v6308_v47, %v6308_v47 }
 0x100   : > { %v770_v17 = vadd.f32 %v6281_v7, %v769_v11  ;;  %v970_v18 = vadd.f32 %v6281_v7, %v969_v14  ;;  %v5740_v19 = vpop.f32.mrb[7].mxu0  ;;  %v5840_v20 = vpop.f32.mrb[7].mxu1 }
 0x101   : > { %v967_v19 = vadd.f32 %v6281_v7, %v6283_v8 }
 0x102   : > { %v6289_v21 = vmax.f32 %v770_v17, 0.0  ;;  %v6291_v22 = vmax.f32 %v970_v18, 0.0  ;;  %v6329_v18 = vmax.f32 %v767_v62, 0.0 }
 0x104   : > { %7387 = vst [vmem:[#allocation2_spill] sm:$0xff] %v6291_v22  ;;  %v1348_v26 = vcombine.high %v6289_v21, %v6289_v21  ;;  %v1398_v27 = vcombine.high %v6291_v22, %v6291_v22 }
 0x105   : > { %v774_v30 = vpop.f32.mrb[8].mxu0  ;;  %v974_v31 = vpop.f32.mrb[8].mxu1 }
 0x106   : > { %v1541_v32 = vmax.f32 %v1149_v24, %v1348_v26  ;;  %v6301_v33 = vmax.f32 %v1199_v25, %v1398_v27  ;;  %v775_v34 = vadd.f32 %v6281_v7, %v774_v30  ;;  %v975_v35 = vadd.f32 %v6281_v7, %v974_v31  ;;  %v5743_v36 = vpop.f32.mrb[9].mxu0  ;;  %v5843_v37 = vpop.f32.mrb[9].mxu1 }
 0x107   : > { %v777_v38 = vpop.f32.mrb[10].mxu0  ;;  %v6305_v39 = vpop.f32.mrb[10].mxu1 }
 0x108   : > { %v1743_v40 = vrot.slane %v1541_v32, %v6293_v23  ;;  %v1153_v41 = vmax.f32 %v775_v34, 0.0  ;;  %v1203_v42 = vmax.f32 %v975_v35, 0.0  ;;  %v5744_v43 = vpop.f32.mrb[11].mxu0  ;;  %v5844_v44 = vpop.f32.mrb[11].mxu1  ;;  %v778_v32 = vadd.f32 %v6281_v7, %v777_v38 }
 0x109   : > { %v978_v44 = vadd.f32 %v6281_v7, %v6305_v39 }
 0x10a   : > { %v1744_v49 = vcombine.high %v1743_v40, %v1743_v40  ;;  %v5078_v50 = vrot.slane %v1743_v40, 9  ;;  %v1349_v51 = vcombine.high %v1153_v41, %v1153_v41  ;;  %v1542_v52 = vmax.f32 %v1345_v45, %v1153_v41 }
 0x10b   : > { %v1399_v53 = vcombine.high %v1203_v42, %v1203_v42  ;;  %v6312_v54 = vmax.f32 %v1395_v46, %v1203_v42 }
 0x10c   : > { %v5079_v55 = vrot.slane %v1744_v49, 9  ;;  %v3305_v56 = vmax.f32 %v1743_v40, %v5078_v50  ;;  %v1543_v57 = vmax.f32 %v6308_v47, %v1349_v51  ;;  %v1751_v58 = vrot.slane %v1542_v52, %v6293_v23 }
 0x10d   : > { %v1594_v59 = vmax.f32 %v6310_v48, %v1399_v53  ;;  %v6317_v60 = vpop.f32.mrb[12].mxu0  ;;  %v6319_v61 = vpop.f32.mrb[12].mxu1 }
 0x10e   : > { %v3306_v63 = vmax.f32 %v1744_v49, %v5079_v55  ;;  %v5747_v0 = vpop.f32.mrb[13].mxu0  ;;  %v5847_v2 = vpop.f32.mrb[13].mxu1  ;;  %v1752_v3 = vcombine.high %v1751_v58, %v1751_v58  ;;  %v1759_v4 = vrot.slane %v1543_v57, %v6293_v23  ;;  %v5080_v5 = vrot.slane %v1751_v58, 9 }
 0x10f   : > { %v6323_v6 = vpop.f32.mrb[14].mxu0  ;;  %v6325_v9 = vpop.f32.mrb[14].mxu1  ;;  %v5473_v11 = vpack.c.bf16 %v3305_v56, %v3305_v56  ;;  %v2167_v24 = vrot.slane %v1594_v59, %v6293_v23  ;;  %v6346_v55 = vmax.f32 %v967_v19, 0.0  ;;  %v6350_v56 = vrot.slane %v6301_v33, %v6293_v23 }
 0x110   : > { %v5474_v12 = vpack.c.bf16 %v3306_v63, %v3306_v63  ;;  %v5748_v1 = vpop.f32.mrb[15].mxu0  ;;  %v5848_v13 = vpop.f32.mrb[15].mxu1  ;;  %v1760_v14 = vcombine.high %v1759_v4, %v1759_v4  ;;  %v5081_v15 = vrot.slane %v1752_v3, 9  ;;  %v5082_v16 = vrot.slane %v1759_v4, 9 }
 0x111   : > { %v3307_v17 = vmax.f32 %v1751_v58, %v5080_v5  ;;  %v4285_v29 = vunpack.c.l.b16 %v5473_v11  ;;  %v2168_v31 = vcombine.high %v2167_v24, %v2167_v24  ;;  %v5184_v42 = vrot.slane %v2167_v24, 9  ;;  %7388 = vst [vmem:[#allocation3_spill] sm:$0xff] %v6346_v55  ;;  %7389 = vst [vmem:[#allocation4_spill] sm:$0xff] %v6350_v56 }
 0x112   : > { %v4286_v20 = vunpack.c.l.b16 %v5474_v12  ;;  %v5083_v25 = vrot.slane %v1760_v14, 9  ;;  %v3308_v26 = vmax.f32 %v1752_v3, %v5081_v15  ;;  %v3309_v27 = vmax.f32 %v1759_v4, %v5082_v16 }
 0x113   : > { %v5475_v28 = vpack.c.bf16 %v3307_v17, %v3307_v17  ;;  %v5185_v43 = vrot.slane %v2168_v31, 9  ;;  %v3411_v57 = vmax.f32 %v2167_v24, %v5184_v42  ;;  %v1396_v3 = vcombine.high %v6310_v48, %v6310_v48 }
 0x114   : > { %v4481_v30 = vrot.slane %v4286_v20, 7  ;;  %v3310_v34 = vmax.f32 %v1760_v14, %v5083_v25  ;;  %v5476_v35 = vpack.c.bf16 %v3308_v26, %v3308_v26  ;;  %v5477_v36 = vpack.c.bf16 %v3309_v27, %v3309_v27 }
 0x115   : > { %v4287_v37 = vunpack.c.l.b16 %v5475_v28  ;;  %v6335_v40 = vpop.f32.mrb[16].mxu0  ;;  %v6337_v8 = vpop.f32.mrb[16].mxu1  ;;  %v3412_v58 = vmax.f32 %v2168_v31, %v5185_v43  ;;  %v1347_v4 = vcombine.high %v6329_v18, %v6329_v18  ;;  %v5579_v5 = vpack.c.bf16 %v3411_v57, %v3411_v57 }
 0x116   : > { %v4483_v41 = vsel %vm4482_vm4, %v4481_v30, %v4285_v29  ;;  %v5751_v45 = vpop.f32.mrb[17].mxu0  ;;  %v5851_v46 = vpop.f32.mrb[17].mxu1  ;;  %v5478_v49 = vpack.c.bf16 %v3310_v34, %v3310_v34  ;;  %v4288_v50 = vunpack.c.l.b16 %v5476_v35  ;;  %v4289_v38 = vunpack.c.l.b16 %v5477_v36 }
 0x117   : > { %v4484_v51 = vrot.slane %v4287_v37, 6  ;;  %v6342_v52 = vpop.f32.mrb[18].mxu0  ;;  %v6344_v53 = vpop.f32.mrb[18].mxu1  ;;  %v5580_v11 = vpack.c.bf16 %v3412_v58, %v3412_v58  ;;  %v1154_v1 = vmax.f32 %v778_v32, 0.0  ;;  %v1204_v13 = vmax.f32 %v978_v44, 0.0 }
 0x118   : > { %v5752_v59 = vpop.f32.mrb[19].mxu0  ;;  %v5852_v39 = vpop.f32.mrb[19].mxu1  ;;  %v4290_v62 = vunpack.c.l.b16 %v5478_v49  ;;  %v4487_v0 = vrot.slane %v4288_v50, 5  ;;  %v4490_v2 = vrot.slane %v4289_v38, 4  ;;  %v6362_v15 = vcombine.high %v6350_v56, %v6350_v56 }
 0x119   : > { %v4486_v63 = vsel %vm4485_vm5, %v4484_v51, %v4483_v41  ;;  %v4392_v17 = vunpack.c.l.b16 %v5580_v11  ;;  %v1350_v19 = vcombine.high %v1154_v1, %v1154_v1  ;;  %v1544_v20 = vmax.f32 %v1346_v10, %v1154_v1 }
 0x11a   : > { %v4489_v33 = vsel %vm4488_vm6, %v4487_v0, %v4486_v63  ;;  %v4493_v12 = vrot.slane %v4290_v62, 3  ;;  %7390 = vst [vmem:[#allocation5_spill] sm:$0xff] %v6362_v15  ;;  %v6378_v27 = vrot.slane %v6312_v54, %v6293_v23  ;;  %v4391_v28 = vunpack.c.l.b16 %v5579_v5 }
 0x11b   : > { %v4492_v48 = vsel %vm4491_vm7, %v4490_v2, %v4489_v33  ;;  %v1400_v29 = vcombine.high %v1204_v13, %v1204_v13  ;;  %v1595_v30 = vmax.f32 %v1396_v3, %v1204_v13  ;;  %v4670_v34 = vrot.slane %v4392_v17, 7 }
 0x11c   : > { %v6370_v24 = vsel %vm4494_vm8, %v4493_v12, %v4492_v48  ;;  %7391 = vst [vmem:[#allocation6_spill] sm:$0xff] %v6378_v27  ;;  %v1545_v47 = vmax.f32 %v6329_v18, %v1350_v19  ;;  %v1767_v10 = vrot.slane %v1544_v20, %v6293_v23  ;;  %v783_v35 = vadd.f32 %v6281_v7, %v6317_v60 }
 0x11d   : > { %v6372_v25 = vpop.f32.mrb[20].mxu0  ;;  %v6374_v26 = vpop.f32.mrb[20].mxu1  ;;  %v1596_v54 = vmax.f32 %v6346_v55, %v1400_v29  ;;  %v2175_v41 = vrot.slane %v1595_v30, %v6293_v23  ;;  %v6392_v42 = vadd.f32 %v6281_v7, %v6323_v6  ;;  %v6396_v43 = vadd.f32 %v6281_v7, %v6319_v61 }
 0x11e   : > { %v5755_v31 = vpop.f32.mrb[21].mxu0  ;;  %v5855_v32 = vpop.f32.mrb[21].mxu1  ;;  %v4671_v60 = vsel %vm4482_vm4, %v4670_v34, %v4391_v28  ;;  %v1768_v46 = vcombine.high %v1767_v10, %v1767_v10  ;;  %v1775_v49 = vrot.slane %v1545_v47, %v6293_v23  ;;  %v5084_v50 = vrot.slane %v1767_v10, 9 }
 0x11f   : > { %v6384_v36 = vpop.f32.mrb[22].mxu0  ;;  %v6386_v37 = vpop.f32.mrb[22].mxu1  ;;  %v2176_v38 = vcombine.high %v2175_v41, %v2175_v41  ;;  %v2183_v51 = vrot.slane %v1596_v54, %v6293_v23  ;;  %v5186_v57 = vrot.slane %v2175_v41, 9  ;;  %v1155_v58 = vmax.f32 %v783_v35, 0.0 }
 0x120   : > { %v5756_v44 = vpop.f32.mrb[23].mxu0  ;;  %v5856_v45 = vpop.f32.mrb[23].mxu1  ;;  %v1776_v6 = vcombine.high %v1775_v49, %v1775_v49  ;;  %v5085_v59 = vrot.slane %v1768_v46, 9  ;;  %v5086_v39 = vrot.slane %v1775_v49, 9  ;;  %v3311_v62 = vmax.f32 %v1767_v10, %v5084_v50 }
 0x121   : > { %v2184_v61 = vcombine.high %v2183_v51, %v2183_v51  ;;  %v5187_v63 = vrot.slane %v2176_v38, 9  ;;  %v5188_v0 = vrot.slane %v2183_v51, 9  ;;  %v3413_v2 = vmax.f32 %v2175_v41, %v5186_v57 }
 0x122   : > { %v5087_v3 = vrot.slane %v1776_v6, 9  ;;  %v3312_v5 = vmax.f32 %v1768_v46, %v5085_v59  ;;  %v3313_v11 = vmax.f32 %v1775_v49, %v5086_v39  ;;  %v5479_v33 = vpack.c.bf16 %v3311_v62, %v3311_v62 }
 0x123   : > { %v5189_v13 = vrot.slane %v2184_v61, 9  ;;  %v3414_v48 = vmax.f32 %v2176_v38, %v5187_v63  ;;  %v3415_v17 = vmax.f32 %v2183_v51, %v5188_v0  ;;  %v5581_v19 = vpack.c.bf16 %v3413_v2, %v3413_v2 }
 0x124   : > { %v3314_v29 = vmax.f32 %v1776_v6, %v5087_v3  ;;  %v5480_v30 = vpack.c.bf16 %v3312_v5, %v3312_v5  ;;  %v5481_v31 = vpack.c.bf16 %v3313_v11, %v3313_v11  ;;  %v4291_v32 = vunpack.c.l.b16 %v5479_v33 }
 0x125   : > { %v6401_v12 = vpop.f32.mrb[24].mxu0  ;;  %v6403_v1 = vpop.f32.mrb[24].mxu1  ;;  %v3416_v10 = vmax.f32 %v2184_v61, %v5189_v13  ;;  %v5582_v35 = vpack.c.bf16 %v3414_v48, %v3414_v48  ;;  %v5583_v54 = vpack.c.bf16 %v3415_v17, %v3415_v17  ;;  %v4393_v41 = vunpack.c.l.b16 %v5581_v19 }
 0x126   : > { %v5759_v20 = vpop.f32.mrb[25].mxu0  ;;  %v5859_v28 = vpop.f32.mrb[25].mxu1  ;;  %v5482_v46 = vpack.c.bf16 %v3314_v29, %v3314_v29  ;;  %v4292_v49 = vunpack.c.l.b16 %v5480_v30  ;;  %v4293_v50 = vunpack.c.l.b16 %v5481_v31  ;;  %v4496_v38 = vrot.slane %v4291_v32, 2 }
 0x127   : > { %v6405_v34 = vpop.f32.mrb[26].mxu0  ;;  %v6407_v47 = vpop.f32.mrb[26].mxu1  ;;  %v5584_v51 = vpack.c.bf16 %v3416_v10, %v3416_v10  ;;  %v4394_v57 = vunpack.c.l.b16 %v5582_v35  ;;  %v4395_v6 = vunpack.c.l.b16 %v5583_v54  ;;  %v4672_v59 = vrot.slane %v4393_v41, 6 }
 0x128   : > { %v5760_v44 = vpop.f32.mrb[27].mxu0  ;;  %v5860_v45 = vpop.f32.mrb[27].mxu1  ;;  %v4294_v39 = vunpack.c.l.b16 %v5482_v46  ;;  %v4498_v62 = vsel %vm4497_vm9, %v4496_v38, %v6370_v24  ;;  %v4499_v63 = vrot.slane %v4292_v49, 1  ;;  %v1351_v61 = vcombine.high %v1155_v58, %v1155_v58 }
 0x129   : > { %v4396_v0 = vunpack.c.l.b16 %v5584_v51  ;;  %v4673_v2 = vsel %vm4485_vm5, %v4672_v59, %v4671_v60  ;;  %v4674_v3 = vrot.slane %v4394_v57, 5  ;;  %v4676_v5 = vrot.slane %v4395_v6, 4 }
 0x12a   : > { %v4501_v11 = vsel %vm4500_vm10, %v4499_v63, %v4498_v62  ;;  %v4502_v33 = vrot.slane %v4294_v39, 7  ;;  %v1546_v13 = vmax.f32 %v1347_v4, %v1155_v58  ;;  %v1547_v24 = vmax.f32 %v6289_v21, %v1351_v61 }
 0x12b   : > { %v4824_v17 = vpack.c.b16 %v4501_v11, %v4501_v11  ;;  %v4675_v19 = vsel %vm4488_vm6, %v4674_v3, %v4673_v2  ;;  %v4678_v20 = vrot.slane %v4396_v0, 3  ;;  %v6429_v28 = vmax.f32 %v6392_v42, 0.0 }
 0x12c   : > { %v6433_v18 = vcombine.high %v6378_v27, %v6378_v27  ;;  %v4677_v21 = vsel %vm4491_vm7, %v4676_v5, %v4675_v19  ;;  %v1783_v4 = vrot.slane %v1546_v13, %v6293_v23  ;;  %v1791_v58 = vrot.slane %v1547_v24, %v6293_v23 }
 0x12d   : > { %v6423_v48 = vpop.f32.mrb[28].mxu0  ;;  %v6425_v60 = vpop.f32.mrb[28].mxu1  ;;  %v4503_v42 = vsel %vm4482_vm4, %v4502_v33, %v4293_v50  ;;  %4880 = vst [vmem:[%s6416_s7] sm:$0xf] %v4824_v17  ;;  %v4679_v10 = vsel %vm4494_vm8, %v4678_v20, %v4677_v21  ;;  %v6446_v35 = vmax.f32 %v6396_v43, 0.0  ;;  %v986_v54 = vadd.f32 %v6281_v7, %v6325_v9 }
 0x12e   : > { %v5763_v29 = vpop.f32.mrb[29].mxu0  ;;  %v5863_v30 = vpop.f32.mrb[29].mxu1  ;;  %7392 = vst [vmem:[#allocation7_spill] sm:$0xff] %v6433_v18  ;;  %v4839_v45 = vpack.c.b16 %v4679_v10, %v4679_v10  ;;  %v1784_v46 = vcombine.high %v1783_v4, %v1783_v4  ;;  %v1792_v49 = vcombine.high %v1791_v58, %v1791_v58  ;;  %v5088_v38 = vrot.slane %v1783_v4, 9 }
 0x12f   : > { %v6438_v31 = vpop.f32.mrb[30].mxu0  ;;  %v6440_v32 = vpop.f32.mrb[30].mxu1  ;;  %v5090_v51 = vrot.slane %v1791_v58, 9  ;;  %v1352_v57 = vcombine.high %v6429_v28, %v6429_v28  ;;  %v6452_v50 = vmax.f32 %v986_v54, 0.0  ;;  %v791_v6 = vadd.f32 %v6281_v7, %v6335_v40 }
 0x130   : > { %v5764_v41 = vpop.f32.mrb[31].mxu0  ;;  %v5864_v44 = vpop.f32.mrb[31].mxu1  ;;  %4895 = vst [vmem:[%s6416_s7 + $0x3c] sm:$0x7] %v4839_v45  ;;  %v5089_v43 = vrot.slane %v1784_v46, 9  ;;  %v5091_v59 = vrot.slane %v1792_v49, 9  ;;  %v3315_v39 = vmax.f32 %v1783_v4, %v5088_v38  ;;  %v991_v9 = vadd.f32 %v6281_v7, %v6337_v8 }
 0x131   : > { %v3317_v62 = vmax.f32 %v1791_v58, %v5090_v51  ;;  %v1401_v63 = vcombine.high %v6446_v35, %v6446_v35  ;;  %v6461_v61 = vmax.f32 %v791_v6, 0.0  ;;  %v794_v0 = vadd.f32 %v6281_v7, %v6342_v52 }
 0x132   : > { %v3316_v2 = vmax.f32 %v1784_v46, %v5089_v43  ;;  %v3318_v3 = vmax.f32 %v1792_v49, %v5091_v59  ;;  %v5483_v5 = vpack.c.bf16 %v3315_v39, %v3315_v39  ;;  %v6465_v40 = vmax.f32 %v991_v9, 0.0 }
 0x133   : > { %v5485_v13 = vpack.c.bf16 %v3317_v62, %v3317_v62  ;;  %v994_v17 = vadd.f32 %v6281_v7, %v6344_v53  ;;  %v6477_v21 = vmax.f32 %v794_v0, 0.0  ;;  %v799_v53 = vadd.f32 %v6281_v7, %v6372_v25 }
 0x134   : > { %v5484_v20 = vpack.c.bf16 %v3316_v2, %v3316_v2  ;;  %v5486_v29 = vpack.c.bf16 %v3318_v3, %v3318_v3  ;;  %v4295_v30 = vunpack.c.l.b16 %v5483_v5  ;;  %v999_v51 = vadd.f32 %v6281_v7, %v6374_v26 }
 0x135   : > { %v6467_v11 = vpop.f32.mrb[32].mxu0  ;;  %v6469_v33 = vpop.f32.mrb[32].mxu1  ;;  %v4297_v10 = vunpack.c.l.b16 %v5485_v13  ;;  %v6485_v41 = vmax.f32 %v994_v17, 0.0  ;;  %v6493_v59 = vmax.f32 %v799_v53, 0.0  ;;  %v802_v39 = vadd.f32 %v6281_v7, %v6384_v36 }
 0x136   : > { %v5767_v52 = vpop.f32.mrb[33].mxu0  ;;  %v5867_v19 = vpop.f32.mrb[33].mxu1  ;;  %v4296_v46 = vunpack.c.l.b16 %v5484_v20  ;;  %v4298_v49 = vunpack.c.l.b16 %v5486_v29  ;;  %v4504_v38 = vrot.slane %v4295_v30, 6  ;;  %v1209_v0 = vmax.f32 %v999_v51, 0.0 }
 0x137   : > { %v6479_v4 = vpop.f32.mrb[34].mxu0  ;;  %v6481_v58 = vpop.f32.mrb[34].mxu1  ;;  %v4508_v6 = vrot.slane %v4297_v10, 4  ;;  %v1404_v43 = vcombine.high %v6485_v41, %v6485_v41  ;;  %v1355_v3 = vcombine.high %v6493_v59, %v6493_v59  ;;  %v1160_v26 = vmax.f32 %v802_v39, 0.0 }
 0x138   : > { %v5768_v44 = vpop.f32.mrb[35].mxu0  ;;  %v5868_v45 = vpop.f32.mrb[35].mxu1  ;;  %v4505_v9 = vsel %vm4485_vm5, %v4504_v38, %v4503_v42  ;;  %v4506_v25 = vrot.slane %v4296_v46, 5  ;;  %v4510_v62 = vrot.slane %v4298_v49, 3  ;;  %v6503_v5 = vadd.f32 %v6281_v7, %v6386_v37 }
 0x139   : > { %v1597_v2 = vmax.f32 %v6446_v35, %v1404_v43  ;;  %v1405_v17 = vcombine.high %v1209_v0, %v1209_v0  ;;  %v1598_v52 = vmax.f32 %v1401_v63, %v1209_v0  ;;  %v6508_v36 = vadd.f32 %v6281_v7, %v6401_v12 }
 0x13a   : > { %v4507_v13 = vsel %vm4488_vm6, %v4506_v25, %v4505_v9  ;;  %v1548_v29 = vmax.f32 %v6429_v28, %v1355_v3  ;;  %v1356_v37 = vcombine.high %v1160_v26, %v1160_v26  ;;  %v1549_v44 = vmax.f32 %v1352_v57, %v1160_v26 }
 0x13b   : > { %v4509_v35 = vsel %vm4491_vm7, %v4508_v6, %v4507_v13  ;;  %v2191_v20 = vrot.slane %v1597_v2, %v6293_v23  ;;  %v1599_v63 = vmax.f32 %v6452_v50, %v1405_v17  ;;  %v2199_v12 = vrot.slane %v1598_v52, %v6293_v23 }
 0x13c   : > { %v4511_v53 = vsel %vm4494_vm8, %v4510_v62, %v4509_v35  ;;  %v1799_v6 = vrot.slane %v1548_v29, %v6293_v23  ;;  %v1550_v0 = vmax.f32 %v6461_v61, %v1356_v37 }
 0x13d   : > { %v6510_v42 = vpop.f32.mrb[36].mxu0  ;;  %v6512_v19 = vpop.f32.mrb[36].mxu1  ;;  %v4825_v49 = vpack.c.b16 %v4511_v53, %v4511_v53  ;;  %v2192_v38 = vcombine.high %v2191_v20, %v2191_v20  ;;  %v5190_v51 = vrot.slane %v2191_v20, 9  ;;  %v2200_v9 = vcombine.high %v2199_v12, %v2199_v12 }
 0x13e   : > { %v5771_v30 = vpop.f32.mrb[37].mxu0  ;;  %v5871_v10 = vpop.f32.mrb[37].mxu1  ;;  %v2207_v25 = vrot.slane %v1599_v63, %v6293_v23  ;;  %v5192_v62 = vrot.slane %v2199_v12, 9  ;;  %v1800_v2 = vcombine.high %v1799_v6, %v1799_v6  ;;  %v5092_v3 = vrot.slane %v1799_v6, 9 }
 0x13f   : > { %v6523_v45 = vpop.f32.mrb[38].mxu0  ;;  %v6525_v46 = vpop.f32.mrb[38].mxu1  ;;  %4881 = vst [vmem:[%s6416_s7 + $0x4] sm:$0x7] %v4825_v49  ;;  %v5191_v28 = vrot.slane %v2192_v38, 9  ;;  %v3417_v57 = vmax.f32 %v2191_v20, %v5190_v51  ;;  %v5193_v13 = vrot.slane %v2200_v9, 9 }
 0x140   : > { %v5772_v43 = vpop.f32.mrb[39].mxu0  ;;  %v5872_v39 = vpop.f32.mrb[39].mxu1  ;;  %v2208_v26 = vcombine.high %v2207_v25, %v2207_v25  ;;  %v5194_v17 = vrot.slane %v2207_v25, 9  ;;  %v3419_v52 = vmax.f32 %v2199_v12, %v5192_v62  ;;  %v5093_v29 = vrot.slane %v1800_v2, 9 }
 0x141   : > { %v3418_v35 = vmax.f32 %v2192_v38, %v5191_v28  ;;  %v5585_v30 = vpack.c.bf16 %v3417_v57, %v3417_v57  ;;  %v3319_v10 = vmax.f32 %v1799_v6, %v5092_v3  ;;  %v3420_v43 = vmax.f32 %v2200_v9, %v5193_v13 }
 0x142   : > { %v5195_v53 = vrot.slane %v2208_v26, 9  ;;  %v3421_v39 = vmax.f32 %v2207_v25, %v5194_v17  ;;  %v5587_v63 = vpack.c.bf16 %v3419_v52, %v3419_v52  ;;  %v3320_v51 = vmax.f32 %v1800_v2, %v5093_v29 }
 0x143   : > { %v5586_v49 = vpack.c.bf16 %v3418_v35, %v3418_v35  ;;  %v4397_v20 = vunpack.c.l.b16 %v5585_v30  ;;  %v5487_v14 = vpack.c.bf16 %v3319_v10, %v3319_v10  ;;  %v5588_v12 = vpack.c.bf16 %v3420_v43, %v3420_v43 }
 0x144   : > { %v3422_v8 = vmax.f32 %v2208_v26, %v5195_v53  ;;  %v5589_v38 = vpack.c.bf16 %v3421_v39, %v3421_v39  ;;  %v4399_v62 = vunpack.c.l.b16 %v5587_v63  ;;  %v5488_v25 = vpack.c.bf16 %v3320_v51, %v3320_v51 }
 0x145   : > { %v6531_v16 = vpop.f32.mrb[40].mxu0  ;;  %v6533_v37 = vpop.f32.mrb[40].mxu1  ;;  %v4398_v9 = vunpack.c.l.b16 %v5586_v49  ;;  %v4299_v57 = vunpack.c.l.b16 %v5487_v14  ;;  %v1807_v3 = vrot.slane %v1549_v44, %v6293_v23  ;;  %v4400_v2 = vunpack.c.l.b16 %v5588_v12 }
 0x146   : > { %v5775_v54 = vpop.f32.mrb[41].mxu0  ;;  %v5875_v24 = vpop.f32.mrb[41].mxu1  ;;  %v5590_v52 = vpack.c.bf16 %v3422_v8, %v3422_v8  ;;  %v4401_v35 = vunpack.c.l.b16 %v5589_v38  ;;  %v4300_v26 = vunpack.c.l.b16 %v5488_v25  ;;  %v1815_v29 = vrot.slane %v1550_v0, %v6293_v23 }
 0x147   : > { %v6535_v28 = vpop.f32.mrb[42].mxu0  ;;  %v6537_v6 = vpop.f32.mrb[42].mxu1  ;;  %v4682_v54 = vrot.slane %v4399_v62, 6  ;;  %v4680_v24 = vrot.slane %v4398_v9, 7  ;;  %v1808_v30 = vcombine.high %v1807_v3, %v1807_v3  ;;  %v4684_v53 = vrot.slane %v4400_v2, 5 }
 0x148   : > { %v5776_v13 = vpop.f32.mrb[43].mxu0  ;;  %v5876_v17 = vpop.f32.mrb[43].mxu1  ;;  %v4402_v10 = vunpack.c.l.b16 %v5590_v52  ;;  %v4686_v43 = vrot.slane %v4401_v35, 4  ;;  %v5094_v39 = vrot.slane %v1807_v3, 9  ;;  %v4512_v14 = vrot.slane %v4300_v26, 7 }
 0x149   : > { %v4681_v63 = vsel %vm4482_vm4, %v4680_v24, %v4397_v20  ;;  %v1816_v49 = vcombine.high %v1815_v29, %v1815_v29  ;;  %v5095_v44 = vrot.slane %v1808_v30, 9  ;;  %v5096_v12 = vrot.slane %v1815_v29, 9 }
 0x14a   : > { %v4683_v51 = vsel %vm4485_vm5, %v4682_v54, %v4681_v63  ;;  %v4688_v8 = vrot.slane %v4402_v10, 3  ;;  %v3321_v38 = vmax.f32 %v1807_v3, %v5094_v39  ;;  %v4513_v0 = vsel %vm4482_vm4, %v4512_v14, %v4299_v57 }
 0x14b   : > { %v4685_v25 = vsel %vm4488_vm6, %v4684_v53, %v4683_v51  ;;  %v5097_v13 = vrot.slane %v1816_v49, 9  ;;  %v3322_v17 = vmax.f32 %v1808_v30, %v5095_v44  ;;  %v3323_v35 = vmax.f32 %v1815_v29, %v5096_v12 }
 0x14c   : > { %v4687_v2 = vsel %vm4491_vm7, %v4686_v43, %v4685_v25  ;;  %v5489_v24 = vpack.c.bf16 %v3321_v38, %v3321_v38  ;;  %v1210_v54 = vmax.f32 %v6503_v5, 0.0  ;;  %v1161_v53 = vmax.f32 %v6508_v36, 0.0 }
 0x14d   : > { %v6543_v62 = vpop.f32.mrb[44].mxu0  ;;  %v6545_v9 = vpop.f32.mrb[44].mxu1  ;;  %v3324_v10 = vmax.f32 %v1816_v49, %v5097_v13  ;;  %v5490_v39 = vpack.c.bf16 %v3322_v17, %v3322_v17  ;;  %v6556_v57 = vsel %vm4494_vm8, %v4688_v8, %v4687_v2  ;;  %v5491_v14 = vpack.c.bf16 %v3323_v35, %v3323_v35 }
 0x14e   : > { %v5779_v52 = vpop.f32.mrb[45].mxu0  ;;  %v5879_v20 = vpop.f32.mrb[45].mxu1  ;;  %v4301_v44 = vunpack.c.l.b16 %v5489_v24  ;;  %v1406_v43 = vcombine.high %v1210_v54, %v1210_v54  ;;  %v7393_v29 = vcombine.high %v6452_v50, %v6452_v50  ;;  %v1357_v38 = vcombine.high %v1161_v53, %v1161_v53 }
 0x14f   : > { %v6551_v26 = vpop.f32.mrb[46].mxu0  ;;  %v6553_v3 = vpop.f32.mrb[46].mxu1  ;;  %v5492_v51 = vpack.c.bf16 %v3324_v10, %v3324_v10  ;;  %v4302_v12 = vunpack.c.l.b16 %v5490_v39  ;;  %v7394_v49 = vcombine.high %v6461_v61, %v6461_v61  ;;  %v4303_v8 = vunpack.c.l.b16 %v5491_v14 }
 0x150   : > { %v5780_v30 = vpop.f32.mrb[47].mxu0  ;;  %v5880_v63 = vpop.f32.mrb[47].mxu1  ;;  %v1600_v5 = vmax.f32 %v7393_v29, %v1210_v54  ;;  %v4514_v13 = vrot.slane %v4301_v44, 6  ;;  %v1601_v36 = vmax.f32 %v6465_v40, %v1406_v43  ;;  %v1552_v2 = vmax.f32 %v6477_v21, %v1357_v38 }
 0x151   : > { %v1551_v25 = vmax.f32 %v7394_v49, %v1161_v53  ;;  %v4304_v52 = vunpack.c.l.b16 %v5492_v51  ;;  %v4516_v20 = vrot.slane %v4302_v12, 5  ;;  %v4518_v24 = vrot.slane %v4303_v8, 4 }
 0x152   : > { %v2215_v17 = vrot.slane %v1600_v5, %v6293_v23  ;;  %v4515_v35 = vsel %vm4485_vm5, %v4514_v13, %v4513_v0  ;;  %v2223_v10 = vrot.slane %v1601_v36, %v6293_v23 }
 0x153   : > { %v1823_v50 = vrot.slane %v1551_v25, %v6293_v23  ;;  %v4517_v53 = vsel %vm4488_vm6, %v4516_v20, %v4515_v35  ;;  %v4520_v30 = vrot.slane %v4304_v52, 3  ;;  %v1831_v25 = vrot.slane %v1552_v2, %v6293_v23 }
 0x154   : > { %v2216_v54 = vcombine.high %v2215_v17, %v2215_v17  ;;  %v5196_v63 = vrot.slane %v2215_v17, 9  ;;  %v4519_v29 = vsel %vm4491_vm7, %v4518_v24, %v4517_v53  ;;  %v2224_v5 = vcombine.high %v2223_v10, %v2223_v10 }
 0x155   : > { %v6571_v61 = vpop.f32.mrb[48].mxu0  ;;  %v6573_v39 = vpop.f32.mrb[48].mxu1  ;;  %v1824_v14 = vcombine.high %v1823_v50, %v1823_v50  ;;  %v5198_v0 = vrot.slane %v2223_v10, 9  ;;  %v5098_v8 = vrot.slane %v1823_v50, 9  ;;  %v1832_v53 = vcombine.high %v1831_v25, %v1831_v25 }
 0x156   : > { %v5783_v44 = vpop.f32.mrb[49].mxu0  ;;  %v5883_v43 = vpop.f32.mrb[49].mxu1  ;;  %v5197_v51 = vrot.slane %v2216_v54, 9  ;;  %v3423_v49 = vmax.f32 %v2215_v17, %v5196_v63  ;;  %v5199_v20 = vrot.slane %v2224_v5, 9  ;;  %v5100_v56 = vrot.slane %v1831_v25, 9 }
 0x157   : > { %v6577_v12 = vpop.f32.mrb[50].mxu0  ;;  %v6579_v38 = vpop.f32.mrb[50].mxu1  ;;  %v5099_v13 = vrot.slane %v1824_v14, 9  ;;  %v3425_v44 = vmax.f32 %v2223_v10, %v5198_v0  ;;  %v4521_v43 = vsel %vm4494_vm8, %v4520_v30, %v4519_v29  ;;  %v3325_v18 = vmax.f32 %v1823_v50, %v5098_v8 }
 0x158   : > { %7395 = vst [vmem:[#allocation8_spill] sm:$0xff] %v6579_v38  ;;  %v5784_v36 = vpop.f32.mrb[51].mxu0  ;;  %v5884_v52 = vpop.f32.mrb[51].mxu1  ;;  %v3424_v35 = vmax.f32 %v2216_v54, %v5197_v51  ;;  %v5591_v24 = vpack.c.bf16 %v3423_v49, %v3423_v49  ;;  %v3426_v27 = vmax.f32 %v2224_v5, %v5199_v20  ;;  %v5101_v63 = vrot.slane %v1832_v53, 9 }
 0x159   : > { %v5593_v22 = vpack.c.bf16 %v3425_v44, %v3425_v44  ;;  %v3326_v55 = vmax.f32 %v1824_v14, %v5099_v13  ;;  %v3327_v2 = vmax.f32 %v1831_v25, %v5100_v56  ;;  %v5493_v38 = vpack.c.bf16 %v3325_v18, %v3325_v18 }
 0x15a   : > { %v5592_v15 = vpack.c.bf16 %v3424_v35, %v3424_v35  ;;  %v4403_v17 = vunpack.c.l.b16 %v5591_v24  ;;  %v1354_v36 = vcombine.high %v6477_v21, %v6477_v21  ;;  %v5594_v52 = vpack.c.bf16 %v3426_v27, %v3426_v27 }
 0x15b   : > { %v5494_v10 = vpack.c.bf16 %v3326_v55, %v3326_v55  ;;  %v3328_v50 = vmax.f32 %v1832_v53, %v5101_v63  ;;  %v5495_v5 = vpack.c.bf16 %v3327_v2, %v3327_v2  ;;  %v4305_v0 = vunpack.c.l.b16 %v5493_v38 }
 0x15c   : > { %v4404_v54 = vunpack.c.l.b16 %v5592_v15  ;;  %v4690_v29 = vrot.slane %v4403_v17, 2  ;;  %v4406_v8 = vunpack.c.l.b16 %v5594_v52  ;;  %v1007_v18 = vadd.f32 %v6281_v7, %v6403_v1 }
 0x15d   : > { %v6585_v51 = vpop.f32.mrb[52].mxu0  ;;  %v6587_v30 = vpop.f32.mrb[52].mxu1  ;;  %v4306_v56 = vunpack.c.l.b16 %v5494_v10  ;;  %v4405_v15 = vunpack.c.l.b16 %v5593_v22  ;;  %v5496_v27 = vpack.c.bf16 %v3328_v50, %v3328_v50  ;;  %v4522_v25 = vrot.slane %v4305_v0, 2 }
 0x15e   : > { %v5787_v49 = vpop.f32.mrb[53].mxu0  ;;  %v5887_v14 = vpop.f32.mrb[53].mxu1  ;;  %v4692_v13 = vrot.slane %v4404_v54, 1  ;;  %v4691_v55 = vsel %vm4497_vm9, %v4690_v29, %v6556_v57  ;;  %v4694_v35 = vrot.slane %v4406_v8, 7  ;;  %v1211_v24 = vmax.f32 %v1007_v18, 0.0 }
 0x15f   : > { %v6591_v21 = vpop.f32.mrb[54].mxu0  ;;  %v4524_v44 = vrot.slane %v4306_v56, 1  ;;  %v4308_v17 = vunpack.c.l.b16 %v5496_v27  ;;  %v4523_v63 = vsel %vm4497_vm9, %v4522_v25, %v4521_v43  ;;  %v810_v22 = vadd.f32 %v6281_v7, %v6405_v34 }
 0x160   : > { %v5788_v20 = vpop.f32.mrb[55].mxu0  ;;  %v4693_v38 = vsel %vm4500_vm10, %v4692_v13, %v4691_v55  ;;  %v4307_v1 = vunpack.c.l.b16 %v5495_v5  ;;  %v1407_v2 = vcombine.high %v1211_v24, %v1211_v24  ;;  %v7396_v52 = vcombine.high %v6465_v40, %v6465_v40 }
 0x161   : > { %v4840_v53 = vpack.c.b16 %v4693_v38, %v4693_v38  ;;  %v4525_v57 = vsel %vm4500_vm10, %v4524_v44, %v4523_v63  ;;  %v4526_v10 = vrot.slane %v4308_v17, 7  ;;  %v1162_v50 = vmax.f32 %v810_v22, 0.0 }
 0x162   : > { %v1602_v54 = vmax.f32 %v7396_v52, %v1211_v24  ;;  %v4826_v29 = vpack.c.b16 %v4525_v57, %v4525_v57  ;;  %v815_v0 = vadd.f32 %v6281_v7, %v6423_v48  ;;  %v4695_v43 = vsel %vm4482_vm4, %v4694_v35, %v4405_v15  ;;  %v6628_v35 = vpop.f32.mrb[54].mxu1 }
 0x163   : > { %4896 = vst [vmem:[%s6416_s7 + $0x40] sm:$0xf] %v4840_v53  ;;  %v1603_v49 = vmax.f32 %v6485_v41, %v1407_v2  ;;  %v1010_v5 = vadd.f32 %v6281_v7, %v6407_v47  ;;  %v1358_v40 = vcombine.high %v1162_v50, %v1162_v50  ;;  %v1553_v8 = vmax.f32 %v1354_v36, %v1162_v50 }
 0x164   : > { %v2231_v34 = vrot.slane %v1602_v54, %v6293_v23  ;;  %4882 = vst [vmem:[%s6416_s7 + $0x8] sm:$0xf] %v4826_v29  ;;  %v6614_v13 = vmax.f32 %v815_v0, 0.0  ;;  %v818_v56 = vadd.f32 %v6281_v7, %v6438_v31  ;;  %v6619_v18 = vsel %vm4482_vm4, %v4526_v10, %v4307_v1 }
 0x165   : > { %v6611_v14 = vpop.f32.mrb[56].mxu0  ;;  %v2239_v15 = vrot.slane %v1603_v49, %v6293_v23  ;;  %v1554_v47 = vmax.f32 %v6493_v59, %v1358_v40  ;;  %v1839_v27 = vrot.slane %v1553_v8, %v6293_v23  ;;  %v6626_v25 = vmax.f32 %v1010_v5, 0.0  ;;  %v5888_v59 = vpop.f32.mrb[55].mxu1 }
 0x166   : > { %v5791_v48 = vpop.f32.mrb[57].mxu0  ;;  %v2232_v41 = vcombine.high %v2231_v34, %v2231_v34  ;;  %v5200_v55 = vrot.slane %v2231_v34, 9  ;;  %v6631_v17 = vmax.f32 %v818_v56, 0.0  ;;  %v6635_v36 = vpop.f32.mrb[56].mxu1 }
 0x167   : > { %v2240_v20 = vcombine.high %v2239_v15, %v2239_v15  ;;  %v5202_v7 = vrot.slane %v2239_v15, 9  ;;  %v1840_v44 = vcombine.high %v1839_v27, %v1839_v27  ;;  %v1847_v24 = vrot.slane %v1554_v47, %v6293_v23  ;;  %v6633_v2 = vpop.f32.mrb[58].mxu0  ;;  %7397 = vst [vmem:[#allocation9_spill] sm:$0xff] %v6635_v36 }
 0x168   : > { %v5201_v38 = vrot.slane %v2232_v41, 9  ;;  %v3427_v31 = vmax.f32 %v2231_v34, %v5200_v55  ;;  %v5102_v53 = vrot.slane %v1839_v27, 9  ;;  %v5792_v50 = vpop.f32.mrb[59].mxu0 }
 0x169   : > { %v5203_v63 = vrot.slane %v2240_v20, 9  ;;  %v3429_v1 = vmax.f32 %v2239_v15, %v5202_v7  ;;  %v1848_v52 = vcombine.high %v1847_v24, %v1847_v24  ;;  %v5103_v54 = vrot.slane %v1840_v44, 9  ;;  %v6646_v50 = vld [vmem:[%s7376_s2] ss:$0 sm:$0xff] }
 0x16a   : > { %v3428_v22 = vmax.f32 %v2232_v41, %v5201_v38  ;;  %v5595_v57 = vpack.c.bf16 %v3427_v31, %v3427_v31  ;;  %v5104_v10 = vrot.slane %v1847_v24, 9  ;;  %v3329_v29 = vmax.f32 %v1839_v27, %v5102_v53 }
 0x16b   : > { %v3430_v0 = vmax.f32 %v2240_v20, %v5203_v63  ;;  %v5597_v34 = vpack.c.bf16 %v3429_v1, %v3429_v1  ;;  %v5105_v40 = vrot.slane %v1848_v52, 9  ;;  %v3330_v8 = vmax.f32 %v1840_v44, %v5103_v54 }
 0x16c   : > { %v5596_v49 = vpack.c.bf16 %v3428_v22, %v3428_v22  ;;  %v4407_v5 = vunpack.c.l.b16 %v5595_v57  ;;  %v3331_v56 = vmax.f32 %v1847_v24, %v5104_v10  ;;  %v5497_v48 = vpack.c.bf16 %v3329_v29, %v3329_v29  ;;  %v5891_v22 = vpop.f32.mrb[57].mxu1 }
 0x16d   : > { %v5598_v55 = vpack.c.bf16 %v3430_v0, %v3430_v0  ;;  %v4409_v41 = vunpack.c.l.b16 %v5597_v34  ;;  %v3332_v38 = vmax.f32 %v1848_v52, %v5105_v40  ;;  %v5498_v7 = vpack.c.bf16 %v3330_v8, %v3330_v8  ;;  %v6638_v54 = vpop.f32.mrb[58].mxu1  ;;  %v6653_v8 = vpop.f32.mrb[60].mxu0 }
 0x16e   : > { %v4408_v47 = vunpack.c.l.b16 %v5596_v49  ;;  %v4696_v15 = vrot.slane %v4407_v5, 6  ;;  %v5499_v31 = vpack.c.bf16 %v3331_v56, %v3331_v56  ;;  %v4309_v59 = vunpack.c.l.b16 %v5497_v48  ;;  %7398 = vst [vmem:[#allocation10_spill] sm:$0xff] %v6638_v54  ;;  %v5892_v0 = vpop.f32.mrb[59].mxu1  ;;  %7399 = vst [vmem:[#allocation11_spill] sm:$0xff] %v6653_v8 }
 0x16f   : > { %v4410_v27 = vunpack.c.l.b16 %v5598_v55  ;;  %v4700_v63 = vrot.slane %v4409_v41, 4  ;;  %v5500_v1 = vpack.c.bf16 %v3332_v38, %v3332_v38  ;;  %v4310_v44 = vunpack.c.l.b16 %v5498_v7  ;;  %v6655_v56 = vpop.f32.mrb[60].mxu1  ;;  %v5795_v41 = vpop.f32.mrb[61].mxu0 }
 0x170   : > { %v4697_v20 = vsel %vm4485_vm5, %v4696_v15, %v4695_v43  ;;  %v4698_v53 = vrot.slane %v4408_v47, 5  ;;  %v4311_v24 = vunpack.c.l.b16 %v5499_v31  ;;  %v4528_v57 = vrot.slane %v4309_v59, 6  ;;  %7400 = vst [vmem:[#allocation12_spill] sm:$0xff] %v6655_v56  ;;  %v5895_v15 = vpop.f32.mrb[61].mxu1  ;;  %v6663_v59 = vpop.f32.mrb[62].mxu0 }
 0x171   : > { %v4702_v52 = vrot.slane %v4410_v27, 3  ;;  %v1408_v29 = vcombine.high %v6626_v25, %v6626_v25  ;;  %v1015_v43 = vadd.f32 %v6646_v50, %v6425_v60  ;;  %v4312_v34 = vunpack.c.l.b16 %v5500_v1  ;;  %7401 = vst [vmem:[#allocation13_spill] sm:$0xff] %v6663_v59  ;;  %v6665_v27 = vpop.f32.mrb[62].mxu1  ;;  %v5796_v22 = vpop.f32.mrb[63].mxu0 }
 0x172   : > { %v4699_v10 = vsel %vm4488_vm6, %v4698_v53, %v4697_v20  ;;  %v4529_v5 = vsel %vm4485_vm5, %v4528_v57, %v6619_v18  ;;  %v4530_v40 = vrot.slane %v4310_v44, 5  ;;  %v4532_v55 = vrot.slane %v4311_v24, 4  ;;  %7402 = vst [vmem:[#allocation14_spill] sm:$0xff] %v6665_v27  ;;  %v5896_v1 = vpop.f32.mrb[63].mxu1 }
 0x173   : > { %v4701_v49 = vsel %vm4491_vm7, %v4700_v63, %v4699_v10  ;;  %v1213_v47 = vmax.f32 %v1015_v43, 0.0  ;;  %v1018_v60 = vadd.f32 %v6646_v50, %v6440_v32  ;;  %v4534_v31 = vrot.slane %v4312_v34, 3 }
 0x174   : > { %v4703_v48 = vsel %vm4494_vm8, %v4702_v52, %v4701_v49  ;;  %v4531_v7 = vsel %vm4488_vm6, %v4530_v40, %v4529_v5  ;;  %v823_v18 = vadd.f32 %v6646_v50, %v6467_v11  ;;  %v1023_v32 = vadd.f32 %v6646_v50, %v6469_v33 }
 0x175   : > { %v4841_v38 = vpack.c.b16 %v4703_v48, %v4703_v48  ;;  %v4533_v20 = vsel %vm4491_vm7, %v4532_v55, %v4531_v7  ;;  %v6670_v63 = vmax.f32 %v1018_v60, 0.0  ;;  %v1409_v44 = vcombine.high %v1213_v47, %v1213_v47  ;;  %v6717_v22 = vpop.f32.mrb[64].mxu1 }
 0x176   : > { %v4535_v11 = vsel %vm4494_vm8, %v4534_v31, %v4533_v20  ;;  %v826_v24 = vadd.f32 %v6646_v50, %v6479_v4  ;;  %v1026_v57 = vadd.f32 %v6646_v50, %v6481_v58  ;;  %v6680_v52 = vmax.f32 %v823_v18, 0.0  ;;  %7405 = vst [vmem:[#allocation16_spill] sm:$0xff] %v6717_v22 }
 0x177   : > { %4897 = vst [vmem:[%s6416_s7 + $0x44] sm:$0x7] %v4841_v38  ;;  %v4827_v10 = vpack.c.b16 %v4535_v11, %v4535_v11  ;;  %v6682_v43 = vmax.f32 %v1023_v32, 0.0  ;;  %v831_v33 = vadd.f32 %v6646_v50, %v6510_v42  ;;  %v1031_v4 = vadd.f32 %v6646_v50, %v6512_v19  ;;  %v6705_v19 = vpop.f32.mrb[64].mxu0 }
 0x178   : > { %v6688_v49 = vmax.f32 %v826_v24, 0.0  ;;  %v1216_v34 = vmax.f32 %v1026_v57, 0.0  ;;  %v834_v40 = vadd.f32 %v6646_v50, %v6523_v45  ;;  %v6699_v42 = vadd.f32 %v6646_v50, %v6525_v46  ;;  %7403 = vst [vmem:[#allocation15_spill] sm:$0xff] %v6705_v19  ;;  %v5799_v46 = vpop.f32.mrb[65].mxu0  ;;  %v5899_v57 = vpop.f32.mrb[65].mxu1 }
 0x179   : > { %4883 = vst [vmem:[%s6416_s7 + $0xc] sm:$0x7] %v4827_v10  ;;  %v1411_v58 = vcombine.high %v6682_v43, %v6682_v43  ;;  %v1167_v5 = vmax.f32 %v831_v33, 0.0  ;;  %v6703_v41 = vmax.f32 %v1031_v4, 0.0  ;;  %v7404_v7 = vcombine.high %v6614_v13, %v6614_v13  ;;  %v6728_v36 = vpop.f32.mrb[66].mxu0 }
 0x17a   : > { %v1362_v48 = vcombine.high %v6688_v49, %v6688_v49  ;;  %v1412_v55 = vcombine.high %v1216_v34, %v1216_v34  ;;  %v1605_v60 = vmax.f32 %v1408_v29, %v1216_v34  ;;  %v6711_v31 = vmax.f32 %v834_v40, 0.0 }
 0x17b   : > { %v1604_v15 = vmax.f32 %v6626_v25, %v1411_v58  ;;  %v1363_v38 = vcombine.high %v1167_v5, %v1167_v5  ;;  %v1556_v45 = vmax.f32 %v7404_v7, %v1167_v5  ;;  %v6723_v24 = vmax.f32 %v1409_v44, %v6703_v41 }
 0x17c   : > { %v1555_v18 = vmax.f32 %v6614_v13, %v1362_v48  ;;  %v1606_v20 = vmax.f32 %v1213_v47, %v1412_v55  ;;  %v2255_v32 = vrot.slane %v1605_v60, %v6293_v23 }
 0x17d   : > { %v2247_v25 = vrot.slane %v1604_v15, %v6293_v23  ;;  %v1557_v1 = vmax.f32 %v6631_v17, %v1363_v38  ;;  %v1863_v11 = vrot.slane %v1556_v45, %v6293_v23 }
 0x17e   : > { %v1855_v13 = vrot.slane %v1555_v18, %v6293_v23  ;;  %v2256_v47 = vcombine.high %v2255_v32, %v2255_v32  ;;  %v2263_v10 = vrot.slane %v1606_v20, %v6293_v23  ;;  %v5206_v33 = vrot.slane %v2255_v32, 9 }
 0x17f   : > { %v2248_v34 = vcombine.high %v2247_v25, %v2247_v25  ;;  %v5204_v4 = vrot.slane %v2247_v25, 9  ;;  %v1864_v58 = vcombine.high %v1863_v11, %v1863_v11  ;;  %v1871_v5 = vrot.slane %v1557_v1, %v6293_v23 }
 0x180   : > { %v1856_v40 = vcombine.high %v1855_v13, %v1855_v13  ;;  %v5106_v48 = vrot.slane %v1855_v13, 9  ;;  %v2264_v55 = vcombine.high %v2263_v10, %v2263_v10  ;;  %v5207_v60 = vrot.slane %v2256_v47, 9 }
 0x181   : > { %v5205_v15 = vrot.slane %v2248_v34, 9  ;;  %v3431_v38 = vmax.f32 %v2247_v25, %v5204_v4  ;;  %v5208_v44 = vrot.slane %v2263_v10, 9  ;;  %v3433_v7 = vmax.f32 %v2255_v32, %v5206_v33  ;;  %v5800_v4 = vpop.f32.mrb[67].mxu0 }
 0x182   : > { %v5107_v45 = vrot.slane %v1856_v40, 9  ;;  %v3333_v46 = vmax.f32 %v1855_v13, %v5106_v48  ;;  %v5209_v18 = vrot.slane %v2264_v55, 9  ;;  %v3434_v57 = vmax.f32 %v2256_v47, %v5207_v60 }
 0x183   : > { %v3432_v0 = vmax.f32 %v2248_v34, %v5205_v15  ;;  %v5599_v20 = vpack.c.bf16 %v3431_v38, %v3431_v38  ;;  %v3435_v53 = vmax.f32 %v2263_v10, %v5208_v44  ;;  %v5601_v29 = vpack.c.bf16 %v3433_v7, %v3433_v7 }
 0x184   : > { %v3334_v22 = vmax.f32 %v1856_v40, %v5107_v45  ;;  %v5501_v19 = vpack.c.bf16 %v3333_v46, %v3333_v46  ;;  %v3436_v27 = vmax.f32 %v2264_v55, %v5209_v18  ;;  %v5602_v1 = vpack.c.bf16 %v3434_v57, %v3434_v57 }
 0x185   : > { %v5600_v59 = vpack.c.bf16 %v3432_v0, %v3432_v0  ;;  %v4411_v56 = vunpack.c.l.b16 %v5599_v20  ;;  %v5603_v8 = vpack.c.bf16 %v3435_v53, %v3435_v53  ;;  %v4413_v54 = vunpack.c.l.b16 %v5601_v29 }
 0x186   : > { %v5502_v25 = vpack.c.bf16 %v3334_v22, %v3334_v22  ;;  %v4313_v32 = vunpack.c.l.b16 %v5501_v19  ;;  %v5604_v33 = vpack.c.bf16 %v3436_v27, %v3436_v27  ;;  %v4414_v13 = vunpack.c.l.b16 %v5602_v1 }
 0x187   : > { %v4412_v47 = vunpack.c.l.b16 %v5600_v59  ;;  %v4415_v34 = vunpack.c.l.b16 %v5603_v8  ;;  %v4706_v48 = vrot.slane %v4413_v54, 6  ;;  %v1872_v10 = vcombine.high %v1871_v5, %v1871_v5  ;;  %v6735_v59 = vpop.f32.mrb[66].mxu1 }
 0x188   : > { %v4314_v60 = vunpack.c.l.b16 %v5502_v25  ;;  %v4416_v40 = vunpack.c.l.b16 %v5604_v33  ;;  %v4708_v15 = vrot.slane %v4414_v13, 5  ;;  %v5108_v55 = vrot.slane %v1863_v11, 9  ;;  %v5900_v25 = vpop.f32.mrb[67].mxu1 }
 0x189   : > { %v4704_v38 = vrot.slane %v4412_v47, 7  ;;  %v4710_v0 = vrot.slane %v4415_v34, 4  ;;  %v5109_v44 = vrot.slane %v1864_v58, 9  ;;  %v5110_v53 = vrot.slane %v1871_v5, 9 }
 0x18a   : > { %v4536_v29 = vrot.slane %v4314_v60, 7  ;;  %v4712_v7 = vrot.slane %v4416_v40, 3  ;;  %v5111_v45 = vrot.slane %v1872_v10, 9  ;;  %v3335_v22 = vmax.f32 %v1863_v11, %v5108_v55 }
 0x18b   : > { %v4705_v27 = vsel %vm4482_vm4, %v4704_v38, %v4411_v56  ;;  %v3336_v19 = vmax.f32 %v1864_v58, %v5109_v44  ;;  %v3337_v46 = vmax.f32 %v1871_v5, %v5110_v53  ;;  %v7406_v54 = vcombine.high %v6703_v41, %v6703_v41 }
 0x18c   : > { %v4537_v18 = vsel %vm4482_vm4, %v4536_v29, %v4313_v32  ;;  %v4707_v57 = vsel %vm4485_vm5, %v4706_v48, %v4705_v27  ;;  %v3338_v20 = vmax.f32 %v1872_v10, %v5111_v45  ;;  %v5503_v1 = vpack.c.bf16 %v3335_v22, %v3335_v22 }
 0x18d   : > { %v1608_v8 = vmax.f32 %v6670_v63, %v7406_v54  ;;  %v4709_v11 = vsel %vm4488_vm6, %v4708_v15, %v4707_v57  ;;  %v5504_v33 = vpack.c.bf16 %v3336_v19, %v3336_v19  ;;  %v5505_v56 = vpack.c.bf16 %v3337_v46, %v3337_v46 }
 0x18e   : > { %v2271_v58 = vrot.slane %v6723_v24, %v6293_v23  ;;  %v4711_v41 = vsel %vm4491_vm7, %v4710_v0, %v4709_v11  ;;  %v5506_v5 = vpack.c.bf16 %v3338_v20, %v3338_v20  ;;  %v4315_v13 = vunpack.c.l.b16 %v5503_v1 }
 0x18f   : > { %v2279_v4 = vrot.slane %v1608_v8, %v6293_v23  ;;  %v4316_v47 = vunpack.c.l.b16 %v5504_v33  ;;  %v4317_v32 = vunpack.c.l.b16 %v5505_v56  ;;  %v4713_v46 = vsel %vm4494_vm8, %v4712_v7, %v4711_v41 }
 0x190   : > { %v2272_v34 = vcombine.high %v2271_v58, %v2271_v58  ;;  %v5210_v48 = vrot.slane %v2271_v58, 9  ;;  %v4318_v10 = vunpack.c.l.b16 %v5506_v5  ;;  %v4538_v60 = vrot.slane %v4315_v13, 6 }
 0x191   : > { %v2280_v40 = vcombine.high %v2279_v4, %v2279_v4  ;;  %v5212_v55 = vrot.slane %v2279_v4, 9  ;;  %v4540_v15 = vrot.slane %v4316_v47, 5  ;;  %v4542_v38 = vrot.slane %v4317_v32, 4 }
 0x192   : > { %v5211_v44 = vrot.slane %v2272_v34, 9  ;;  %v3437_v53 = vmax.f32 %v2271_v58, %v5210_v48  ;;  %v4539_v24 = vsel %vm4485_vm5, %v4538_v60, %v4537_v18  ;;  %v4544_v29 = vrot.slane %v4318_v10, 3 }
 0x193   : > { %v5213_v0 = vrot.slane %v2280_v40, 9  ;;  %v3439_v45 = vmax.f32 %v2279_v4, %v5212_v55  ;;  %v4541_v22 = vsel %vm4488_vm6, %v4540_v15, %v4539_v24  ;;  %v1361_v54 = vcombine.high %v6680_v52, %v6680_v52  ;;  %v6767_v55 = vpop.f32.mrb[68].mxu0 }
 0x194   : > { %v3438_v27 = vmax.f32 %v2272_v34, %v5211_v44  ;;  %v5605_v19 = vpack.c.bf16 %v3437_v53, %v3437_v53  ;;  %v4543_v8 = vsel %vm4491_vm7, %v4542_v38, %v4541_v22  ;;  %v1364_v20 = vcombine.high %v6711_v31, %v6711_v31  ;;  %v5803_v53 = vpop.f32.mrb[69].mxu0 }
 0x195   : > { %v3440_v57 = vmax.f32 %v2280_v40, %v5213_v0  ;;  %v7407_v25 = vcombine.high %v6631_v17, %v6631_v17  ;;  %v4545_v33 = vsel %vm4494_vm8, %v4544_v29, %v4543_v8  ;;  %v5607_v56 = vpack.c.bf16 %v3439_v45, %v3439_v45 }
 0x196   : > { %v5606_v1 = vpack.c.bf16 %v3438_v27, %v3438_v27  ;;  %v4417_v18 = vunpack.c.l.b16 %v5605_v19  ;;  %v1559_v58 = vmax.f32 %v6680_v52, %v1364_v20  ;;  %v1218_v41 = vmax.f32 %v6699_v42, 0.0 }
 0x197   : > { %v1558_v11 = vmax.f32 %v7407_v25, %v6711_v31  ;;  %v5608_v7 = vpack.c.bf16 %v3440_v57, %v3440_v57  ;;  %v839_v47 = vadd.f32 %v6646_v50, %v6531_v16  ;;  %v7408_v31 = vcombine.high %v6670_v63, %v6670_v63 }
 0x198   : > { %v4418_v5 = vunpack.c.l.b16 %v5606_v1  ;;  %v4714_v13 = vrot.slane %v4417_v18, 2  ;;  %v1887_v34 = vrot.slane %v1559_v58, %v6293_v23  ;;  %v1414_v17 = vcombine.high %v1218_v41, %v1218_v41 }
 0x199   : > { %v1879_v4 = vrot.slane %v1558_v11, %v6293_v23  ;;  %v4420_v32 = vunpack.c.l.b16 %v5608_v7  ;;  %v1609_v48 = vmax.f32 %v7408_v31, %v1218_v41  ;;  %v4419_v45 = vunpack.c.l.b16 %v5607_v56 }
 0x19a   : > { %v4715_v10 = vsel %vm4497_vm9, %v4714_v13, %v4713_v46  ;;  %v4716_v60 = vrot.slane %v4418_v5, 1  ;;  %v1888_v38 = vcombine.high %v1887_v34, %v1887_v34  ;;  %v5114_v44 = vrot.slane %v1887_v34, 9  ;;  %v6772_v46 = vpop.f32.mrb[70].mxu0 }
 0x19b   : > { %v1880_v40 = vcombine.high %v1879_v4, %v1879_v4  ;;  %v5112_v42 = vrot.slane %v1879_v4, 9  ;;  %v4718_v15 = vrot.slane %v4420_v32, 7  ;;  %v1610_v16 = vmax.f32 %v6682_v43, %v1414_v17  ;;  %v5804_v43 = vpop.f32.mrb[71].mxu0 }
 0x19c   : > { %v4717_v24 = vsel %vm4500_vm10, %v4716_v60, %v4715_v10  ;;  %v2287_v63 = vrot.slane %v1609_v48, %v6293_v23  ;;  %v5115_v27 = vrot.slane %v1888_v38, 9  ;;  %v3341_v19 = vmax.f32 %v1887_v34, %v5114_v44 }
 0x19d   : > { %v5113_v29 = vrot.slane %v1880_v40, 9  ;;  %v3339_v0 = vmax.f32 %v1879_v4, %v5112_v42  ;;  %v4842_v22 = vpack.c.b16 %v4717_v24, %v4717_v24  ;;  %v2295_v1 = vrot.slane %v1610_v16, %v6293_v23 }
 0x19e   : > { %v2288_v20 = vcombine.high %v2287_v63, %v2287_v63  ;;  %v4719_v18 = vsel %vm4482_vm4, %v4718_v15, %v4419_v45  ;;  %v3342_v25 = vmax.f32 %v1888_v38, %v5115_v27  ;;  %v5214_v11 = vrot.slane %v2287_v63, 9 }
 0x19f   : > { %v3340_v8 = vmax.f32 %v1880_v40, %v5113_v29  ;;  %v5507_v57 = vpack.c.bf16 %v3339_v0, %v3339_v0  ;;  %4898 = vst [vmem:[%s6416_s7 + $0x48] sm:$0xf] %v4842_v22  ;;  %v1169_v7 = vmax.f32 %v839_v47, 0.0  ;;  %v2296_v56 = vcombine.high %v2295_v1, %v2295_v1 }
 0x1a0   : > { %v5215_v5 = vrot.slane %v2288_v20, 9  ;;  %v5509_v13 = vpack.c.bf16 %v3341_v19, %v3341_v19  ;;  %v5510_v4 = vpack.c.bf16 %v3342_v25, %v3342_v25  ;;  %v5216_v32 = vrot.slane %v2295_v1, 9 }
 0x1a1   : > { %v5508_v58 = vpack.c.bf16 %v3340_v8, %v3340_v8  ;;  %v4319_v41 = vunpack.c.l.b16 %v5507_v57  ;;  %v3441_v34 = vmax.f32 %v2287_v63, %v5214_v11  ;;  %v5217_v48 = vrot.slane %v2296_v56, 9 }
 0x1a2   : > { %v3442_v10 = vmax.f32 %v2288_v20, %v5215_v5  ;;  %v4322_v60 = vunpack.c.l.b16 %v5510_v4  ;;  %v3443_v40 = vmax.f32 %v2295_v1, %v5216_v32  ;;  %v1365_v15 = vcombine.high %v1169_v7, %v1169_v7  ;;  %v6783_v20 = vpop.f32.mrb[68].mxu1 }
 0x1a3   : > { %v4320_v17 = vunpack.c.l.b16 %v5508_v58  ;;  %v4546_v31 = vrot.slane %v4319_v41, 2  ;;  %v5609_v42 = vpack.c.bf16 %v3441_v34, %v3441_v34  ;;  %v3444_v47 = vmax.f32 %v2296_v56, %v5217_v48  ;;  %v5903_v11 = vpop.f32.mrb[69].mxu1  ;;  %v6799_v48 = vpop.f32.mrb[72].mxu0 }
 0x1a4   : > { %v5610_v16 = vpack.c.bf16 %v3442_v10, %v3442_v10  ;;  %v4321_v53 = vunpack.c.l.b16 %v5509_v13  ;;  %v5611_v24 = vpack.c.bf16 %v3443_v40, %v3443_v40  ;;  %v1560_v0 = vmax.f32 %v1361_v54, %v1169_v7  ;;  %v6793_v41 = vpop.f32.mrb[70].mxu1 }
 0x1a5   : > { %v4547_v38 = vsel %vm4497_vm9, %v4546_v31, %v4545_v33  ;;  %v4548_v44 = vrot.slane %v4320_v17, 1  ;;  %v4421_v29 = vunpack.c.l.b16 %v5609_v42  ;;  %v5612_v45 = vpack.c.bf16 %v3444_v47, %v3444_v47  ;;  %v5904_v32 = vpop.f32.mrb[71].mxu1  ;;  %v5807_v42 = vpop.f32.mrb[73].mxu0 }
 0x1a6   : > { %v4422_v22 = vunpack.c.l.b16 %v5610_v16  ;;  %v1561_v27 = vmax.f32 %v6688_v49, %v1365_v15  ;;  %v4550_v19 = vrot.slane %v4322_v60, 7  ;;  %v4423_v33 = vunpack.c.l.b16 %v5611_v24  ;;  %v6805_v24 = vpop.f32.mrb[74].mxu0 }
 0x1a7   : > { %v4549_v63 = vsel %vm4500_vm10, %v4548_v44, %v4547_v38  ;;  %v4720_v57 = vrot.slane %v4421_v29, 6  ;;  %v4424_v1 = vunpack.c.l.b16 %v5612_v45  ;;  %v1895_v25 = vrot.slane %v1560_v0, %v6293_v23 }
 0x1a8   : > { %v4828_v8 = vpack.c.b16 %v4549_v63, %v4549_v63  ;;  %v4722_v43 = vrot.slane %v4422_v22, 5  ;;  %v1903_v52 = vrot.slane %v1561_v27, %v6293_v23  ;;  %v4724_v7 = vrot.slane %v4423_v33, 4  ;;  %v5808_v22 = vpop.f32.mrb[75].mxu0 }
 0x1a9   : > { %v4721_v54 = vsel %vm4485_vm5, %v4720_v57, %v4719_v18  ;;  %v842_v49 = vadd.f32 %v6646_v50, %v6535_v28  ;;  %v1039_v58 = vadd.f32 %v6646_v50, %v6533_v37  ;;  %v4726_v5 = vrot.slane %v4424_v1, 3  ;;  %v6801_v28 = vpop.f32.mrb[72].mxu1  ;;  %v6839_v42 = vpop.f32.mrb[76].mxu0 }
 0x1aa   : > { %4884 = vst [vmem:[%s6416_s7 + $0x10] sm:$0xf] %v4828_v8  ;;  %v4723_v56 = vsel %vm4488_vm6, %v4722_v43, %v4721_v54  ;;  %v1896_v13 = vcombine.high %v1895_v25, %v1895_v25  ;;  %v1904_v4 = vcombine.high %v1903_v52, %v1903_v52  ;;  %v5116_v17 = vrot.slane %v1895_v25, 9  ;;  %v5907_v15 = vpop.f32.mrb[73].mxu1 }
 0x1ab   : > { %v4725_v34 = vsel %vm4491_vm7, %v4724_v7, %v4723_v56  ;;  %v5118_v31 = vrot.slane %v1903_v52, 9  ;;  %v6797_v18 = vmax.f32 %v842_v49, 0.0  ;;  %v4551_v37 = vsel %vm4482_vm4, %v4550_v19, %v4321_v53  ;;  %v6811_v45 = vpop.f32.mrb[74].mxu1 }
 0x1ac   : > { %v4727_v10 = vsel %vm4494_vm8, %v4726_v5, %v4725_v34  ;;  %v5117_v60 = vrot.slane %v1896_v13, 9  ;;  %v5119_v40 = vrot.slane %v1904_v4, 9  ;;  %v3343_v44 = vmax.f32 %v1895_v25, %v5116_v17  ;;  %v5908_v57 = vpop.f32.mrb[75].mxu1 }
 0x1ad   : > { %v4843_v38 = vpack.c.b16 %v4727_v10, %v4727_v10  ;;  %v3345_v47 = vmax.f32 %v1903_v52, %v5118_v31  ;;  %v1219_v16 = vmax.f32 %v1039_v58, 0.0  ;;  %v1366_v63 = vcombine.high %v6797_v18, %v6797_v18  ;;  %v6841_v15 = vpop.f32.mrb[76].mxu1 }
 0x1ae   : > { %v3344_v29 = vmax.f32 %v1896_v13, %v5117_v60  ;;  %v3346_v0 = vmax.f32 %v1904_v4, %v5119_v40  ;;  %v1042_v53 = vadd.f32 %v6646_v50, %v6537_v6  ;;  %v5511_v27 = vpack.c.bf16 %v3343_v44, %v3343_v44 }
 0x1af   : > { %4899 = vst [vmem:[%s6416_s7 + $0x4c] sm:$0x7] %v4843_v38  ;;  %v5513_v19 = vpack.c.bf16 %v3345_v47, %v3345_v47  ;;  %v847_v8 = vadd.f32 %v6646_v50, %v6543_v62  ;;  %v1047_v33 = vadd.f32 %v6646_v50, %v6545_v9  ;;  %v850_v52 = vadd.f32 %v6646_v50, %v6551_v26  ;;  %v5811_v47 = vpop.f32.mrb[77].mxu0 }
 0x1b0   : > { %v5512_v1 = vpack.c.bf16 %v3344_v29, %v3344_v29  ;;  %v5514_v43 = vpack.c.bf16 %v3346_v0, %v3346_v0  ;;  %v1220_v25 = vmax.f32 %v1042_v53, 0.0  ;;  %v4323_v6 = vunpack.c.l.b16 %v5511_v27  ;;  %v5911_v29 = vpop.f32.mrb[77].mxu1  ;;  %v6853_v22 = vpop.f32.mrb[78].mxu0 }
 0x1b1   : > { %v4325_v11 = vunpack.c.l.b16 %v5513_v19  ;;  %v6820_v54 = vmax.f32 %v847_v8, 0.0  ;;  %v6822_v7 = vmax.f32 %v1047_v33, 0.0  ;;  %v1415_v56 = vcombine.high %v1219_v16, %v1219_v16 }
 0x1b2   : > { %v4324_v49 = vunpack.c.l.b16 %v5512_v1  ;;  %v4326_v58 = vunpack.c.l.b16 %v5514_v43  ;;  %v1416_v62 = vcombine.high %v1220_v25, %v1220_v25  ;;  %v4552_v5 = vrot.slane %v4323_v6, 6 }
 0x1b3   : > { %v4556_v13 = vrot.slane %v4325_v11, 4  ;;  %v6826_v4 = vmax.f32 %v850_v52, 0.0  ;;  %v1050_v17 = vadd.f32 %v6646_v50, %v6553_v3  ;;  %v855_v10 = vadd.f32 %v6646_v50, %v6571_v61  ;;  %v7409_v3 = vld [vmem:[#allocation8_spill] sm:$0xff] }
 0x1b4   : > { %v4554_v32 = vrot.slane %v4324_v49, 5  ;;  %v4558_v34 = vrot.slane %v4326_v58, 3  ;;  %v4553_v31 = vsel %vm4485_vm5, %v4552_v5, %v4551_v37  ;;  %v1055_v60 = vadd.f32 %v6646_v50, %v6573_v39 }
 0x1b5   : > { %v858_v40 = vadd.f32 %v6646_v50, %v6577_v12  ;;  %v6844_v44 = vmax.f32 %v1050_v17, 0.0  ;;  %v1058_v37 = vadd.f32 %v6646_v50, %v7409_v3  ;;  %v863_v61 = vadd.f32 %v6646_v50, %v6585_v51  ;;  %v5812_v51 = vpop.f32.mrb[79].mxu0  ;;  %v6867_v17 = vpop.f32.mrb[78].mxu1 }
 0x1b6   : > { %v4555_v38 = vsel %vm4488_vm6, %v4554_v32, %v4553_v31  ;;  %v6851_v0 = vmax.f32 %v855_v10, 0.0  ;;  %v1223_v12 = vmax.f32 %v1055_v60, 0.0  ;;  %7410 = vst [vmem:[#allocation8_spill] sm:$0xff] %v6867_v17 }
 0x1b7   : > { %v4557_v39 = vsel %vm4491_vm7, %v4556_v13, %v4555_v38  ;;  %v1174_v53 = vmax.f32 %v858_v40, 0.0  ;;  %v1418_v19 = vcombine.high %v6844_v44, %v6844_v44  ;;  %v1224_v8 = vmax.f32 %v1058_v37, 0.0 }
 0x1b8   : > { %v4559_v27 = vsel %vm4494_vm8, %v4558_v34, %v4557_v39  ;;  %v6858_v33 = vmax.f32 %v863_v61, 0.0  ;;  %v1369_v1 = vcombine.high %v6851_v0, %v6851_v0  ;;  %v1419_v43 = vcombine.high %v1223_v12, %v1223_v12 }
 0x1b9   : > { %v4829_v57 = vpack.c.b16 %v4559_v27, %v4559_v27  ;;  %v1612_v52 = vmax.f32 %v1415_v56, %v1223_v12  ;;  %v1611_v6 = vmax.f32 %v1219_v16, %v1418_v19  ;;  %v1370_v11 = vcombine.high %v1174_v53, %v1174_v53 }
 0x1ba   : > { %v1563_v49 = vmax.f32 %v1366_v63, %v1174_v53  ;;  %v1420_v58 = vcombine.high %v1224_v8, %v1224_v8  ;;  %v1562_v5 = vmax.f32 %v6797_v18, %v1369_v1  ;;  %v1613_v13 = vmax.f32 %v1220_v25, %v1419_v43  ;;  %v5912_v63 = vpop.f32.mrb[79].mxu1 }
 0x1bb   : > { %4885 = vst [vmem:[%s6416_s7 + $0x14] sm:$0x7] %v4829_v57  ;;  %v2311_v32 = vrot.slane %v1612_v52, %v6293_v23  ;;  %v6865_v34 = vmax.f32 %v1416_v62, %v1224_v8  ;;  %v2303_v31 = vrot.slane %v1611_v6, %v6293_v23  ;;  %v1564_v10 = vmax.f32 %v6820_v54, %v1370_v11 }
 0x1bc   : > { %v1919_v56 = vrot.slane %v1563_v49, %v6293_v23  ;;  %v6873_v16 = vmax.f32 %v6822_v7, %v1420_v58  ;;  %v1911_v60 = vrot.slane %v1562_v5, %v6293_v23  ;;  %v2319_v25 = vrot.slane %v1613_v13, %v6293_v23 }
 0x1bd   : > { %v2312_v18 = vcombine.high %v2311_v32, %v2311_v32  ;;  %v5220_v40 = vrot.slane %v2311_v32, 9  ;;  %v2304_v62 = vcombine.high %v2303_v31, %v2303_v31  ;;  %v5218_v38 = vrot.slane %v2303_v31, 9 }
 0x1be   : > { %v1920_v3 = vcombine.high %v1919_v56, %v1919_v56  ;;  %v1927_v37 = vrot.slane %v1564_v10, %v6293_v23  ;;  %v1912_v61 = vcombine.high %v1911_v60, %v1911_v60  ;;  %v5120_v47 = vrot.slane %v1911_v60, 9 }
 0x1bf   : > { %v2320_v29 = vcombine.high %v2319_v25, %v2319_v25  ;;  %v5221_v39 = vrot.slane %v2312_v18, 9  ;;  %v5219_v12 = vrot.slane %v2304_v62, 9  ;;  %v3445_v53 = vmax.f32 %v2303_v31, %v5218_v38 }
 0x1c0   : > { %v5222_v27 = vrot.slane %v2319_v25, 9  ;;  %v3447_v19 = vmax.f32 %v2311_v32, %v5220_v40  ;;  %v5121_v8 = vrot.slane %v1912_v61, 9  ;;  %v3347_v51 = vmax.f32 %v1911_v60, %v5120_v47 }
 0x1c1   : > { %v5223_v57 = vrot.slane %v2320_v29, 9  ;;  %v3448_v1 = vmax.f32 %v2312_v18, %v5221_v39  ;;  %v3446_v43 = vmax.f32 %v2304_v62, %v5219_v12  ;;  %v5613_v52 = vpack.c.bf16 %v3445_v53, %v3445_v53 }
 0x1c2   : > { %v3449_v6 = vmax.f32 %v2319_v25, %v5222_v27  ;;  %v5615_v11 = vpack.c.bf16 %v3447_v19, %v3447_v19  ;;  %v3348_v49 = vmax.f32 %v1912_v61, %v5121_v8  ;;  %v5515_v58 = vpack.c.bf16 %v3347_v51, %v3347_v51  ;;  %v6878_v61 = vpop.f32.mrb[80].mxu0 }
 0x1c3   : > { %v3450_v5 = vmax.f32 %v2320_v29, %v5223_v57  ;;  %v5616_v13 = vpack.c.bf16 %v3448_v1, %v3448_v1  ;;  %v5614_v10 = vpack.c.bf16 %v3446_v43, %v3446_v43  ;;  %v4425_v63 = vunpack.c.l.b16 %v5613_v52  ;;  %v5815_v8 = vpop.f32.mrb[81].mxu0 }
 0x1c4   : > { %v5617_v26 = vpack.c.bf16 %v3449_v6, %v3449_v6  ;;  %v4427_v9 = vunpack.c.l.b16 %v5615_v11  ;;  %v5516_v17 = vpack.c.bf16 %v3348_v49, %v3348_v49  ;;  %v4327_v31 = vunpack.c.l.b16 %v5515_v58 }
 0x1c5   : > { %v5618_v38 = vpack.c.bf16 %v3450_v5, %v3450_v5  ;;  %v4428_v32 = vunpack.c.l.b16 %v5616_v13  ;;  %v4426_v40 = vunpack.c.l.b16 %v5614_v10  ;;  %v1928_v18 = vcombine.high %v1927_v37, %v1927_v37 }
 0x1c6   : > { %v4429_v60 = vunpack.c.l.b16 %v5617_v26  ;;  %v4730_v47 = vrot.slane %v4427_v9, 6  ;;  %v4328_v62 = vunpack.c.l.b16 %v5516_v17  ;;  %v5122_v12 = vrot.slane %v1919_v56, 9 }
 0x1c7   : > { %v4430_v39 = vunpack.c.l.b16 %v5618_v38  ;;  %v4732_v25 = vrot.slane %v4428_v32, 5  ;;  %v4728_v29 = vrot.slane %v4426_v40, 7  ;;  %v5123_v27 = vrot.slane %v1920_v3, 9  ;;  %v6886_v32 = vpop.f32.mrb[80].mxu1 }
 0x1c8   : > { %v4734_v53 = vrot.slane %v4429_v60, 4  ;;  %v5124_v19 = vrot.slane %v1927_v37, 9  ;;  %v4560_v51 = vrot.slane %v4328_v62, 7  ;;  %v5125_v1 = vrot.slane %v1928_v18, 9 }
 0x1c9   : > { %v4736_v57 = vrot.slane %v4430_v39, 3  ;;  %v3349_v43 = vmax.f32 %v1919_v56, %v5122_v12  ;;  %v4729_v52 = vsel %vm4482_vm4, %v4728_v29, %v4425_v63  ;;  %v3350_v26 = vmax.f32 %v1920_v3, %v5123_v27  ;;  %v5915_v63 = vpop.f32.mrb[81].mxu1 }
 0x1ca   : > { %v3351_v9 = vmax.f32 %v1927_v37, %v5124_v19  ;;  %v2327_v17 = vrot.slane %v6865_v34, %v6293_v23  ;;  %v4561_v6 = vsel %vm4482_vm4, %v4560_v51, %v4327_v31  ;;  %v4731_v11 = vsel %vm4485_vm5, %v4730_v47, %v4729_v52 }
 0x1cb   : > { %v3352_v49 = vmax.f32 %v1928_v18, %v5125_v1  ;;  %v5517_v58 = vpack.c.bf16 %v3349_v43, %v3349_v43  ;;  %v4733_v5 = vsel %vm4488_vm6, %v4732_v25, %v4731_v11  ;;  %v5518_v13 = vpack.c.bf16 %v3350_v26, %v3350_v26 }
 0x1cc   : > { %v5519_v10 = vpack.c.bf16 %v3351_v9, %v3351_v9  ;;  %v2328_v38 = vcombine.high %v2327_v17, %v2327_v17  ;;  %v4735_v56 = vsel %vm4491_vm7, %v4734_v53, %v4733_v5  ;;  %v2335_v34 = vrot.slane %v6873_v16, %v6293_v23  ;;  %v6894_v9 = vpop.f32.mrb[82].mxu0 }
 0x1cd   : > { %v5520_v3 = vpack.c.bf16 %v3352_v49, %v3352_v49  ;;  %v4329_v37 = vunpack.c.l.b16 %v5517_v58  ;;  %v4330_v31 = vunpack.c.l.b16 %v5518_v13  ;;  %v5224_v60 = vrot.slane %v2327_v17, 9  ;;  %v5816_v5 = vpop.f32.mrb[83].mxu0 }
 0x1ce   : > { %v4331_v40 = vunpack.c.l.b16 %v5519_v10  ;;  %v5225_v47 = vrot.slane %v2328_v38, 9  ;;  %v2336_v39 = vcombine.high %v2335_v34, %v2335_v34  ;;  %v5226_v25 = vrot.slane %v2335_v34, 9 }
 0x1cf   : > { %v4332_v18 = vunpack.c.l.b16 %v5520_v3  ;;  %v4562_v62 = vrot.slane %v4329_v37, 6  ;;  %v4564_v12 = vrot.slane %v4330_v31, 5  ;;  %v3451_v27 = vmax.f32 %v2327_v17, %v5224_v60 }
 0x1d0   : > { %v4566_v29 = vrot.slane %v4331_v40, 4  ;;  %v3452_v19 = vmax.f32 %v2328_v38, %v5225_v47  ;;  %v5227_v51 = vrot.slane %v2336_v39, 9  ;;  %v3453_v1 = vmax.f32 %v2335_v34, %v5226_v25 }
 0x1d1   : > { %v4563_v53 = vsel %vm4485_vm5, %v4562_v62, %v4561_v6  ;;  %v4568_v8 = vrot.slane %v4332_v18, 3  ;;  %v5619_v43 = vpack.c.bf16 %v3451_v27, %v3451_v27  ;;  %v4737_v26 = vsel %vm4494_vm8, %v4736_v57, %v4735_v56 }
 0x1d2   : > { %v4565_v16 = vsel %vm4488_vm6, %v4564_v12, %v4563_v53  ;;  %v5620_v52 = vpack.c.bf16 %v3452_v19, %v3452_v19  ;;  %v3454_v49 = vmax.f32 %v2336_v39, %v5227_v51  ;;  %v5621_v58 = vpack.c.bf16 %v3453_v1, %v3453_v1 }
 0x1d3   : > { %v4567_v11 = vsel %vm4491_vm7, %v4566_v29, %v4565_v16  ;;  %v1371_v17 = vcombine.high %v6858_v33, %v6858_v33  ;;  %v4431_v6 = vunpack.c.l.b16 %v5619_v43  ;;  %v7411_v10 = vcombine.high %v6820_v54, %v6820_v54 }
 0x1d4   : > { %v4432_v13 = vunpack.c.l.b16 %v5620_v52  ;;  %v4569_v3 = vsel %vm4494_vm8, %v4568_v8, %v4567_v11  ;;  %v1368_v57 = vcombine.high %v6826_v4, %v6826_v4  ;;  %v5622_v56 = vpack.c.bf16 %v3454_v49, %v3454_v49 }
 0x1d5   : > { %v1565_v38 = vmax.f32 %v7411_v10, %v6858_v33  ;;  %v1566_v37 = vmax.f32 %v6826_v4, %v1371_v17  ;;  %v1063_v34 = vadd.f32 %v6646_v50, %v6587_v30  ;;  %v4433_v63 = vunpack.c.l.b16 %v5621_v58 }
 0x1d6   : > { %v4738_v31 = vrot.slane %v4431_v6, 2  ;;  %v866_v60 = vadd.f32 %v6646_v50, %v6591_v21  ;;  %v4434_v54 = vunpack.c.l.b16 %v5622_v56  ;;  %v4740_v33 = vrot.slane %v4432_v13, 1 }
 0x1d7   : > { %v1935_v40 = vrot.slane %v1565_v38, %v6293_v23  ;;  %v1943_v47 = vrot.slane %v1566_v37, %v6293_v23  ;;  %v1225_v18 = vmax.f32 %v1063_v34, 0.0  ;;  %v7412_v16 = vcombine.high %v6822_v7, %v6822_v7 }
 0x1d8   : > { %v4739_v62 = vsel %vm4497_vm9, %v4738_v31, %v4737_v26  ;;  %v1176_v25 = vmax.f32 %v866_v60, 0.0  ;;  %v4742_v12 = vrot.slane %v4434_v54, 7  ;;  %v6920_v52 = vadd.f32 %v6646_v50, %v6611_v14 }
 0x1d9   : > { %v1936_v39 = vcombine.high %v1935_v40, %v1935_v40  ;;  %v5126_v4 = vrot.slane %v1935_v40, 9  ;;  %v4741_v30 = vsel %vm4500_vm10, %v4740_v33, %v4739_v62  ;;  %v1944_v29 = vcombine.high %v1943_v47, %v1943_v47 }
 0x1da   : > { %v5128_v27 = vrot.slane %v1943_v47, 9  ;;  %v4844_v19 = vpack.c.b16 %v4741_v30, %v4741_v30  ;;  %v1421_v21 = vcombine.high %v1225_v18, %v1225_v18  ;;  %v1616_v43 = vmax.f32 %v7412_v16, %v1225_v18 }
 0x1db   : > { %v5127_v53 = vrot.slane %v1936_v39, 9  ;;  %v3353_v8 = vmax.f32 %v1935_v40, %v5126_v4  ;;  %v5129_v51 = vrot.slane %v1944_v29, 9  ;;  %v1372_v58 = vcombine.high %v1176_v25, %v1176_v25 }
 0x1dc   : > { %v3355_v1 = vmax.f32 %v1943_v47, %v5128_v27  ;;  %4900 = vst [vmem:[%s6416_s7 + $0x50] sm:$0xf] %v4844_v19  ;;  %v1617_v49 = vmax.f32 %v6844_v44, %v1421_v21  ;;  %v4743_v17 = vsel %vm4482_vm4, %v4742_v12, %v4433_v63  ;;  %v2343_v6 = vrot.slane %v1616_v43, %v6293_v23 }
 0x1dd   : > { %v3354_v26 = vmax.f32 %v1936_v39, %v5127_v53  ;;  %v5521_v11 = vpack.c.bf16 %v3353_v8, %v3353_v8  ;;  %v3356_v5 = vmax.f32 %v1944_v29, %v5129_v51  ;;  %v1567_v13 = vmax.f32 %v1368_v57, %v1176_v25  ;;  %v6929_v57 = vpop.f32.mrb[84].mxu0  ;;  %v6932_v25 = vpop.f32.mrb[82].mxu1 }
 0x1de   : > { %v2351_v7 = vrot.slane %v1617_v49, %v6293_v23  ;;  %v1568_v56 = vmax.f32 %v6851_v0, %v1372_v58  ;;  %v5523_v14 = vpack.c.bf16 %v3355_v1, %v3355_v1  ;;  %v2344_v37 = vcombine.high %v2343_v6, %v2343_v6  ;;  %v5819_v4 = vpop.f32.mrb[85].mxu0  ;;  %v5916_v53 = vpop.f32.mrb[83].mxu1 }
 0x1df   : > { %v5522_v10 = vpack.c.bf16 %v3354_v26, %v3354_v26  ;;  %v4333_v38 = vunpack.c.l.b16 %v5521_v11  ;;  %v5524_v50 = vpack.c.bf16 %v3356_v5, %v3356_v5  ;;  %v5228_v34 = vrot.slane %v2343_v6, 9  ;;  %v6934_v19 = vpop.f32.mrb[86].mxu0 }
 0x1e0   : > { %v2352_v44 = vcombine.high %v2351_v7, %v2351_v7  ;;  %v5230_v60 = vrot.slane %v2351_v7, 9  ;;  %v5229_v63 = vrot.slane %v2344_v37, 9  ;;  %v1951_v47 = vrot.slane %v1567_v13, %v6293_v23  ;;  %v5820_v1 = vpop.f32.mrb[87].mxu0 }
 0x1e1   : > { %v4334_v31 = vunpack.c.l.b16 %v5522_v10  ;;  %v4570_v40 = vrot.slane %v4333_v38, 2  ;;  %v4336_v54 = vunpack.c.l.b16 %v5524_v50  ;;  %v3455_v33 = vmax.f32 %v2343_v6, %v5228_v34 }
 0x1e2   : > { %v5231_v39 = vrot.slane %v2352_v44, 9  ;;  %v3457_v0 = vmax.f32 %v2351_v7, %v5230_v60  ;;  %v4335_v30 = vunpack.c.l.b16 %v5523_v14  ;;  %v3456_v12 = vmax.f32 %v2344_v37, %v5229_v63  ;;  %v6940_v60 = vpop.f32.mrb[84].mxu1 }
 0x1e3   : > { %v4571_v18 = vsel %vm4497_vm9, %v4570_v40, %v4569_v3  ;;  %v4572_v62 = vrot.slane %v4334_v31, 1  ;;  %v5623_v29 = vpack.c.bf16 %v3455_v33, %v3455_v33  ;;  %v1952_v27 = vcombine.high %v1951_v47, %v1951_v47 }
 0x1e4   : > { %v3458_v21 = vmax.f32 %v2352_v44, %v5231_v39  ;;  %v5625_v51 = vpack.c.bf16 %v3457_v0, %v3457_v0  ;;  %v1959_v3 = vrot.slane %v1568_v56, %v6293_v23  ;;  %v4574_v16 = vrot.slane %v4336_v54, 7 }
 0x1e5   : > { %v4573_v8 = vsel %vm4500_vm10, %v4572_v62, %v4571_v18  ;;  %v5624_v26 = vpack.c.bf16 %v3456_v12, %v3456_v12  ;;  %v4435_v11 = vunpack.c.l.b16 %v5623_v29  ;;  %v5130_v6 = vrot.slane %v1951_v47, 9  ;;  %v5919_v62 = vpop.f32.mrb[85].mxu1 }
 0x1e6   : > { %v4830_v43 = vpack.c.b16 %v4573_v8, %v4573_v8  ;;  %v5626_v49 = vpack.c.bf16 %v3458_v21, %v3458_v21  ;;  %v4437_v58 = vunpack.c.l.b16 %v5625_v51  ;;  %v1960_v5 = vcombine.high %v1959_v3, %v1959_v3  ;;  %v6953_v12 = vpop.f32.mrb[86].mxu1  ;;  %v7420_v62 = vld [vmem:[#allocation12_spill] sm:$0xff] }
 0x1e7   : > { %v4436_v13 = vunpack.c.l.b16 %v5624_v26  ;;  %v4744_v10 = vrot.slane %v4435_v11, 6  ;;  %v5131_v38 = vrot.slane %v1952_v27, 9  ;;  %v5132_v7 = vrot.slane %v1959_v3, 9  ;;  %v5920_v8 = vpop.f32.mrb[87].mxu1 }
 0x1e8   : > { %4886 = vst [vmem:[%s6416_s7 + $0x18] sm:$0xf] %v4830_v43  ;;  %v4438_v14 = vunpack.c.l.b16 %v5626_v49  ;;  %v4748_v50 = vrot.slane %v4437_v58, 4  ;;  %v5133_v37 = vrot.slane %v1960_v5, 9  ;;  %v3357_v34 = vmax.f32 %v1951_v47, %v5130_v6  ;;  %v6958_v43 = vpop.f32.mrb[88].mxu0  ;;  %v6960_v26 = vpop.f32.mrb[88].mxu1 }
 0x1e9   : > { %v4745_v56 = vsel %vm4485_vm5, %v4744_v10, %v4743_v17  ;;  %v4746_v31 = vrot.slane %v4436_v13, 5  ;;  %v3358_v40 = vmax.f32 %v1952_v27, %v5131_v38  ;;  %v3359_v44 = vmax.f32 %v1959_v3, %v5132_v7  ;;  %v6949_v17 = vld [vmem:[%s7376_s2] ss:$0 sm:$0xff]  ;;  %7413 = vst [vmem:[#allocation17_spill] sm:$0xff] %v6958_v43  ;;  %7414 = vst [vmem:[#allocation18_spill] sm:$0xff] %v6960_v26  ;;  %v5923_v58 = vpop.f32.mrb[89].mxu1 }
 0x1ea   : > { %v4750_v54 = vrot.slane %v4438_v14, 3  ;;  %v3360_v63 = vmax.f32 %v1960_v5, %v5133_v37  ;;  %v5525_v33 = vpack.c.bf16 %v3357_v34, %v3357_v34  ;;  %v6943_v18 = vmax.f32 %v6920_v52, 0.0  ;;  %v7415_v10 = vld [vmem:[#allocation9_spill] sm:$0xff]  ;;  %v6970_v14 = vpop.f32.mrb[90].mxu1  ;;  %v7423_v58 = vld [vmem:[#allocation15_spill] sm:$0xff] }
 0x1eb   : > { %v4747_v39 = vsel %vm4488_vm6, %v4746_v31, %v4745_v56  ;;  %v5526_v0 = vpack.c.bf16 %v3358_v40, %v3358_v40  ;;  %v5527_v4 = vpack.c.bf16 %v3359_v44, %v3359_v44  ;;  %v1066_v47 = vadd.f32 %v6949_v17, %v6628_v35  ;;  %7417 = vst [vmem:[#allocation19_spill] sm:$0xff] %v6970_v14  ;;  %v5924_v40 = vpop.f32.mrb[91].mxu1 }
 0x1ec   : > { %v4575_v29 = vsel %vm4482_vm4, %v4574_v16, %v4335_v30  ;;  %v4749_v52 = vsel %vm4491_vm7, %v4748_v50, %v4747_v39  ;;  %v5528_v27 = vpack.c.bf16 %v3360_v63, %v3360_v63  ;;  %v4337_v53 = vunpack.c.l.b16 %v5525_v33  ;;  %v5823_v16 = vpop.f32.mrb[89].mxu0  ;;  %v7419_v63 = vld [vmem:[#allocation11_spill] sm:$0xff] }
 0x1ed   : > { %v4751_v21 = vsel %vm4494_vm8, %v4750_v54, %v4749_v52  ;;  %v4338_v51 = vunpack.c.l.b16 %v5526_v0  ;;  %v4339_v3 = vunpack.c.l.b16 %v5527_v4  ;;  %v1226_v1 = vmax.f32 %v1066_v47, 0.0  ;;  %v6968_v7 = vpop.f32.mrb[90].mxu0 }
 0x1ee   : > { %v4845_v35 = vpack.c.b16 %v4751_v21, %v4751_v21  ;;  %v4340_v11 = vunpack.c.l.b16 %v5528_v27  ;;  %v4576_v49 = vrot.slane %v4337_v53, 6  ;;  %v874_v30 = vadd.f32 %v6949_v17, %v6633_v2  ;;  %7416 = vst [vmem:[#allocation9_spill] sm:$0xff] %v6968_v7  ;;  %v7418_v2 = vld [vmem:[#allocation10_spill] sm:$0xff]  ;;  %v5824_v31 = vpop.f32.mrb[91].mxu0 }
 0x1ef   : > { %v4578_v5 = vrot.slane %v4338_v51, 5  ;;  %v4580_v6 = vrot.slane %v4339_v3, 4  ;;  %v1373_v13 = vcombine.high %v6943_v18, %v6943_v18  ;;  %v1071_v38 = vadd.f32 %v6949_v17, %v7415_v10 }
 0x1f0   : > { %4901 = vst [vmem:[%s6416_s7 + $0x54] sm:$0x7] %v4845_v35  ;;  %v4577_v50 = vsel %vm4485_vm5, %v4576_v49, %v4575_v29  ;;  %v4582_v37 = vrot.slane %v4340_v11, 3  ;;  %v6974_v34 = vmax.f32 %v874_v30, 0.0  ;;  %v1074_v56 = vadd.f32 %v6949_v17, %v7418_v2  ;;  %v7421_v29 = vld [vmem:[#allocation13_spill] sm:$0xff]  ;;  %v7422_v11 = vld [vmem:[#allocation14_spill] sm:$0xff] }
 0x1f1   : > { %v4579_v44 = vsel %vm4488_vm6, %v4578_v5, %v4577_v50  ;;  %v1227_v54 = vmax.f32 %v1071_v38, 0.0  ;;  %v879_v33 = vadd.f32 %v6949_v17, %v7419_v63  ;;  %v1079_v39 = vadd.f32 %v6949_v17, %v7420_v62  ;;  %v7007_v38 = vpop.f32.mrb[92].mxu0 }
 0x1f2   : > { %v4581_v0 = vsel %vm4491_vm7, %v4580_v6, %v4579_v44  ;;  %v1422_v4 = vcombine.high %v1226_v1, %v1226_v1  ;;  %v6984_v47 = vmax.f32 %v1074_v56, 0.0  ;;  %v882_v52 = vadd.f32 %v6949_v17, %v7421_v29  ;;  %v7424_v6 = vld [vmem:[#allocation16_spill] sm:$0xff]  ;;  %7425 = vst [vmem:[#allocation10_spill] sm:$0xff] %v7007_v38  ;;  %v5827_v31 = vpop.f32.mrb[93].mxu0 }
 0x1f3   : > { %v4583_v27 = vsel %vm4494_vm8, %v4582_v37, %v4581_v0  ;;  %v6991_v8 = vmax.f32 %v879_v33, 0.0  ;;  %v6993_v21 = vmax.f32 %v1079_v39, 0.0  ;;  %v1423_v3 = vcombine.high %v1227_v54, %v1227_v54  ;;  %v7038_v7 = vpop.f32.mrb[94].mxu0 }
 0x1f4   : > { %v4831_v51 = vpack.c.b16 %v4583_v27, %v4583_v27  ;;  %v6995_v35 = vmax.f32 %v882_v52, 0.0  ;;  %v1082_v49 = vadd.f32 %v6949_v17, %v7422_v11  ;;  %v887_v5 = vadd.f32 %v6949_v17, %v7423_v58  ;;  %v7025_v52 = vpop.f32.mrb[92].mxu1 }
 0x1f5   : > { %v1425_v16 = vcombine.high %v6993_v21, %v6993_v21  ;;  %v1087_v10 = vadd.f32 %v6949_v17, %v7424_v6  ;;  %v890_v56 = vadd.f32 %v6949_v17, %v6728_v36  ;;  %v7020_v33 = vadd.f32 %v6949_v17, %v6735_v59  ;;  %7426 = vst [vmem:[#allocation11_spill] sm:$0xff] %v7025_v52  ;;  %v5927_v11 = vpop.f32.mrb[93].mxu1 }
 0x1f6   : > { %4887 = vst [vmem:[%s6416_s7 + $0x1c] sm:$0x7] %v4831_v51  ;;  %v1376_v37 = vcombine.high %v6995_v35, %v6995_v35  ;;  %v1230_v2 = vmax.f32 %v1082_v49, 0.0  ;;  %v1181_v44 = vmax.f32 %v887_v5, 0.0 }
 0x1f7   : > { %v1618_v40 = vmax.f32 %v1226_v1, %v1425_v16  ;;  %v7016_v63 = vmax.f32 %v1087_v10, 0.0  ;;  %v7023_v29 = vmax.f32 %v890_v56, 0.0 }
 0x1f8   : > { %v1569_v62 = vmax.f32 %v6943_v18, %v1376_v37  ;;  %v1426_v39 = vcombine.high %v1230_v2, %v1230_v2  ;;  %v1619_v0 = vmax.f32 %v1422_v4, %v1230_v2  ;;  %v1377_v36 = vcombine.high %v1181_v44, %v1181_v44 }
 0x1f9   : > { %v2359_v27 = vrot.slane %v1618_v40, %v6293_v23  ;;  %v1570_v51 = vmax.f32 %v1373_v13, %v1181_v44  ;;  %v7033_v18 = vmax.f32 %v1423_v3, %v7016_v63 }
 0x1fa   : > { %v1967_v49 = vrot.slane %v1569_v62, %v6293_v23  ;;  %v1620_v59 = vmax.f32 %v1227_v54, %v1426_v39  ;;  %v2367_v16 = vrot.slane %v1619_v0, %v6293_v23  ;;  %v1571_v5 = vmax.f32 %v6974_v34, %v1377_v36 }
 0x1fb   : > { %v2360_v4 = vcombine.high %v2359_v27, %v2359_v27  ;;  %v5232_v58 = vrot.slane %v2359_v27, 9  ;;  %v1975_v6 = vrot.slane %v1570_v51, %v6293_v23 }
 0x1fc   : > { %v1968_v10 = vcombine.high %v1967_v49, %v1967_v49  ;;  %v5134_v13 = vrot.slane %v1967_v49, 9  ;;  %v2368_v37 = vcombine.high %v2367_v16, %v2367_v16  ;;  %v2375_v2 = vrot.slane %v1620_v59, %v6293_v23 }
 0x1fd   : > { %v5233_v56 = vrot.slane %v2360_v4, 9  ;;  %v3459_v31 = vmax.f32 %v2359_v27, %v5232_v58  ;;  %v5234_v40 = vrot.slane %v2367_v16, 9  ;;  %v1976_v54 = vcombine.high %v1975_v6, %v1975_v6 }
 0x1fe   : > { %v5135_v44 = vrot.slane %v1968_v10, 9  ;;  %v3361_v62 = vmax.f32 %v1967_v49, %v5134_v13  ;;  %v2376_v39 = vcombine.high %v2375_v2, %v2375_v2  ;;  %v5235_v3 = vrot.slane %v2368_v37, 9  ;;  %v5828_v13 = vpop.f32.mrb[95].mxu0 }
 0x1ff   : > { %v3460_v0 = vmax.f32 %v2360_v4, %v5233_v56  ;;  %v5627_v11 = vpack.c.bf16 %v3459_v31, %v3459_v31  ;;  %v5236_v50 = vrot.slane %v2375_v2, 9  ;;  %v3461_v30 = vmax.f32 %v2367_v16, %v5234_v40 }
 0x200   : > { %v3362_v36 = vmax.f32 %v1968_v10, %v5135_v44  ;;  %v5529_v53 = vpack.c.bf16 %v3361_v62, %v3361_v62  ;;  %v5237_v51 = vrot.slane %v2376_v39, 9  ;;  %v3462_v1 = vmax.f32 %v2368_v37, %v5235_v3 }
 0x201   : > { %v5628_v52 = vpack.c.bf16 %v3460_v0, %v3460_v0  ;;  %v4439_v38 = vunpack.c.l.b16 %v5627_v11  ;;  %v3463_v14 = vmax.f32 %v2375_v2, %v5236_v50  ;;  %v5629_v59 = vpack.c.bf16 %v3461_v30, %v3461_v30 }
 0x202   : > { %v5530_v27 = vpack.c.bf16 %v3362_v36, %v3362_v36  ;;  %v4341_v58 = vunpack.c.l.b16 %v5529_v53  ;;  %v3464_v26 = vmax.f32 %v2376_v39, %v5237_v51  ;;  %v5630_v49 = vpack.c.bf16 %v3462_v1, %v3462_v1 }
 0x203   : > { %v4440_v43 = vunpack.c.l.b16 %v5628_v52  ;;  %v5631_v4 = vpack.c.bf16 %v3463_v14, %v3463_v14  ;;  %v4441_v56 = vunpack.c.l.b16 %v5629_v59  ;;  %v1983_v16 = vrot.slane %v1571_v5, %v6293_v23 }
 0x204   : > { %v4342_v10 = vunpack.c.l.b16 %v5530_v27  ;;  %v5632_v31 = vpack.c.bf16 %v3464_v26, %v3464_v26  ;;  %v4442_v40 = vunpack.c.l.b16 %v5630_v49  ;;  %v5136_v37 = vrot.slane %v1975_v6, 9  ;;  %v7045_v49 = vpop.f32.mrb[94].mxu1 }
 0x205   : > { %v4752_v44 = vrot.slane %v4440_v43, 7  ;;  %v4443_v62 = vunpack.c.l.b16 %v5631_v4  ;;  %v4754_v50 = vrot.slane %v4441_v56, 6  ;;  %v1984_v30 = vcombine.high %v1983_v16, %v1983_v16 }
 0x206   : > { %v4584_v2 = vrot.slane %v4342_v10, 7  ;;  %v4444_v3 = vunpack.c.l.b16 %v5632_v31  ;;  %v4756_v0 = vrot.slane %v4442_v40, 5  ;;  %v5137_v53 = vrot.slane %v1976_v54, 9  ;;  %v5928_v10 = vpop.f32.mrb[95].mxu1 }
 0x207   : > { %v4753_v1 = vsel %vm4482_vm4, %v4752_v44, %v4439_v38  ;;  %v4758_v39 = vrot.slane %v4443_v62, 4  ;;  %v5138_v52 = vrot.slane %v1983_v16, 9  ;;  %v5139_v14 = vrot.slane %v1984_v30, 9 }
 0x208   : > { %v4585_v11 = vsel %vm4482_vm4, %v4584_v2, %v4341_v58  ;;  %v4755_v5 = vsel %vm4485_vm5, %v4754_v50, %v4753_v1  ;;  %v4760_v26 = vrot.slane %v4444_v3, 3  ;;  %v3363_v36 = vmax.f32 %v1975_v6, %v5136_v37 }
 0x209   : > { %v4757_v43 = vsel %vm4488_vm6, %v4756_v0, %v4755_v5  ;;  %v3364_v51 = vmax.f32 %v1976_v54, %v5137_v53  ;;  %v3365_v59 = vmax.f32 %v1983_v16, %v5138_v52  ;;  %v3366_v27 = vmax.f32 %v1984_v30, %v5139_v14 }
 0x20a   : > { %v4759_v13 = vsel %vm4491_vm7, %v4758_v39, %v4757_v43  ;;  %v5531_v4 = vpack.c.bf16 %v3363_v36, %v3363_v36  ;;  %v7427_v38 = vcombine.high %v7016_v63, %v7016_v63  ;;  %v2383_v58 = vrot.slane %v7033_v18, %v6293_v23 }
 0x20b   : > { %v5532_v6 = vpack.c.bf16 %v3364_v51, %v3364_v51  ;;  %v5533_v31 = vpack.c.bf16 %v3365_v59, %v3365_v59  ;;  %v5534_v40 = vpack.c.bf16 %v3366_v27, %v3366_v27  ;;  %v4761_v54 = vsel %vm4494_vm8, %v4760_v26, %v4759_v13 }
 0x20c   : > { %v1622_v56 = vmax.f32 %v6984_v47, %v7427_v38  ;;  %v4343_v16 = vunpack.c.l.b16 %v5531_v4  ;;  %v2384_v37 = vcombine.high %v2383_v58, %v2383_v58  ;;  %v5238_v62 = vrot.slane %v2383_v58, 9 }
 0x20d   : > { %v4344_v50 = vunpack.c.l.b16 %v5532_v6  ;;  %v4345_v30 = vunpack.c.l.b16 %v5533_v31  ;;  %v4346_v2 = vunpack.c.l.b16 %v5534_v40  ;;  %v1378_v63 = vcombine.high %v7023_v29, %v7023_v29 }
 0x20e   : > { %v2391_v44 = vrot.slane %v1622_v56, %v6293_v23  ;;  %v4586_v3 = vrot.slane %v4343_v16, 6  ;;  %v5239_v18 = vrot.slane %v2384_v37, 9  ;;  %v3465_v14 = vmax.f32 %v2383_v58, %v5238_v62 }
 0x20f   : > { %v4588_v1 = vrot.slane %v4344_v50, 5  ;;  %v4590_v39 = vrot.slane %v4345_v30, 4  ;;  %v4592_v52 = vrot.slane %v4346_v2, 3  ;;  %v7428_v27 = vcombine.high %v6974_v34, %v6974_v34 }
 0x210   : > { %v2392_v0 = vcombine.high %v2391_v44, %v2391_v44  ;;  %v5240_v53 = vrot.slane %v2391_v44, 9  ;;  %v4587_v5 = vsel %vm4485_vm5, %v4586_v3, %v4585_v11  ;;  %v3466_v36 = vmax.f32 %v2384_v37, %v5239_v18 }
 0x211   : > { %v4589_v51 = vsel %vm4488_vm6, %v4588_v1, %v4587_v5  ;;  %v5633_v59 = vpack.c.bf16 %v3465_v14, %v3465_v14  ;;  %v1572_v13 = vmax.f32 %v7428_v27, %v7023_v29  ;;  %v1573_v4 = vmax.f32 %v6991_v8, %v1378_v63 }
 0x212   : > { %v5241_v26 = vrot.slane %v2392_v0, 9  ;;  %v3467_v43 = vmax.f32 %v2391_v44, %v5240_v53  ;;  %v4591_v38 = vsel %vm4491_vm7, %v4590_v39, %v4589_v51  ;;  %v5634_v10 = vpack.c.bf16 %v3466_v36, %v3466_v36 }
 0x213   : > { %v895_v11 = vadd.f32 %v6949_v17, %v6767_v55  ;;  %v4445_v58 = vunpack.c.l.b16 %v5633_v59  ;;  %v1991_v6 = vrot.slane %v1572_v13, %v6293_v23  ;;  %v1999_v31 = vrot.slane %v1573_v4, %v6293_v23 }
 0x214   : > { %v3468_v56 = vmax.f32 %v2392_v0, %v5241_v26  ;;  %v4593_v40 = vsel %vm4494_vm8, %v4592_v52, %v4591_v38  ;;  %v5635_v16 = vpack.c.bf16 %v3467_v43, %v3467_v43  ;;  %v4446_v34 = vunpack.c.l.b16 %v5634_v10  ;;  %v7072_v0 = vpop.f32.mrb[96].mxu0 }
 0x215   : > { %v1232_v29 = vmax.f32 %v7020_v33, 0.0  ;;  %v4762_v44 = vrot.slane %v4445_v58, 2  ;;  %v1992_v62 = vcombine.high %v1991_v6, %v1991_v6  ;;  %v2000_v50 = vcombine.high %v1999_v31, %v1999_v31  ;;  %v5831_v52 = vpop.f32.mrb[97].mxu0 }
 0x216   : > { %v5636_v37 = vpack.c.bf16 %v3468_v56, %v3468_v56  ;;  %v5140_v30 = vrot.slane %v1991_v6, 9  ;;  %v4764_v63 = vrot.slane %v4446_v34, 1  ;;  %v5142_v3 = vrot.slane %v1999_v31, 9  ;;  %v7079_v13 = vpop.f32.mrb[98].mxu0 }
 0x217   : > { %v1428_v55 = vcombine.high %v1232_v29, %v1232_v29  ;;  %v4763_v18 = vsel %vm4497_vm9, %v4762_v44, %v4761_v54  ;;  %v5141_v53 = vrot.slane %v1992_v62, 9  ;;  %v5143_v1 = vrot.slane %v2000_v50, 9  ;;  %v5832_v10 = vpop.f32.mrb[99].mxu0 }
 0x218   : > { %v4448_v2 = vunpack.c.l.b16 %v5636_v37  ;;  %v3367_v39 = vmax.f32 %v1991_v6, %v5140_v30  ;;  %v4765_v14 = vsel %vm4500_vm10, %v4764_v63, %v4763_v18  ;;  %v3369_v5 = vmax.f32 %v1999_v31, %v5142_v3 }
 0x219   : > { %v7429_v26 = vcombine.high %v6984_v47, %v6984_v47  ;;  %v4846_v43 = vpack.c.b16 %v4765_v14, %v4765_v14  ;;  %v3368_v51 = vmax.f32 %v1992_v62, %v5141_v53  ;;  %v3370_v59 = vmax.f32 %v2000_v50, %v5143_v1 }
 0x21a   : > { %v4766_v33 = vrot.slane %v4448_v2, 7  ;;  %v5535_v27 = vpack.c.bf16 %v3367_v39, %v3367_v39  ;;  %v4447_v54 = vunpack.c.l.b16 %v5635_v16  ;;  %v5537_v4 = vpack.c.bf16 %v3369_v5, %v3369_v5 }
 0x21b   : > { %v1623_v36 = vmax.f32 %v7429_v26, %v1232_v29  ;;  %v1624_v38 = vmax.f32 %v6993_v21, %v1428_v55  ;;  %4902 = vst [vmem:[%s6416_s7 + $0x58] sm:$0xf] %v4846_v43  ;;  %v5536_v58 = vpack.c.bf16 %v3368_v51, %v3368_v51  ;;  %v5538_v6 = vpack.c.bf16 %v3370_v59, %v3370_v59 }
 0x21c   : > { %v4347_v31 = vunpack.c.l.b16 %v5535_v27  ;;  %v1183_v37 = vmax.f32 %v895_v11, 0.0  ;;  %v4767_v47 = vsel %vm4482_vm4, %v4766_v33, %v4447_v54  ;;  %v4349_v55 = vunpack.c.l.b16 %v5537_v4 }
 0x21d   : > { %v2399_v56 = vrot.slane %v1623_v36, %v6293_v23  ;;  %v2407_v29 = vrot.slane %v1624_v38, %v6293_v23  ;;  %v4348_v62 = vunpack.c.l.b16 %v5536_v58  ;;  %v4350_v50 = vunpack.c.l.b16 %v5538_v6 }
 0x21e   : > { %v4594_v16 = vrot.slane %v4347_v31, 2  ;;  %v1379_v30 = vcombine.high %v1183_v37, %v1183_v37  ;;  %v7430_v11 = vcombine.high %v6991_v8, %v6991_v8  ;;  %v898_v6 = vadd.f32 %v6949_v17, %v6772_v46 }
 0x21f   : > { %v2400_v34 = vcombine.high %v2399_v56, %v2399_v56  ;;  %v5242_v44 = vrot.slane %v2399_v56, 9  ;;  %v2408_v2 = vcombine.high %v2407_v29, %v2407_v29  ;;  %v5244_v63 = vrot.slane %v2407_v29, 9 }
 0x220   : > { %v4595_v18 = vsel %vm4497_vm9, %v4594_v16, %v4593_v40  ;;  %v4596_v53 = vrot.slane %v4348_v62, 1  ;;  %v1574_v1 = vmax.f32 %v7430_v11, %v1183_v37  ;;  %v4598_v26 = vrot.slane %v4350_v50, 7 }
 0x221   : > { %v5243_v21 = vrot.slane %v2400_v34, 9  ;;  %v3469_v3 = vmax.f32 %v2399_v56, %v5242_v44  ;;  %v5245_v39 = vrot.slane %v2408_v2, 9  ;;  %v3471_v14 = vmax.f32 %v2407_v29, %v5244_v63 }
 0x222   : > { %v4597_v5 = vsel %vm4500_vm10, %v4596_v53, %v4595_v18  ;;  %v1575_v36 = vmax.f32 %v6995_v35, %v1379_v30  ;;  %v2007_v43 = vrot.slane %v1574_v1, %v6293_v23  ;;  %v4599_v63 = vsel %vm4482_vm4, %v4598_v26, %v4349_v55 }
 0x223   : > { %v3470_v52 = vmax.f32 %v2400_v34, %v5243_v21  ;;  %v5637_v33 = vpack.c.bf16 %v3469_v3, %v3469_v3  ;;  %v4832_v51 = vpack.c.b16 %v4597_v5, %v4597_v5  ;;  %v3472_v59 = vmax.f32 %v2408_v2, %v5245_v39 }
 0x224   : > { %v5639_v27 = vpack.c.bf16 %v3471_v14, %v3471_v14  ;;  %v2008_v4 = vcombine.high %v2007_v43, %v2007_v43  ;;  %v2015_v8 = vrot.slane %v1575_v36, %v6293_v23  ;;  %v5144_v38 = vrot.slane %v2007_v43, 9 }
 0x225   : > { %v5638_v40 = vpack.c.bf16 %v3470_v52, %v3470_v52  ;;  %v4449_v54 = vunpack.c.l.b16 %v5637_v33  ;;  %4888 = vst [vmem:[%s6416_s7 + $0x20] sm:$0xf] %v4832_v51  ;;  %v5640_v56 = vpack.c.bf16 %v3472_v59, %v3472_v59  ;;  %v1184_v33 = vmax.f32 %v898_v6, 0.0 }
 0x226   : > { %v4451_v58 = vunpack.c.l.b16 %v5639_v27  ;;  %v2016_v35 = vcombine.high %v2015_v8, %v2015_v8  ;;  %v5145_v37 = vrot.slane %v2008_v4, 9  ;;  %v5146_v34 = vrot.slane %v2015_v8, 9 }
 0x227   : > { %v4450_v10 = vunpack.c.l.b16 %v5638_v40  ;;  %v4768_v31 = vrot.slane %v4449_v54, 6  ;;  %v4452_v29 = vunpack.c.l.b16 %v5640_v56  ;;  %v3371_v50 = vmax.f32 %v2007_v43, %v5144_v38 }
 0x228   : > { %v4772_v62 = vrot.slane %v4451_v58, 4  ;;  %v5147_v30 = vrot.slane %v2016_v35, 9  ;;  %v3372_v2 = vmax.f32 %v2008_v4, %v5145_v37  ;;  %v3373_v21 = vmax.f32 %v2015_v8, %v5146_v34 }
 0x229   : > { %v4770_v44 = vrot.slane %v4450_v10, 5  ;;  %v4769_v16 = vsel %vm4485_vm5, %v4768_v31, %v4767_v47  ;;  %v4774_v18 = vrot.slane %v4452_v29, 3  ;;  %v5539_v53 = vpack.c.bf16 %v3371_v50, %v3371_v50 }
 0x22a   : > { %v3374_v11 = vmax.f32 %v2016_v35, %v5147_v30  ;;  %v5540_v1 = vpack.c.bf16 %v3372_v2, %v3372_v2  ;;  %v5541_v39 = vpack.c.bf16 %v3373_v21, %v3373_v21  ;;  %v1095_v47 = vadd.f32 %v6949_v17, %v6783_v20  ;;  %v7431_v21 = vld [vmem:[#allocation8_spill] sm:$0xff] }
 0x22b   : > { %v4771_v3 = vsel %vm4488_vm6, %v4770_v44, %v4769_v16  ;;  %v4351_v14 = vunpack.c.l.b16 %v5539_v53  ;;  %v1098_v59 = vadd.f32 %v6949_v17, %v6793_v41  ;;  %v903_v40 = vadd.f32 %v6949_v17, %v6799_v48 }
 0x22c   : > { %v4773_v46 = vsel %vm4491_vm7, %v4772_v62, %v4771_v3  ;;  %v5542_v36 = vpack.c.bf16 %v3374_v11, %v3374_v11  ;;  %v4352_v55 = vunpack.c.l.b16 %v5540_v1  ;;  %v4353_v26 = vunpack.c.l.b16 %v5541_v39 }
 0x22d   : > { %v4775_v52 = vsel %vm4494_vm8, %v4774_v18, %v4773_v46  ;;  %v4600_v43 = vrot.slane %v4351_v14, 6  ;;  %v1233_v51 = vmax.f32 %v1095_v47, 0.0  ;;  %v1103_v8 = vadd.f32 %v6949_v17, %v6801_v28 }
 0x22e   : > { %v4847_v5 = vpack.c.b16 %v4775_v52, %v4775_v52  ;;  %v4354_v27 = vunpack.c.l.b16 %v5542_v36  ;;  %v4602_v54 = vrot.slane %v4352_v55, 5  ;;  %v4604_v4 = vrot.slane %v4353_v26, 4 }
 0x22f   : > { %v4601_v20 = vsel %vm4485_vm5, %v4600_v43, %v4599_v63  ;;  %v1380_v38 = vcombine.high %v1184_v33, %v1184_v33  ;;  %v1234_v56 = vmax.f32 %v1098_v59, 0.0  ;;  %v7112_v10 = vmax.f32 %v903_v40, 0.0 }
 0x230   : > { %4903 = vst [vmem:[%s6416_s7 + $0x5c] sm:$0x7] %v4847_v5  ;;  %v4603_v58 = vsel %vm4488_vm6, %v4602_v54, %v4601_v20  ;;  %v4606_v6 = vrot.slane %v4354_v27, 3  ;;  %v7115_v41 = vmax.f32 %v1103_v8, 0.0  ;;  %v906_v48 = vadd.f32 %v6949_v17, %v6805_v24 }
 0x231   : > { %v4605_v31 = vsel %vm4491_vm7, %v4604_v4, %v4603_v58  ;;  %v1429_v35 = vcombine.high %v1233_v51, %v1233_v51  ;;  %v1430_v37 = vcombine.high %v1234_v56, %v1234_v56  ;;  %v1106_v28 = vadd.f32 %v6949_v17, %v6811_v45 }
 0x232   : > { %v4607_v34 = vsel %vm4494_vm8, %v4606_v6, %v4605_v31  ;;  %v1381_v29 = vcombine.high %v7112_v10, %v7112_v10  ;;  %v1431_v44 = vcombine.high %v7115_v41, %v7115_v41  ;;  %v911_v62 = vadd.f32 %v6949_v17, %v6839_v42 }
 0x233   : > { %v4833_v24 = vpack.c.b16 %v4607_v34, %v4607_v34  ;;  %v7129_v50 = vmax.f32 %v1106_v28, 0.0  ;;  %v1111_v16 = vadd.f32 %v6949_v17, %v6841_v15  ;;  %v914_v45 = vadd.f32 %v6949_v17, %v6853_v22 }
 0x234   : > { %v7135_v30 = vmax.f32 %v906_v48, 0.0  ;;  %v7137_v2 = vmax.f32 %v911_v62, 0.0  ;;  %v1114_v63 = vadd.f32 %v6949_v17, %v7431_v21  ;;  %v919_v3 = vadd.f32 %v6949_v17, %v6878_v61 }
 0x235   : > { %4889 = vst [vmem:[%s6416_s7 + $0x24] sm:$0x7] %v4833_v24  ;;  %v1432_v42 = vcombine.high %v7129_v50, %v7129_v50  ;;  %v1237_v18 = vmax.f32 %v1111_v16, 0.0  ;;  %v1188_v53 = vmax.f32 %v914_v45, 0.0  ;;  %v7148_v15 = vadd.f32 %v6949_v17, %v6886_v32 }
 0x236   : > { %v1383_v22 = vcombine.high %v7137_v2, %v7137_v2  ;;  %v1238_v46 = vmax.f32 %v1114_v63, 0.0  ;;  %v7152_v11 = vmax.f32 %v919_v3, 0.0  ;;  %v7156_v1 = vadd.f32 %v6949_v17, %v6894_v9 }
 0x237   : > { %v1625_v61 = vmax.f32 %v1233_v51, %v1432_v42  ;;  %v1433_v39 = vcombine.high %v1237_v18, %v1237_v18  ;;  %v1626_v52 = vmax.f32 %v1429_v35, %v1237_v18  ;;  %v1384_v14 = vcombine.high %v1188_v53, %v1188_v53 }
 0x238   : > { %v1576_v47 = vmax.f32 %v1184_v33, %v1383_v22  ;;  %v1577_v5 = vmax.f32 %v1380_v38, %v1188_v53  ;;  %v1434_v36 = vcombine.high %v1238_v46, %v1238_v46  ;;  %v1628_v55 = vmax.f32 %v1430_v37, %v1238_v46 }
 0x239   : > { %v2415_v32 = vrot.slane %v1625_v61, %v6293_v23  ;;  %v1627_v26 = vmax.f32 %v1234_v56, %v1433_v39  ;;  %v2423_v43 = vrot.slane %v1626_v52, %v6293_v23  ;;  %v1578_v59 = vmax.f32 %v7112_v10, %v1384_v14 }
 0x23a   : > { %v2023_v40 = vrot.slane %v1576_v47, %v6293_v23  ;;  %v2031_v9 = vrot.slane %v1577_v5, %v6293_v23  ;;  %v7164_v51 = vmax.f32 %v7115_v41, %v1434_v36  ;;  %v7167_v27 = vrot.slane %v1628_v55, %v6293_v23 }
 0x23b   : > { %v2416_v33 = vcombine.high %v2415_v32, %v2415_v32  ;;  %v5246_v54 = vrot.slane %v2415_v32, 9  ;;  %v2424_v4 = vcombine.high %v2423_v43, %v2423_v43  ;;  %v2431_v8 = vrot.slane %v1627_v26, %v6293_v23 }
 0x23c   : > { %v2024_v20 = vcombine.high %v2023_v40, %v2023_v40  ;;  %v5148_v38 = vrot.slane %v2023_v40, 9  ;;  %v5248_v56 = vrot.slane %v2423_v43, 9  ;;  %v2032_v58 = vcombine.high %v2031_v9, %v2031_v9 }
 0x23d   : > { %v5247_v6 = vrot.slane %v2416_v33, 9  ;;  %v3473_v48 = vmax.f32 %v2415_v32, %v5246_v54  ;;  %v2432_v31 = vcombine.high %v2431_v8, %v2431_v8  ;;  %v5249_v35 = vrot.slane %v2424_v4, 9 }
 0x23e   : > { %v5149_v37 = vrot.slane %v2024_v20, 9  ;;  %v3375_v28 = vmax.f32 %v2023_v40, %v5148_v38  ;;  %v5250_v34 = vrot.slane %v2431_v8, 9  ;;  %v3475_v62 = vmax.f32 %v2423_v43, %v5248_v56 }
 0x23f   : > { %v3474_v24 = vmax.f32 %v2416_v33, %v5247_v6  ;;  %v5641_v16 = vpack.c.bf16 %v3473_v48, %v3473_v48  ;;  %v5251_v45 = vrot.slane %v2432_v31, 9  ;;  %v3476_v21 = vmax.f32 %v2424_v4, %v5249_v35 }
 0x240   : > { %v3376_v63 = vmax.f32 %v2024_v20, %v5149_v37  ;;  %v5543_v3 = vpack.c.bf16 %v3375_v28, %v3375_v28  ;;  %v3477_v42 = vmax.f32 %v2431_v8, %v5250_v34  ;;  %v5643_v18 = vpack.c.bf16 %v3475_v62, %v3475_v62 }
 0x241   : > { %v5642_v53 = vpack.c.bf16 %v3474_v24, %v3474_v24  ;;  %v4453_v22 = vunpack.c.l.b16 %v5641_v16  ;;  %v3478_v46 = vmax.f32 %v2432_v31, %v5251_v45  ;;  %v5644_v61 = vpack.c.bf16 %v3476_v21, %v3476_v21 }
 0x242   : > { %v5544_v39 = vpack.c.bf16 %v3376_v63, %v3376_v63  ;;  %v4355_v52 = vunpack.c.l.b16 %v5543_v3  ;;  %v5645_v14 = vpack.c.bf16 %v3477_v42, %v3477_v42  ;;  %v4455_v47 = vunpack.c.l.b16 %v5643_v18 }
 0x243   : > { %v4454_v5 = vunpack.c.l.b16 %v5642_v53  ;;  %v5646_v36 = vpack.c.bf16 %v3478_v46, %v3478_v46  ;;  %v4456_v55 = vunpack.c.l.b16 %v5644_v61  ;;  %v2039_v32 = vrot.slane %v1578_v59, %v6293_v23 }
 0x244   : > { %v4356_v26 = vunpack.c.l.b16 %v5544_v39  ;;  %v4457_v43 = vunpack.c.l.b16 %v5645_v14  ;;  %v4778_v40 = vrot.slane %v4455_v47, 6  ;;  %v5150_v33 = vrot.slane %v2031_v9, 9 }
 0x245   : > { %v4776_v54 = vrot.slane %v4454_v5, 7  ;;  %v4458_v4 = vunpack.c.l.b16 %v5646_v36  ;;  %v4780_v8 = vrot.slane %v4456_v55, 5  ;;  %v2040_v20 = vcombine.high %v2039_v32, %v2039_v32 }
 0x246   : > { %v4608_v38 = vrot.slane %v4356_v26, 7  ;;  %v4782_v56 = vrot.slane %v4457_v43, 4  ;;  %v5151_v6 = vrot.slane %v2032_v58, 9  ;;  %v5152_v48 = vrot.slane %v2039_v32, 9 }
 0x247   : > { %v4777_v31 = vsel %vm4482_vm4, %v4776_v54, %v4453_v22  ;;  %v4784_v35 = vrot.slane %v4458_v4, 3  ;;  %v5153_v37 = vrot.slane %v2040_v20, 9  ;;  %v3377_v28 = vmax.f32 %v2031_v9, %v5150_v33 }
 0x248   : > { %v4609_v34 = vsel %vm4482_vm4, %v4608_v38, %v4355_v52  ;;  %v4779_v59 = vsel %vm4485_vm5, %v4778_v40, %v4777_v31  ;;  %v3378_v62 = vmax.f32 %v2032_v58, %v5151_v6  ;;  %v3379_v24 = vmax.f32 %v2039_v32, %v5152_v48 }
 0x249   : > { %v4781_v16 = vsel %vm4488_vm6, %v4780_v8, %v4779_v59  ;;  %v3380_v45 = vmax.f32 %v2040_v20, %v5153_v37  ;;  %v5545_v21 = vpack.c.bf16 %v3377_v28, %v3377_v28  ;;  %v2440_v63 = vcombine.high %v7167_v27, %v7167_v27 }
 0x24a   : > { %v4783_v3 = vsel %vm4491_vm7, %v4782_v56, %v4781_v16  ;;  %v5546_v42 = vpack.c.bf16 %v3378_v62, %v3378_v62  ;;  %v5547_v18 = vpack.c.bf16 %v3379_v24, %v3379_v24  ;;  %v2447_v9 = vrot.slane %v7164_v51, %v6293_v23 }
 0x24b   : > { %v5548_v53 = vpack.c.bf16 %v3380_v45, %v3380_v45  ;;  %v4357_v22 = vunpack.c.l.b16 %v5545_v21  ;;  %v5252_v46 = vrot.slane %v7167_v27, 9  ;;  %v5253_v58 = vrot.slane %v2440_v63, 9 }
 0x24c   : > { %v4358_v61 = vunpack.c.l.b16 %v5546_v42  ;;  %v4359_v39 = vunpack.c.l.b16 %v5547_v18  ;;  %v2448_v52 = vcombine.high %v2447_v9, %v2447_v9  ;;  %v5254_v14 = vrot.slane %v2447_v9, 9 }
 0x24d   : > { %v4360_v47 = vunpack.c.l.b16 %v5548_v53  ;;  %v4610_v5 = vrot.slane %v4357_v22, 6  ;;  %v3479_v36 = vmax.f32 %v7167_v27, %v5252_v46  ;;  %v3480_v55 = vmax.f32 %v2440_v63, %v5253_v58 }
 0x24e   : > { %v4612_v32 = vrot.slane %v4358_v61, 5  ;;  %v4614_v26 = vrot.slane %v4359_v39, 4  ;;  %v5255_v43 = vrot.slane %v2448_v52, 9  ;;  %v3481_v40 = vmax.f32 %v2447_v9, %v5254_v14 }
 0x24f   : > { %v4611_v51 = vsel %vm4485_vm5, %v4610_v5, %v4609_v34  ;;  %v4616_v33 = vrot.slane %v4360_v47, 3  ;;  %v5647_v54 = vpack.c.bf16 %v3479_v36, %v3479_v36  ;;  %v5648_v4 = vpack.c.bf16 %v3480_v55, %v3480_v55 }
 0x250   : > { %v4613_v8 = vsel %vm4488_vm6, %v4612_v32, %v4611_v51  ;;  %v3482_v20 = vmax.f32 %v2448_v52, %v5255_v43  ;;  %v5649_v38 = vpack.c.bf16 %v3481_v40, %v3481_v40  ;;  %v4785_v56 = vsel %vm4494_vm8, %v4784_v35, %v4783_v3 }
 0x251   : > { %v4615_v6 = vsel %vm4491_vm7, %v4614_v26, %v4613_v8  ;;  %v4459_v48 = vunpack.c.l.b16 %v5647_v54  ;;  %v4460_v27 = vunpack.c.l.b16 %v5648_v4  ;;  %v1385_v31 = vcombine.high %v7152_v11, %v7152_v11 }
 0x252   : > { %v1382_v37 = vcombine.high %v7135_v30, %v7135_v30  ;;  %v5650_v28 = vpack.c.bf16 %v3482_v20, %v3482_v20  ;;  %v1579_v34 = vmax.f32 %v1381_v29, %v7152_v11  ;;  %v4617_v59 = vsel %vm4494_vm8, %v4616_v33, %v4615_v6 }
 0x253   : > { %v4461_v62 = vunpack.c.l.b16 %v5649_v38  ;;  %v4786_v35 = vrot.slane %v4459_v48, 2  ;;  %v1580_v24 = vmax.f32 %v7135_v30, %v1385_v31  ;;  %v1239_v16 = vmax.f32 %v7148_v15, 0.0 }
 0x254   : > { %v4462_v45 = vunpack.c.l.b16 %v5650_v28  ;;  %v4788_v21 = vrot.slane %v4460_v27, 1  ;;  %v2047_v63 = vrot.slane %v1579_v34, %v6293_v23  ;;  %v1190_v3 = vmax.f32 %v7156_v1, 0.0 }
 0x255   : > { %v4787_v42 = vsel %vm4497_vm9, %v4786_v35, %v4785_v56  ;;  %v2055_v18 = vrot.slane %v1580_v24, %v6293_v23  ;;  %v1435_v10 = vcombine.high %v1239_v16, %v1239_v16  ;;  %v1630_v29 = vmax.f32 %v1431_v44, %v1239_v16 }
 0x256   : > { %v4789_v30 = vsel %vm4500_vm10, %v4788_v21, %v4787_v42  ;;  %v4790_v11 = vrot.slane %v4462_v45, 7  ;;  %v2048_v15 = vcombine.high %v2047_v63, %v2047_v63  ;;  %v5154_v9 = vrot.slane %v2047_v63, 9 }
 0x257   : > { %v4848_v53 = vpack.c.b16 %v4789_v30, %v4789_v30  ;;  %v2056_v22 = vcombine.high %v2055_v18, %v2055_v18  ;;  %v5156_v46 = vrot.slane %v2055_v18, 9  ;;  %v1631_v1 = vmax.f32 %v7129_v50, %v1435_v10 }
 0x258   : > { %v5155_v58 = vrot.slane %v2048_v15, 9  ;;  %v3381_v61 = vmax.f32 %v2047_v63, %v5154_v9  ;;  %v2455_v39 = vrot.slane %v1630_v29, %v6293_v23  ;;  %v927_v52 = vadd.f32 %v6949_v17, %v6929_v57 }
 0x259   : > { %v4791_v41 = vsel %vm4482_vm4, %v4790_v11, %v4461_v62  ;;  %4904 = vst [vmem:[%s6416_s7 + $0x60] sm:$0xf] %v4848_v53  ;;  %v5157_v44 = vrot.slane %v2056_v22, 9  ;;  %v3383_v14 = vmax.f32 %v2055_v18, %v5156_v46  ;;  %v2463_v47 = vrot.slane %v1631_v1, %v6293_v23 }
 0x25a   : > { %v3382_v5 = vmax.f32 %v2048_v15, %v5155_v58  ;;  %v5549_v36 = vpack.c.bf16 %v3381_v61, %v3381_v61  ;;  %v2456_v55 = vcombine.high %v2455_v39, %v2455_v39  ;;  %v5256_v32 = vrot.slane %v2455_v39, 9  ;;  %v7224_v58 = vld [vmem:[%s7376_s2] ss:$0 sm:$0xff] }
 0x25b   : > { %v3384_v26 = vmax.f32 %v2056_v22, %v5157_v44  ;;  %v2464_v50 = vcombine.high %v2463_v47, %v2463_v47  ;;  %v5258_v43 = vrot.slane %v2463_v47, 9  ;;  %v1386_v40 = vcombine.high %v1190_v3, %v1190_v3 }
 0x25c   : > { %v5550_v51 = vpack.c.bf16 %v3382_v5, %v3382_v5  ;;  %v4361_v33 = vunpack.c.l.b16 %v5549_v36  ;;  %v5257_v54 = vrot.slane %v2456_v55, 9  ;;  %v3483_v4 = vmax.f32 %v2455_v39, %v5256_v32 }
 0x25d   : > { %v5551_v57 = vpack.c.bf16 %v3383_v14, %v3383_v14  ;;  %v5552_v17 = vpack.c.bf16 %v3384_v26, %v3384_v26  ;;  %v5259_v8 = vrot.slane %v2464_v50, 9  ;;  %v3485_v20 = vmax.f32 %v2463_v47, %v5258_v43 }
 0x25e   : > { %v4362_v38 = vunpack.c.l.b16 %v5550_v51  ;;  %v4618_v56 = vrot.slane %v4361_v33, 2  ;;  %v3484_v6 = vmax.f32 %v2456_v55, %v5257_v54  ;;  %v5651_v48 = vpack.c.bf16 %v3483_v4, %v3483_v4 }
 0x25f   : > { %v4364_v27 = vunpack.c.l.b16 %v5552_v17  ;;  %v3486_v31 = vmax.f32 %v2464_v50, %v5259_v8  ;;  %v5653_v28 = vpack.c.bf16 %v3485_v20, %v3485_v20  ;;  %v1581_v34 = vmax.f32 %v1382_v37, %v1190_v3 }
 0x260   : > { %v4619_v62 = vsel %vm4497_vm9, %v4618_v56, %v4617_v59  ;;  %v4620_v35 = vrot.slane %v4362_v38, 1  ;;  %v5652_v24 = vpack.c.bf16 %v3484_v6, %v3484_v6  ;;  %v4463_v16 = vunpack.c.l.b16 %v5651_v48  ;;  %v7432_v38 = vld [vmem:[#allocation17_spill] sm:$0xff] }
 0x261   : > { %v4363_v45 = vunpack.c.l.b16 %v5551_v57  ;;  %v5654_v21 = vpack.c.bf16 %v3486_v31, %v3486_v31  ;;  %v4465_v63 = vunpack.c.l.b16 %v5653_v28  ;;  %v1582_v42 = vmax.f32 %v7137_v2, %v1386_v40 }
 0x262   : > { %v4621_v18 = vsel %vm4500_vm10, %v4620_v35, %v4619_v62  ;;  %v4464_v10 = vunpack.c.l.b16 %v5652_v24  ;;  %v4792_v29 = vrot.slane %v4463_v16, 6  ;;  %v2063_v30 = vrot.slane %v1581_v34, %v6293_v23 }
 0x263   : > { %v4622_v11 = vrot.slane %v4364_v27, 7  ;;  %v4834_v15 = vpack.c.b16 %v4621_v18, %v4621_v18  ;;  %v4466_v37 = vunpack.c.l.b16 %v5654_v21  ;;  %v4796_v3 = vrot.slane %v4465_v63, 4  ;;  %v7433_v63 = vld [vmem:[#allocation18_spill] sm:$0xff] }
 0x264   : > { %v4793_v59 = vsel %vm4485_vm5, %v4792_v29, %v4791_v41  ;;  %v4794_v9 = vrot.slane %v4464_v10, 5  ;;  %v2064_v53 = vcombine.high %v2063_v30, %v2063_v30  ;;  %v2071_v22 = vrot.slane %v1582_v42, %v6293_v23  ;;  %v7434_v29 = vld [vmem:[#allocation9_spill] sm:$0xff] }
 0x265   : > { %4890 = vst [vmem:[%s6416_s7 + $0x28] sm:$0xf] %v4834_v15  ;;  %v4798_v46 = vrot.slane %v4466_v37, 3  ;;  %v5158_v1 = vrot.slane %v2063_v30, 9  ;;  %v7219_v2 = vmax.f32 %v927_v52, 0.0  ;;  %v1122_v61 = vadd.f32 %v7224_v58, %v6932_v25 }
 0x266   : > { %v4795_v39 = vsel %vm4488_vm6, %v4794_v9, %v4793_v59  ;;  %v2072_v41 = vcombine.high %v2071_v22, %v2071_v22  ;;  %v5159_v44 = vrot.slane %v2064_v53, 9  ;;  %v5160_v14 = vrot.slane %v2071_v22, 9  ;;  %v7436_v59 = vld [vmem:[#allocation10_spill] sm:$0xff] }
 0x267   : > { %v4623_v47 = vsel %vm4482_vm4, %v4622_v11, %v4363_v45  ;;  %v4797_v5 = vsel %vm4491_vm7, %v4796_v3, %v4795_v39  ;;  %v3385_v52 = vmax.f32 %v2063_v30, %v5158_v1  ;;  %v1387_v36 = vcombine.high %v7219_v2, %v7219_v2  ;;  %v7435_v11 = vld [vmem:[#allocation19_spill] sm:$0xff] }
 0x268   : > { %v4799_v55 = vsel %vm4494_vm8, %v4798_v46, %v4797_v5  ;;  %v5161_v32 = vrot.slane %v2072_v41, 9  ;;  %v3386_v26 = vmax.f32 %v2064_v53, %v5159_v44  ;;  %v3387_v50 = vmax.f32 %v2071_v22, %v5160_v14  ;;  %v7437_v53 = vld [vmem:[#allocation11_spill] sm:$0xff] }
 0x269   : > { %v4849_v25 = vpack.c.b16 %v4799_v55, %v4799_v55  ;;  %v5553_v43 = vpack.c.bf16 %v3385_v52, %v3385_v52  ;;  %v1240_v40 = vmax.f32 %v1122_v61, 0.0  ;;  %v930_v51 = vadd.f32 %v7224_v58, %v6934_v19 }
 0x26a   : > { %v3388_v33 = vmax.f32 %v2072_v41, %v5161_v32  ;;  %v5554_v54 = vpack.c.bf16 %v3386_v26, %v3386_v26  ;;  %v5555_v4 = vpack.c.bf16 %v3387_v50, %v3387_v50  ;;  %v1127_v57 = vadd.f32 %v7224_v58, %v6940_v60 }
 0x26b   : > { %4905 = vst [vmem:[%s6416_s7 + $0x64] sm:$0x7] %v4849_v25  ;;  %v4365_v17 = vunpack.c.l.b16 %v5553_v43  ;;  %v7239_v8 = vmax.f32 %v930_v51, 0.0  ;;  %v1130_v20 = vadd.f32 %v7224_v58, %v6953_v12  ;;  %v935_v56 = vadd.f32 %v7224_v58, %v7432_v38 }
 0x26c   : > { %v5556_v6 = vpack.c.bf16 %v3388_v33, %v3388_v33  ;;  %v4366_v48 = vunpack.c.l.b16 %v5554_v54  ;;  %v4367_v27 = vunpack.c.l.b16 %v5555_v4  ;;  %v1241_v19 = vmax.f32 %v1127_v57, 0.0 }
 0x26d   : > { %v4624_v31 = vrot.slane %v4365_v17, 6  ;;  %v1436_v28 = vcombine.high %v1240_v40, %v1240_v40  ;;  %v1388_v34 = vcombine.high %v7239_v8, %v7239_v8  ;;  %v7247_v60 = vmax.f32 %v1130_v20, 0.0 }
 0x26e   : > { %v4368_v62 = vunpack.c.l.b16 %v5556_v6  ;;  %v4626_v35 = vrot.slane %v4366_v48, 5  ;;  %v4628_v24 = vrot.slane %v4367_v27, 4  ;;  %v7249_v16 = vmax.f32 %v935_v56, 0.0 }
 0x26f   : > { %v4625_v12 = vsel %vm4485_vm5, %v4624_v31, %v4623_v47  ;;  %v1437_v45 = vcombine.high %v1241_v19, %v1241_v19  ;;  %v1438_v21 = vcombine.high %v7247_v60, %v7247_v60  ;;  %v1135_v42 = vadd.f32 %v7224_v58, %v7433_v63 }
 0x270   : > { %v4627_v18 = vsel %vm4488_vm6, %v4626_v35, %v4625_v12  ;;  %v4630_v10 = vrot.slane %v4368_v62, 3  ;;  %v938_v30 = vadd.f32 %v7224_v58, %v7434_v29  ;;  %v1138_v15 = vadd.f32 %v7224_v58, %v7435_v11 }
 0x271   : > { %v4629_v37 = vsel %vm4491_vm7, %v4628_v24, %v4627_v18  ;;  %v7262_v3 = vmax.f32 %v1135_v42, 0.0  ;;  %v943_v9 = vadd.f32 %v7224_v58, %v7436_v59  ;;  %v1143_v22 = vadd.f32 %v7224_v58, %v7437_v53 }
 0x272   : > { %v4631_v46 = vsel %vm4494_vm8, %v4630_v10, %v4629_v37  ;;  %v7269_v1 = vmax.f32 %v938_v30, 0.0  ;;  %v1244_v61 = vmax.f32 %v1138_v15, 0.0  ;;  %v946_v39 = vadd.f32 %v7224_v58, %v7038_v7 }
 0x273   : > { %v4835_v41 = vpack.c.b16 %v4631_v46, %v4631_v46  ;;  %v1439_v44 = vcombine.high %v7262_v3, %v7262_v3  ;;  %v1195_v14 = vmax.f32 %v943_v9, 0.0  ;;  %v1245_v47 = vmax.f32 %v1143_v22, 0.0 }
 0x274   : > { %v1390_v5 = vcombine.high %v7269_v1, %v7269_v1  ;;  %v1440_v52 = vcombine.high %v1244_v61, %v1244_v61  ;;  %v1633_v55 = vmax.f32 %v1436_v28, %v1244_v61  ;;  %v7277_v32 = vmax.f32 %v946_v39, 0.0 }
 0x275   : > { %4891 = vst [vmem:[%s6416_s7 + $0x2c] sm:$0x7] %v4835_v41  ;;  %v1632_v26 = vmax.f32 %v1240_v40, %v1439_v44  ;;  %v1391_v50 = vcombine.high %v1195_v14, %v1195_v14  ;;  %v1584_v25 = vmax.f32 %v1387_v36, %v1195_v14  ;;  %v1441_v43 = vcombine.high %v1245_v47, %v1245_v47 }
 0x276   : > { %v1583_v7 = vmax.f32 %v7219_v2, %v1390_v5  ;;  %v1634_v51 = vmax.f32 %v1241_v19, %v1440_v52  ;;  %v2479_v33 = vrot.slane %v1633_v55, %v6293_v23  ;;  %v1635_v54 = vmax.f32 %v1437_v45, %v1245_v47 }
 0x277   : > { %v2471_v4 = vrot.slane %v1632_v26, %v6293_v23  ;;  %v1585_v57 = vmax.f32 %v7239_v8, %v1391_v50  ;;  %v2087_v17 = vrot.slane %v1584_v25, %v6293_v23  ;;  %v7286_v20 = vmax.f32 %v7247_v60, %v1441_v43 }
 0x278   : > { %v2079_v40 = vrot.slane %v1583_v7, %v6293_v23  ;;  %v2480_v38 = vcombine.high %v2479_v33, %v2479_v33  ;;  %v2487_v36 = vrot.slane %v1634_v51, %v6293_v23  ;;  %v5262_v56 = vrot.slane %v2479_v33, 9 }
 0x279   : > { %v2472_v2 = vcombine.high %v2471_v4, %v2471_v4  ;;  %v5260_v6 = vrot.slane %v2471_v4, 9  ;;  %v2088_v48 = vcombine.high %v2087_v17, %v2087_v17  ;;  %v2095_v27 = vrot.slane %v1585_v57, %v6293_v23 }
 0x27a   : > { %v2080_v19 = vcombine.high %v2079_v40, %v2079_v40  ;;  %v5162_v31 = vrot.slane %v2079_v40, 9  ;;  %v2488_v28 = vcombine.high %v2487_v36, %v2487_v36  ;;  %v5263_v62 = vrot.slane %v2480_v38, 9 }
 0x27b   : > { %v5261_v35 = vrot.slane %v2472_v2, 9  ;;  %v3487_v24 = vmax.f32 %v2471_v4, %v5260_v6  ;;  %v5264_v12 = vrot.slane %v2487_v36, 9  ;;  %v3489_v45 = vmax.f32 %v2479_v33, %v5262_v56 }
 0x27c   : > { %v5163_v63 = vrot.slane %v2080_v19, 9  ;;  %v3389_v42 = vmax.f32 %v2079_v40, %v5162_v31  ;;  %v5265_v18 = vrot.slane %v2488_v28, 9  ;;  %v3490_v10 = vmax.f32 %v2480_v38, %v5263_v62 }
 0x27d   : > { %v3488_v29 = vmax.f32 %v2472_v2, %v5261_v35  ;;  %v5655_v30 = vpack.c.bf16 %v3487_v24, %v3487_v24  ;;  %v3491_v11 = vmax.f32 %v2487_v36, %v5264_v12  ;;  %v5657_v15 = vpack.c.bf16 %v3489_v45, %v3489_v45 }
 0x27e   : > { %v3390_v37 = vmax.f32 %v2080_v19, %v5163_v63  ;;  %v5557_v59 = vpack.c.bf16 %v3389_v42, %v3389_v42  ;;  %v3492_v9 = vmax.f32 %v2488_v28, %v5265_v18  ;;  %v5658_v53 = vpack.c.bf16 %v3490_v10, %v3490_v10 }
 0x27f   : > { %v5656_v22 = vpack.c.bf16 %v3488_v29, %v3488_v29  ;;  %v4467_v46 = vunpack.c.l.b16 %v5655_v30  ;;  %v5659_v61 = vpack.c.bf16 %v3491_v11, %v3491_v11  ;;  %v4469_v39 = vunpack.c.l.b16 %v5657_v15 }
 0x280   : > { %v5558_v41 = vpack.c.bf16 %v3390_v37, %v3390_v37  ;;  %v4369_v44 = vunpack.c.l.b16 %v5557_v59  ;;  %v5660_v14 = vpack.c.bf16 %v3492_v9, %v3492_v9  ;;  %v4470_v47 = vunpack.c.l.b16 %v5658_v53 }
 0x281   : > { %v4468_v5 = vunpack.c.l.b16 %v5656_v22  ;;  %v4471_v52 = vunpack.c.l.b16 %v5659_v61  ;;  %v4802_v55 = vrot.slane %v4469_v39, 6  ;;  %v2096_v26 = vcombine.high %v2095_v27, %v2095_v27 }
 0x282   : > { %v4370_v50 = vunpack.c.l.b16 %v5558_v41  ;;  %v4472_v25 = vunpack.c.l.b16 %v5660_v14  ;;  %v4804_v43 = vrot.slane %v4470_v47, 5  ;;  %v5164_v7 = vrot.slane %v2087_v17, 9 }
 0x283   : > { %v4800_v51 = vrot.slane %v4468_v5, 7  ;;  %v4806_v33 = vrot.slane %v4471_v52, 4  ;;  %v5165_v4 = vrot.slane %v2088_v48, 9  ;;  %v5166_v57 = vrot.slane %v2095_v27, 9 }
 0x284   : > { %v4632_v40 = vrot.slane %v4370_v50, 7  ;;  %v4808_v38 = vrot.slane %v4472_v25, 3  ;;  %v5167_v36 = vrot.slane %v2096_v26, 9  ;;  %v3391_v56 = vmax.f32 %v2087_v17, %v5164_v7 }
 0x285   : > { %v4801_v2 = vsel %vm4482_vm4, %v4800_v51, %v4467_v46  ;;  %v3392_v6 = vmax.f32 %v2088_v48, %v5165_v4  ;;  %v3393_v19 = vmax.f32 %v2095_v27, %v5166_v57  ;;  %v2495_v31 = vrot.slane %v1635_v54, %v6293_v23 }
 0x286   : > { %v4633_v28 = vsel %vm4482_vm4, %v4632_v40, %v4369_v44  ;;  %v4803_v62 = vsel %vm4485_vm5, %v4802_v55, %v4801_v2  ;;  %v3394_v35 = vmax.f32 %v2096_v26, %v5167_v36  ;;  %v5559_v24 = vpack.c.bf16 %v3391_v56, %v3391_v56 }
 0x287   : > { %v4805_v12 = vsel %vm4488_vm6, %v4804_v43, %v4803_v62  ;;  %v5560_v45 = vpack.c.bf16 %v3392_v6, %v3392_v6  ;;  %v5561_v63 = vpack.c.bf16 %v3393_v19, %v3393_v19  ;;  %v2496_v42 = vcombine.high %v2495_v31, %v2495_v31 }
 0x288   : > { %v4807_v18 = vsel %vm4491_vm7, %v4806_v33, %v4805_v12  ;;  %v5562_v17 = vpack.c.bf16 %v3394_v35, %v3394_v35  ;;  %v4371_v10 = vunpack.c.l.b16 %v5559_v24  ;;  %v2503_v48 = vrot.slane %v7286_v20, %v6293_v23 }
 0x289   : > { %v4372_v27 = vunpack.c.l.b16 %v5560_v45  ;;  %v4373_v54 = vunpack.c.l.b16 %v5561_v63  ;;  %v5266_v29 = vrot.slane %v2495_v31, 9  ;;  %v5267_v30 = vrot.slane %v2496_v42, 9 }
 0x28a   : > { %v4374_v11 = vunpack.c.l.b16 %v5562_v17  ;;  %v4634_v15 = vrot.slane %v4371_v10, 6  ;;  %v2504_v37 = vcombine.high %v2503_v48, %v2503_v48  ;;  %v5268_v59 = vrot.slane %v2503_v48, 9 }
 0x28b   : > { %v4636_v9 = vrot.slane %v4372_v27, 5  ;;  %v4638_v53 = vrot.slane %v4373_v54, 4  ;;  %v3493_v22 = vmax.f32 %v2495_v31, %v5266_v29  ;;  %v3494_v46 = vmax.f32 %v2496_v42, %v5267_v30 }
 0x28c   : > { %v4635_v61 = vsel %vm4485_vm5, %v4634_v15, %v4633_v28  ;;  %v4640_v39 = vrot.slane %v4374_v11, 3  ;;  %v5269_v41 = vrot.slane %v2504_v37, 9  ;;  %v3495_v44 = vmax.f32 %v2503_v48, %v5268_v59 }
 0x28d   : > { %v4637_v14 = vsel %vm4488_vm6, %v4636_v9, %v4635_v61  ;;  %v5661_v20 = vpack.c.bf16 %v3493_v22, %v3493_v22  ;;  %v5662_v47 = vpack.c.bf16 %v3494_v46, %v3494_v46  ;;  %v4809_v5 = vsel %vm4494_vm8, %v4808_v38, %v4807_v18 }
 0x28e   : > { %v4639_v52 = vsel %vm4491_vm7, %v4638_v53, %v4637_v14  ;;  %v3496_v55 = vmax.f32 %v2504_v37, %v5269_v41  ;;  %v5663_v26 = vpack.c.bf16 %v3495_v44, %v3495_v44  ;;  %v1392_v50 = vcombine.high %v7277_v32, %v7277_v32 }
 0x28f   : > { %v4473_v25 = vunpack.c.l.b16 %v5661_v20  ;;  %v4474_v43 = vunpack.c.l.b16 %v5662_v47  ;;  %v1586_v7 = vmax.f32 %v1388_v34, %v7277_v32  ;;  %v4641_v51 = vsel %vm4494_vm8, %v4640_v39, %v4639_v52 }
 0x290   : > { %v1389_v33 = vcombine.high %v7249_v16, %v7249_v16  ;;  %v5664_v4 = vpack.c.bf16 %v3496_v55, %v3496_v55  ;;  %v1587_v57 = vmax.f32 %v7249_v16, %v1392_v50  ;;  %v1146_v40 = vadd.f32 %v7224_v58, %v7045_v49 }
 0x291   : > { %v4810_v38 = vrot.slane %v4473_v25, 2  ;;  %v4812_v36 = vrot.slane %v4474_v43, 1  ;;  %v2103_v56 = vrot.slane %v1586_v7, %v6293_v23  ;;  %v951_v2 = vadd.f32 %v7224_v58, %v7072_v0 }
 0x292   : > { %v4475_v8 = vunpack.c.l.b16 %v5663_v26  ;;  %v4476_v34 = vunpack.c.l.b16 %v5664_v4  ;;  %v2111_v32 = vrot.slane %v1587_v57, %v6293_v23  ;;  %v1246_v6 = vmax.f32 %v1146_v40, 0.0 }
 0x293   : > { %v4811_v19 = vsel %vm4497_vm9, %v4810_v38, %v4809_v5  ;;  %v2104_v31 = vcombine.high %v2103_v56, %v2103_v56  ;;  %v5168_v16 = vrot.slane %v2103_v56, 9  ;;  %v1197_v28 = vmax.f32 %v951_v2, 0.0 }
 0x294   : > { %v4813_v49 = vsel %vm4500_vm10, %v4812_v36, %v4811_v19  ;;  %v4814_v62 = vrot.slane %v4476_v34, 7  ;;  %v2112_v35 = vcombine.high %v2111_v32, %v2111_v32  ;;  %v5170_v24 = vrot.slane %v2111_v32, 9 }
 0x295   : > { %v4850_v12 = vpack.c.b16 %v4813_v49, %v4813_v49  ;;  %v5169_v45 = vrot.slane %v2104_v31, 9  ;;  %v3395_v63 = vmax.f32 %v2103_v56, %v5168_v16  ;;  %v1442_v0 = vcombine.high %v1246_v6, %v1246_v6 }
 0x296   : > { %v5171_v42 = vrot.slane %v2112_v35, 9  ;;  %v3397_v18 = vmax.f32 %v2111_v32, %v5170_v24  ;;  %v1637_v17 = vmax.f32 %v1438_v21, %v1246_v6  ;;  %v954_v10 = vadd.f32 %v7224_v58, %v7079_v13 }
 0x297   : > { %4906 = vst [vmem:[%s6416_s7 + $0x68] sm:$0xf] %v4850_v12  ;;  %v3396_v48 = vmax.f32 %v2104_v31, %v5169_v45  ;;  %v5563_v27 = vpack.c.bf16 %v3395_v63, %v3395_v63  ;;  %v1638_v54 = vmax.f32 %v7262_v3, %v1442_v0  ;;  %v1393_v29 = vcombine.high %v1197_v28, %v1197_v28 }
 0x298   : > { %v4815_v30 = vsel %vm4482_vm4, %v4814_v62, %v4475_v8  ;;  %v3398_v11 = vmax.f32 %v2112_v35, %v5171_v42  ;;  %v2511_v15 = vrot.slane %v1637_v17, %v6293_v23  ;;  %v1588_v37 = vmax.f32 %v1389_v33, %v1197_v28 }
 0x299   : > { %v5564_v59 = vpack.c.bf16 %v3396_v48, %v3396_v48  ;;  %v4375_v9 = vunpack.c.l.b16 %v5563_v27  ;;  %v2519_v60 = vrot.slane %v1638_v54, %v6293_v23  ;;  %v1589_v21 = vmax.f32 %v7269_v1, %v1393_v29 }
 0x29a   : > { %v5565_v53 = vpack.c.bf16 %v3397_v18, %v3397_v18  ;;  %v5566_v13 = vpack.c.bf16 %v3398_v11, %v3398_v11  ;;  %v2512_v58 = vcombine.high %v2511_v15, %v2511_v15  ;;  %v5270_v22 = vrot.slane %v2511_v15, 9 }
 0x29b   : > { %v4376_v46 = vunpack.c.l.b16 %v5564_v59  ;;  %v4642_v61 = vrot.slane %v4375_v9, 2  ;;  %v2520_v3 = vcombine.high %v2519_v60, %v2519_v60  ;;  %v5272_v39 = vrot.slane %v2519_v60, 9  ;;  %v7438_v9 = vld [vmem:[#allocation3_spill] sm:$0xff] }
 0x29c   : > { %v4378_v41 = vunpack.c.l.b16 %v5566_v13  ;;  %v5271_v44 = vrot.slane %v2512_v58, 9  ;;  %v3497_v14 = vmax.f32 %v2511_v15, %v5270_v22  ;;  %v2119_v20 = vrot.slane %v1588_v37, %v6293_v23 }
 0x29d   : > { %v4643_v47 = vsel %vm4497_vm9, %v4642_v61, %v4641_v51  ;;  %v4644_v5 = vrot.slane %v4376_v46, 1  ;;  %v5273_v52 = vrot.slane %v2520_v3, 9  ;;  %v3499_v55 = vmax.f32 %v2519_v60, %v5272_v39  ;;  %v7441_v46 = vld [vmem:[#allocation5_spill] sm:$0xff] }
 0x29e   : > { %v4646_v26 = vrot.slane %v4378_v41, 7  ;;  %v3498_v1 = vmax.f32 %v2512_v58, %v5271_v44  ;;  %v5665_v50 = vpack.c.bf16 %v3497_v14, %v3497_v14  ;;  %v2120_v25 = vcombine.high %v2119_v20, %v2119_v20  ;;  %v7440_v58 = vld [vmem:[#allocation2_spill] sm:$0xff] }
 0x29f   : > { %v4645_v43 = vsel %vm4500_vm10, %v4644_v5, %v4643_v47  ;;  %v3500_v7 = vmax.f32 %v2520_v3, %v5273_v52  ;;  %v5667_v33 = vpack.c.bf16 %v3499_v55, %v3499_v55  ;;  %v2127_v4 = vrot.slane %v1589_v21, %v6293_v23  ;;  %v7442_v44 = vld [vmem:[#allocation6_spill] sm:$0xff]  ;;  %v7443_v52 = vld [vmem:[#allocation7_spill] sm:$0xff] }
 0x2a0   : > { %v4377_v57 = vunpack.c.l.b16 %v5565_v53  ;;  %v4836_v40 = vpack.c.b16 %v4645_v43, %v4645_v43  ;;  %v5666_v38 = vpack.c.bf16 %v3498_v1, %v3498_v1  ;;  %v4477_v36 = vunpack.c.l.b16 %v5665_v50 }
 0x2a1   : > { %v5668_v56 = vpack.c.bf16 %v3500_v7, %v3500_v7  ;;  %v4479_v51 = vunpack.c.l.b16 %v5667_v33  ;;  %v2128_v2 = vcombine.high %v2127_v4, %v2127_v4  ;;  %v5172_v8 = vrot.slane %v2119_v20, 9 }
 0x2a2   : > { %4892 = vst [vmem:[%s6416_s7 + $0x30] sm:$0xf] %v4836_v40  ;;  %v4478_v34 = vunpack.c.l.b16 %v5666_v38  ;;  %v4816_v32 = vrot.slane %v4477_v36, 6  ;;  %v5173_v6 = vrot.slane %v2120_v25, 9  ;;  %v5174_v19 = vrot.slane %v2127_v4, 9 }
 0x2a3   : > { %v4647_v31 = vsel %vm4482_vm4, %v4646_v26, %v4377_v57  ;;  %v4480_v16 = vunpack.c.l.b16 %v5668_v56  ;;  %v5175_v28 = vrot.slane %v2128_v2, 9  ;;  %v3399_v49 = vmax.f32 %v2119_v20, %v5172_v8 }
 0x2a4   : > { %v4817_v62 = vsel %vm4485_vm5, %v4816_v32, %v4815_v30  ;;  %v4818_v35 = vrot.slane %v4478_v34, 5  ;;  %v3400_v24 = vmax.f32 %v2120_v25, %v5173_v6  ;;  %v3401_v12 = vmax.f32 %v2127_v4, %v5174_v19  ;;  %v7444_v25 = vld [vmem:[#allocation4_spill] sm:$0xff] }
 0x2a5   : > { %v4820_v45 = vrot.slane %v4479_v51, 4  ;;  %v3402_v63 = vmax.f32 %v2128_v2, %v5175_v28  ;;  %v5567_v0 = vpack.c.bf16 %v3399_v49, %v3399_v49  ;;  %v1198_v42 = vmax.f32 %v954_v10, 0.0 }
 0x2a6   : > { %v4819_v18 = vsel %vm4488_vm6, %v4818_v35, %v4817_v62  ;;  %v4822_v17 = vrot.slane %v4480_v16, 3  ;;  %v5568_v48 = vpack.c.bf16 %v3400_v24, %v3400_v24  ;;  %v5569_v27 = vpack.c.bf16 %v3401_v12, %v3401_v12 }
 0x2a7   : > { %v4821_v54 = vsel %vm4491_vm7, %v4820_v45, %v4819_v18  ;;  %v5570_v29 = vpack.c.bf16 %v3402_v63, %v3402_v63  ;;  %v4379_v11 = vunpack.c.l.b16 %v5567_v0  ;;  %v1394_v15 = vcombine.high %v1198_v42, %v1198_v42 }
 0x2a8   : > { %v4823_v30 = vsel %vm4494_vm8, %v4822_v17, %v4821_v54  ;;  %v4380_v37 = vunpack.c.l.b16 %v5568_v48  ;;  %v4381_v59 = vunpack.c.l.b16 %v5569_v27  ;;  %v7439_v60 = vcombine.high %v7438_v9, %v7438_v9 }
 0x2a9   : > { %v4851_v10 = vpack.c.b16 %v4823_v30, %v4823_v30  ;;  %v4382_v53 = vunpack.c.l.b16 %v5570_v29  ;;  %v4648_v13 = vrot.slane %v4379_v11, 6  ;;  %v1591_v22 = vmax.f32 %v1394_v15, %v7440_v58 }
 0x2aa   : > { %v1590_v21 = vmax.f32 %v1198_v42, %v7439_v60  ;;  %v5181_v61 = vrot.slane %v7441_v46, 9  ;;  %v4650_v3 = vrot.slane %v4380_v37, 5  ;;  %v4652_v39 = vrot.slane %v4381_v59, 4 }
 0x2ab   : > { %v5182_v14 = vrot.slane %v7442_v44, 9  ;;  %4907 = vst [vmem:[%s6416_s7 + $0x6c] sm:$0x7] %v4851_v10  ;;  %v4649_v20 = vsel %vm4485_vm5, %v4648_v13, %v4647_v31  ;;  %v4654_v47 = vrot.slane %v4382_v53, 3  ;;  %v2143_v5 = vrot.slane %v1591_v22, %v6293_v23 }
 0x2ac   : > { %v2135_v41 = vrot.slane %v1590_v21, %v6293_v23  ;;  %v5183_v55 = vrot.slane %v7443_v52, 9  ;;  %v4651_v26 = vsel %vm4488_vm6, %v4650_v3, %v4649_v20  ;;  %v7445_v43 = vrot.slane %v7444_v25, 9 }
 0x2ad   : > { %v4653_v33 = vsel %vm4491_vm7, %v4652_v39, %v4651_v26  ;;  %v2144_v4 = vcombine.high %v2143_v5, %v2143_v5  ;;  %v5178_v57 = vrot.slane %v2143_v5, 9  ;;  %v3408_v40 = vmax.f32 %v7441_v46, %v5181_v61 }
 0x2ae   : > { %v2136_v1 = vcombine.high %v2135_v41, %v2135_v41  ;;  %v5176_v50 = vrot.slane %v2135_v41, 9  ;;  %v3407_v7 = vmax.f32 %v7444_v25, %v7445_v43  ;;  %v4655_v38 = vsel %vm4494_vm8, %v4654_v47, %v4653_v33 }
 0x2af   : > { %v3409_v56 = vmax.f32 %v7442_v44, %v5182_v14  ;;  %v4837_v51 = vpack.c.b16 %v4655_v38, %v4655_v38  ;;  %v5179_v2 = vrot.slane %v2144_v4, 9  ;;  %v3405_v8 = vmax.f32 %v2143_v5, %v5178_v57 }
 0x2b0   : > { %v5177_v23 = vrot.slane %v2136_v1, 9  ;;  %v3403_v36 = vmax.f32 %v2135_v41, %v5176_v50  ;;  %v3410_v34 = vmax.f32 %v7443_v52, %v5183_v55  ;;  %v5575_v6 = vpack.c.bf16 %v3407_v7, %v3407_v7 }
 0x2b1   : > { %4893 = vst [vmem:[%s6416_s7 + $0x34] sm:$0x7] %v4837_v51  ;;  %v3406_v19 = vmax.f32 %v2144_v4, %v5179_v2  ;;  %v5573_v31 = vpack.c.bf16 %v3405_v8, %v3405_v8  ;;  %v5576_v16 = vpack.c.bf16 %v3408_v40, %v3408_v40  ;;  %v5577_v62 = vpack.c.bf16 %v3409_v56, %v3409_v56 }
 0x2b2   : > { %v3404_v32 = vmax.f32 %v2136_v1, %v5177_v23  ;;  %v5571_v28 = vpack.c.bf16 %v3403_v36, %v3403_v36  ;;  %v5578_v12 = vpack.c.bf16 %v3410_v34, %v3410_v34  ;;  %v4387_v63 = vunpack.c.l.b16 %v5575_v6 }
 0x2b3   : > { %v5574_v35 = vpack.c.bf16 %v3406_v19, %v3406_v19  ;;  %v4385_v24 = vunpack.c.l.b16 %v5573_v31  ;;  %v4388_v18 = vunpack.c.l.b16 %v5576_v16  ;;  %v4389_v27 = vunpack.c.l.b16 %v5577_v62 }
 0x2b4   : > { %v5572_v49 = vpack.c.bf16 %v3404_v32, %v3404_v32  ;;  %v4383_v17 = vunpack.c.l.b16 %v5571_v28  ;;  %v4390_v29 = vunpack.c.l.b16 %v5578_v12  ;;  %v4662_v15 = vrot.slane %v4387_v63, 4 }
 0x2b5   : > { %v4386_v0 = vunpack.c.l.b16 %v5574_v35  ;;  %v4658_v42 = vrot.slane %v4385_v24, 6  ;;  %v4664_v37 = vrot.slane %v4388_v18, 3  ;;  %v4666_v9 = vrot.slane %v4389_v27, 2 }
 0x2b6   : > { %v4384_v45 = vunpack.c.l.b16 %v5572_v49  ;;  %v4668_v21 = vrot.slane %v4390_v29, 1 }
 0x2b7   : > { %v4660_v54 = vrot.slane %v4386_v0, 5 }
 0x2b8   : > { %v4656_v48 = vrot.slane %v4384_v45, 7 }
 0x2ba   : > { %v4657_v11 = vsel %vm4482_vm4, %v4656_v48, %v4383_v17 }
 0x2bb   : > { %v4659_v30 = vsel %vm4485_vm5, %v4658_v42, %v4657_v11 }
 0x2bc   : > { %v4661_v59 = vsel %vm4488_vm6, %v4660_v54, %v4659_v30 }
 0x2bd   : > { %v4663_v60 = vsel %vm4491_vm7, %v4662_v15, %v4661_v59 }
 0x2be   : > { %v4665_v10 = vsel %vm4494_vm8, %v4664_v37, %v4663_v60 }
 0x2bf   : > { %v4667_v53 = vsel %vm4497_vm9, %v4666_v9, %v4665_v10 }
 0x2c0   : > { %v4669_v13 = vsel %vm4500_vm10, %v4668_v21, %v4667_v53 }
 0x2c1   : > { %v4838_v58 = vpack.c.b16 %v4669_v13, %v4669_v13 }
 0x2c3   : > { %4894 = vst [vmem:[%s6416_s7 + $0x38] sm:$0xf] %v4838_v58 }
 0x2c4 PF: > { %s13_s12 = sadd.s32 1, %s6015_s12  }
 0x2c5   : > { %p10_p4 = scmp.ge.s32.totalorder %s13_s12, 4  }
 0x2c7   :  { %12 = sbr.rel (!%p10_p4) target bundleno = 1 (0x1), region = 62 }

// kernel: cnn_cifar_forward.4
= control target key start
LH: loop header
LB: loop body
LE: loop exit
PB: predicated region body
PF: predicated region fallthrough
CT: control target
= control target key end

     0   :  { %s1522_s12 = smov 0   ;;  %s1815_s0 = inlined_call_operand.vmem [shape: bf16[10,20,150], index: 0, kind: input, shape index: {}]   ;;  %s1816_s1 = inlined_call_operand.vmem [shape: bf16[150,128], index: 1, kind: input, shape index: {}]   ;;  %s1817_s2 = inlined_call_operand.vmem [shape: f32[1,128], index: 2, kind: input, shape index: {}]   ;;  %s1818_s3 = inlined_call_operand.vmem [shape: bf16[10,5,128], index: 3, kind: output, shape index: {}]  }
   0x1 LB: > { %s1334_s13 = sadd.s32 4294967295, %s1498_s12   ;;  %p1338_p0 = scmp.ge.s32.totalorder %s1498_s12, 1  ;;  %s1498_s12 = sphi %s1522_s12, %s13_s12  }
   0x2   : > { %p139_p1 = scmp.lt.s32.totalorder %s1498_s12, 3 }
   0x4   : > { %p140_p2 = pnand %p1338_p0, %p139_p1 }
   0x5   : > { %v1482_v0 = vld [vmem:[%s1816_s1] sm:$0xff] (!%p140_p2)   ;;  %v1500_v1 = vmov (!%p140_p2), 0   ;;  %v1483_v2 = vld [vmem:[%s1816_s1 + $0x8] sm:$0xff] (!%p140_p2)   ;;  %s164_s18 = smul.u32 (!%p140_p2), 5, %s1334_s13  ;;  %v1484_v3 = vld [vmem:[%s1816_s1 + $0x10] sm:$0xff] (!%p140_p2)   ;;  %v354_v4 = vlaneseq (!%p140_p2)  ;;  %vm529_vm0 = vcmask (!%p140_p2), 179200  }
   0x6   : > { %143 = sbr.rel (%p140_p2) target bundleno = 335 (0x14f), region = 32  ;;  %555 = vmatprep.subr.bf16.mxu0 (!%p140_p2), %v1500_v1  ;;  %1451 = vmatprep.subr.bf16.mxu1 (!%p140_p2), %v1500_v1  ;;  %v1485_v5 = vld [vmem:[%s1816_s1 + $0x18] sm:$0xff] (!%p140_p2)   ;;  %v1501_v7 = vmov (!%p140_p2), 1983009808   ;;  %v1486_v16 = vld [vmem:[%s1816_s1 + $0x20] sm:$0xff] (!%p140_p2)   ;;  %v1487_v27 = vld [vmem:[%s1816_s1 + $0x28] sm:$0xff] (!%p140_p2)  }
   0x7   : > { %556 = vmatpush1.bf16.msra.mxu0 (!%p140_p2), %v1482_v0  ;;  %1461 = vmatpush1.bf16.msra.mxu1 (!%p140_p2), %v1482_v0  ;;  %p165_p3 = scmp.lt.s32.totalorder (!%p140_p2), %s164_s18, 9  ;;  %v352_v8 = vunpack.c.l.s4 (!%p140_p2), %v1501_v7  ;;  %v355_v9 = vshrl.u32 (!%p140_p2), %v354_v4, 7  ;;  %v1488_v32 = vld [vmem:[%s1816_s1 + $0x30] sm:$0xff] (!%p140_p2)   ;;  %v1489_v38 = vld [vmem:[%s1816_s1 + $0x38] sm:$0xff] (!%p140_p2)   ;;  %v1490_v44 = vld [vmem:[%s1816_s1 + $0x40] sm:$0xff] (!%p140_p2)   ;;  %vm551_vm1 = vcmask (!%p140_p2), 1042432  }
   0x8   : > { %557 = vmatprep.subr.bf16.mxu0 (!%p140_p2), %v1500_v1  ;;  %1452 = vmatprep.subr.bf16.mxu1 (!%p140_p2), %v1500_v1  ;;  %v1491_v47 = vld [vmem:[%s1816_s1 + $0x48] ss:$0 sps:$4 sm:$0x77] (!%p140_p2)   ;;  %vm1261_vm2 = vsmask.f32 (!%p140_p2), 2304  ;;  %vm1207_vm3 = vcmask (!%p140_p2), 1041409  }
   0x9   : > { %v353_v14 = vunpack.c.0.s8 (!%p140_p2), %v352_v8  ;;  %v553_v55 = vsel (!%p140_p2), %vm551_vm1, %v1491_v47, 0  ;;  %vm1210_vm4 = vcmask (!%p140_p2), 1042434   ;;  %vm1213_vm5 = vcmask (!%p140_p2), 1043459   ;;  %vm1726_vm7 = vmand (!%p140_p2), %vm551_vm1, %vm1261_vm2 }
   0xa   : > { %vm1216_vm6 = vcmask (!%p140_p2), 1044484  }
   0xb   : > { %558 = vmatpush1.bf16.msra.mxu0 (!%p140_p2), %v1483_v2  ;;  %1462 = vmatpush1.bf16.msra.mxu1 (!%p140_p2), %v1483_v2  ;;  %v1571_v20 = vsub.s32 (!%p140_p2), %v353_v14, %v355_v9 }
   0xc   : > { %559 = vmatprep.subr.bf16.mxu0 (!%p140_p2), %v1500_v1  ;;  %1453 = vmatprep.subr.bf16.mxu1 (!%p140_p2), %v1500_v1 }
   0xd   : > { %s1822_s18 = smov (!%p165_p3, %s164_s18), 9 }
   0xe   : > { %s1471_s21 = smul.u32 24, %s1822_s18  ;;  %s1340_s15 = sshll.u32 %s1822_s18, 2 }
   0xf   : > { %560 = vmatpush1.bf16.msra.mxu0 %v1484_v3  ;;  %1463 = vmatpush1.bf16.msra.mxu1 %v1484_v3  ;;  %s1708_s18 = scalar_lea.vmem %s1818_s3, %s1340_s15 }
  0x10   : > { %s1554_s26 = scalar_lea.vmem %s1815_s0, %s1471_s21  ;;  %561 = vmatprep.subr.bf16.mxu0 %v1500_v1  ;;  %1454 = vmatprep.subr.bf16.mxu1 %v1500_v1 }
  0x11   : > { %v1341_v6 = vld.sshfl [vmem:[%s1554_s26] sm:$0xff pattern:$0x76325410]  ;;  %v1342_v10 = vld.sshfl [vmem:[%s1554_s26 + $0x8] sm:$0xff pattern:$0x76325410] }
  0x12   : > { %v215_v11 = vcombine.high %v1341_v6, %v1341_v6  ;;  %v1561_v12 = vld.sshfl [vmem:[%s1554_s26 + $0x48] sm:$0xff pattern:$0x76325410]  ;;  %v223_v13 = vcombine.high %v1342_v10, %v1342_v10  ;;  %v1351_v18 = vld.sshfl [vmem:[%s1554_s26 + $0x50] sm:$0xff pattern:$0x76325410] }
  0x13   : > { %v284_v15 = vcombine.high %v1561_v12, %v1561_v12  ;;  %562 = vmatpush1.bf16.msra.mxu0 %v1485_v5  ;;  %1464 = vmatpush1.bf16.msra.mxu1 %v1485_v5  ;;  %v1352_v21 = vld.sshfl [vmem:[%s1554_s26 + $0x58] sm:$0xf pattern:$0x76325410]  ;;  %v292_v22 = vcombine.high %v1351_v18, %v1351_v18 }
  0x14   : > { %v349_v17 = vcombine.low %v1341_v6, %v215_v11  ;;  %563 = vmatprep.subr.bf16.mxu0 %v1500_v1  ;;  %1455 = vmatprep.subr.bf16.mxu1 %v1500_v1  ;;  %v350_v19 = vcombine.low %v1342_v10, %v223_v13  ;;  %v1344_v33 = vld.sshfl [vmem:[%s1554_s26 + $0x18] sm:$0xff pattern:$0x76325410]  ;;  %v1353_v34 = vld.sshfl [vmem:[%s1554_s26 + $0x60] sm:$0xff pattern:$0x76325410] }
  0x15   : > { %v421_v23 = vcombine.low %v284_v15, %v1351_v18  ;;  %v422_v26 = vcombine.low %v292_v22, %v1352_v21  ;;  %v1354_v35 = vld.sshfl [vmem:[%s1554_s26 + $0x68] sm:$0xff pattern:$0x76325410]  ;;  %v238_v37 = vcombine.high %v1344_v33, %v1344_v33  ;;  %v1345_v39 = vld.sshfl [vmem:[%s1554_s26 + $0x20] sm:$0xff pattern:$0x76325410]  ;;  %v307_v40 = vcombine.high %v1353_v34, %v1353_v34 }
  0x16   : > { %v1575_v24 = vrot.slane %v349_v17, %v1571_v20  ;;  %v1578_v25 = vrot.slane %v350_v19, %v1571_v20  ;;  %v1343_v36 = vld.sshfl [vmem:[%s1554_s26 + $0x10] sm:$0xf pattern:$0x76325410]  ;;  %v315_v41 = vcombine.high %v1354_v35, %v1354_v35  ;;  %v246_v51 = vcombine.high %v1345_v39, %v1345_v39  ;;  %v1642_v17 = vld [vmem:[%s1817_s2] ss:$0 sm:$0xff] }
  0x17   : > { %564 = vmatpush1.bf16.msra.mxu0 %v1486_v16  ;;  %1465 = vmatpush1.bf16.msra.mxu1 %v1486_v16  ;;  %v429_v28 = vrot.slane %v421_v23, %v1571_v20  ;;  %v436_v30 = vrot.slane %v422_v26, %v1571_v20  ;;  %v367_v42 = vcombine.low %v1343_v36, %v1344_v33  ;;  %v1347_v48 = vld.sshfl [vmem:[%s1554_s26 + $0x30] sm:$0xff pattern:$0x76325410]  ;;  %v1348_v0 = vld.sshfl [vmem:[%s1554_s26 + $0x38] sm:$0xff pattern:$0x76325410] }
  0x18   : > { %565 = vmatprep.subr.bf16.mxu0 %v1500_v1  ;;  %1456 = vmatprep.subr.bf16.mxu1 %v1500_v1  ;;  %v366_v29 = vcombine.high %v1575_v24, %v1578_v25  ;;  %v368_v43 = vcombine.low %v238_v37, %v1345_v39  ;;  %v439_v45 = vcombine.low %v1353_v34, %v307_v40  ;;  %v1346_v56 = vld.sshfl [vmem:[%s1554_s26 + $0x28] sm:$0xf pattern:$0x76325410] }
  0x19   : > { %v438_v31 = vcombine.high %v429_v28, %v436_v30  ;;  %v440_v46 = vcombine.low %v1354_v35, %v315_v41  ;;  %v375_v49 = vrot.slane %v367_v42, %v1571_v20  ;;  %v261_v54 = vcombine.high %v1347_v48, %v1347_v48  ;;  %v1355_v63 = vld.sshfl [vmem:[%s1554_s26 + $0x70] sm:$0xf pattern:$0x76325410] }
  0x1a   : > { %1367 = vmatprep.mubr.msk.bf16.mxu0 %vm529_vm0, %v366_v29  ;;  %v382_v50 = vrot.slane %v368_v43, %v1571_v20  ;;  %v447_v52 = vrot.slane %v439_v45, %v1571_v20  ;;  %v365_v57 = vcombine.low %v1575_v24, %v1578_v25  ;;  %v437_v58 = vcombine.low %v429_v28, %v436_v30  ;;  %v1349_v5 = vld.sshfl [vmem:[%s1554_s26 + $0x40] sm:$0xf pattern:$0x76325410] }
  0x1b   : > { %566 = vmatpush1.bf16.msra.mxu0 %v1487_v27  ;;  %1466 = vmatpush1.bf16.msra.mxu1 %v1487_v27  ;;  %v454_v53 = vrot.slane %v440_v46, %v1571_v20  ;;  %v385_v61 = vcombine.low %v246_v51, %v1346_v56  ;;  %v386_v62 = vcombine.low %v1347_v48, %v261_v54 }
  0x1c   : > { %567 = vmatprep.subr.bf16.mxu0 %v1500_v1  ;;  %1457 = vmatprep.subr.bf16.mxu1 %v1500_v1  ;;  %v384_v59 = vcombine.high %v375_v49, %v382_v50  ;;  %v463_v2 = vrot.slane %v1355_v63, %v1571_v20  ;;  %v269_v4 = vcombine.high %v1348_v0, %v1348_v0 }
  0x1d   : > { %1371 = vmatprep.mubr.msk.bf16.mxu1 %vm529_vm0, %v438_v31  ;;  %v456_v60 = vcombine.high %v447_v52, %v454_v53  ;;  %v400_v3 = vrot.slane %v386_v62, %v1571_v20  ;;  %v383_v6 = vcombine.low %v375_v49, %v382_v50  ;;  %v455_v7 = vcombine.low %v447_v52, %v454_v53 }
  0x1e   : > { %v404_v8 = vcombine.low %v1349_v5, %v1561_v12  ;;  %v464_v10 = vcombine.high %v463_v2, %v463_v2  ;;  %v403_v11 = vcombine.low %v1348_v0, %v269_v4 }
  0x1f   : > { %568 = vmatpush1.bf16.msra.mxu0 %v1488_v32  ;;  %1467 = vmatpush1.bf16.msra.mxu1 %v1488_v32 }
  0x20   : > { %569 = vmatprep.subr.bf16.mxu0 %v1500_v1  ;;  %1458 = vmatprep.subr.bf16.mxu1 %v1500_v1  ;;  %v411_v13 = vrot.slane %v403_v11, %v1571_v20  ;;  %v418_v14 = vrot.slane %v404_v8, %v1571_v20 }
  0x22   : > { %v420_v16 = vcombine.high %v411_v13, %v418_v14  ;;  %v419_v12 = vcombine.low %v411_v13, %v418_v14 }
  0x23   : > { %570 = vmatpush1.bf16.msra.mxu0 %v1489_v38  ;;  %1468 = vmatpush1.bf16.msra.mxu1 %v1489_v38 }
  0x24   : > { %571 = vmatprep.subr.bf16.mxu0 %v1500_v1  ;;  %1459 = vmatprep.subr.bf16.mxu1 %v1500_v1 }
  0x27   : > { %572 = vmatpush1.bf16.msra.mxu0 %v1490_v44  ;;  %1469 = vmatpush1.bf16.msra.mxu1 %v1490_v44 }
  0x28   : > { %573 = vmatprep.subr.bf16.mxu0 %v1500_v1  ;;  %1460 = vmatprep.subr.bf16.mxu1 %v1500_v1  ;;  %v393_v1 = vrot.slane %v385_v61, %v1571_v20 }
  0x2a   : > { %v402_v9 = vcombine.high %v393_v1, %v400_v3  ;;  %v401_v15 = vcombine.low %v393_v1, %v400_v3 }
  0x2b   : > { %574 = vmatpush1.bf16.msra.mxu0 %v553_v55  ;;  %1470 = vmatpush1.bf16.msra.mxu1 %v553_v55 }
  0x2e   : > { %588 = vmatmul.mubr.bf16.vlgmr.msra.gmra.mrb[0].mxu0 %v365_v57  ;;  %620 = vmatmul.mubr.bf16.vlgmr.msra.gmra.mrb[0].mxu1 %v437_v58 }
  0x2f   : > { %1368 = vmatprep.mubr.msk.bf16.mxu0 %vm529_vm0, %v384_v59  ;;  %1372 = vmatprep.mubr.msk.bf16.mxu1 %vm529_vm0, %v456_v60 }
  0x36   : > { %596 = vmatmul.mubr.bf16.gmra.mrb[4].mxu0 %v383_v6  ;;  %628 = vmatmul.mubr.bf16.gmra.mrb[4].mxu1 %v455_v7 }
  0x37   : > { %1369 = vmatprep.mubr.msk.bf16.mxu0 %vm529_vm0, %v402_v9  ;;  %1373 = vmatprep.mubr.msk.bf16.mxu1 %vm529_vm0, %v464_v10 }
  0x3e   : > { %604 = vmatmul.mubr.bf16.gmra.mrb[8].mxu0 %v401_v15  ;;  %636 = vmatmul.mubr.bf16.gmra.mrb[8].mxu1 %v463_v2 }
  0x3f   : > { %1370 = vmatprep.mubr.msk.bf16.mxu0 %vm529_vm0, %v420_v16 }
  0x46   : > { %612 = vmatmul.mubr.bf16.gmra.mrb[12].mxu0 %v419_v12 }
 0x101   : > { %v589_v18 = vpop.f32.mrb[0].mxu0  ;;  %v621_v19 = vpop.f32.mrb[0].mxu1 }
 0x102   : > { %v590_v21 = vadd.f32 %v1642_v17, %v589_v18  ;;  %v591_v22 = vpop.f32.mrb[1].mxu0  ;;  %v622_v23 = vadd.f32 %v1642_v17, %v621_v19  ;;  %v623_v24 = vpop.f32.mrb[1].mxu1 }
 0x103   : > { %v592_v25 = vpop.f32.mrb[2].mxu0  ;;  %v624_v26 = vpop.f32.mrb[2].mxu1 }
 0x104   : > { %v643_v27 = vmax.f32 %v590_v21, 0.0  ;;  %v593_v28 = vadd.f32 %v1642_v17, %v592_v25  ;;  %v594_v29 = vpop.f32.mrb[3].mxu0  ;;  %v651_v30 = vmax.f32 %v622_v23, 0.0  ;;  %v625_v31 = vadd.f32 %v1642_v17, %v624_v26  ;;  %v626_v32 = vpop.f32.mrb[3].mxu1 }
 0x106   : > { %v676_v33 = vrot.slane %v643_v27, %v1571_v20  ;;  %v644_v34 = vmax.f32 %v593_v28, 0.0  ;;  %v669_v35 = vcombine.high %v643_v27, %v643_v27  ;;  %v805_v36 = vcombine.high %v651_v30, %v651_v30 }
 0x107   : > { %v812_v37 = vrot.slane %v651_v30, %v1571_v20  ;;  %v652_v38 = vmax.f32 %v625_v31, 0.0 }
 0x108   : > { %v686_v39 = vcombine.high %v644_v34, %v644_v34  ;;  %v693_v40 = vrot.slane %v644_v34, %v1571_v20  ;;  %v684_v46 = vcombine.high %v676_v33, %v676_v33  ;;  %v683_v52 = vrot.slane %v669_v35, %v1571_v20 }
 0x109   : > { %v597_v41 = vpop.f32.mrb[4].mxu0  ;;  %v820_v42 = vcombine.high %v812_v37, %v812_v37  ;;  %v822_v43 = vcombine.high %v652_v38, %v652_v38  ;;  %v1652_v44 = vrot.slane %v652_v38, %v1571_v20  ;;  %v1654_v45 = vpop.f32.mrb[4].mxu1  ;;  %v1660_v53 = vrot.slane %v805_v36, %v1571_v20 }
 0x10a   : > { %v700_v47 = vrot.slane %v686_v39, %v1571_v20  ;;  %v701_v48 = vcombine.high %v693_v40, %v693_v40  ;;  %v598_v49 = vadd.f32 %v1642_v17, %v597_v41  ;;  %v599_v50 = vpop.f32.mrb[5].mxu0  ;;  %v631_v51 = vpop.f32.mrb[5].mxu1  ;;  %v685_v7 = vcombine.high %v683_v52, %v683_v52 }
 0x10b   : > { %v600_v54 = vpop.f32.mrb[6].mxu0  ;;  %v836_v55 = vrot.slane %v822_v43, %v1571_v20  ;;  %v837_v56 = vcombine.high %v1652_v44, %v1652_v44  ;;  %v1665_v57 = vpop.f32.mrb[6].mxu1  ;;  %v630_v43 = vadd.f32 %v1642_v17, %v1654_v45 }
 0x10c   : > { %v702_v58 = vcombine.high %v700_v47, %v700_v47  ;;  %v931_v59 = vmax.f32 %v676_v33, %v701_v48  ;;  %v932_v60 = vmax.f32 %v684_v46, %v700_v47  ;;  %v645_v61 = vmax.f32 %v598_v49, 0.0  ;;  %v602_v62 = vpop.f32.mrb[7].mxu0  ;;  %v634_v63 = vpop.f32.mrb[7].mxu1 }
 0x10d   : > { %v601_v0 = vadd.f32 %v1642_v17, %v600_v54  ;;  %v838_v2 = vcombine.high %v836_v55, %v836_v55  ;;  %v1668_v1 = vmax.f32 %v812_v37, %v837_v56  ;;  %v1670_v3 = vmax.f32 %v820_v42, %v836_v55 }
 0x10e   : > { %v933_v4 = vmax.f32 %v683_v52, %v702_v58  ;;  %v1374_v5 = vrot.slane %v931_v59, 9  ;;  %v1375_v6 = vrot.slane %v932_v60, 9  ;;  %v710_v8 = vrot.slane %v645_v61, %v1571_v20 }
 0x10f   : > { %v646_v9 = vmax.f32 %v601_v0, 0.0  ;;  %v1674_v10 = vmax.f32 %v1660_v53, %v838_v2  ;;  %v703_v15 = vcombine.high %v645_v61, %v645_v61  ;;  %v1391_v52 = vrot.slane %v1668_v1, 9 }
 0x110   : > { %v1376_v11 = vrot.slane %v933_v4, 9  ;;  %v1056_v13 = vmax.f32 %v931_v59, %v1374_v5  ;;  %v1057_v14 = vmax.f32 %v932_v60, %v1375_v6  ;;  %v718_v16 = vcombine.high %v710_v8, %v710_v8 }
 0x111   : > { %v934_v12 = vmax.f32 %v685_v7, %v710_v8  ;;  %v720_v18 = vcombine.high %v646_v9, %v646_v9  ;;  %v1676_v19 = vpop.f32.mrb[8].mxu0  ;;  %v1678_v21 = vpop.f32.mrb[8].mxu1  ;;  %v1684_v36 = vrot.slane %v703_v15, %v1571_v20  ;;  %v1691_v48 = vrot.slane %v646_v9, %v1571_v20 }
 0x112   : > { %v1058_v22 = vmax.f32 %v933_v4, %v1376_v11  ;;  %v1426_v23 = vpack.c.bf16 %v1056_v13, %v1056_v13  ;;  %v1427_v24 = vpack.c.bf16 %v1057_v14, %v1057_v14  ;;  %v607_v25 = vpop.f32.mrb[9].mxu0  ;;  %v639_v26 = vpop.f32.mrb[9].mxu1  ;;  %v935_v27 = vmax.f32 %v693_v40, %v718_v16 }
 0x113   : > { %v1377_v28 = vrot.slane %v934_v12, 9  ;;  %v1681_v29 = vrot.slane %v720_v18, %v1571_v20  ;;  %v608_v30 = vpop.f32.mrb[10].mxu0  ;;  %v640_v31 = vpop.f32.mrb[10].mxu1  ;;  %v821_v59 = vcombine.high %v1660_v53, %v1660_v53  ;;  %v1392_v60 = vrot.slane %v1670_v3, 9  ;;  %v1263_v25 = vld [vmem:[%s1708_s18] sm:$0x7] }
 0x114   : > { %v1428_v32 = vpack.c.bf16 %v1058_v22, %v1058_v22  ;;  %v1182_v33 = vunpack.c.l.b16 %v1427_v24  ;;  %v610_v34 = vpop.f32.mrb[11].mxu0  ;;  %v641_v35 = vpop.f32.mrb[11].mxu1  ;;  %v1378_v37 = vrot.slane %v935_v27, 9  ;;  %v1181_v40 = vunpack.c.l.b16 %v1426_v23 }
 0x115   : > { %v1059_v38 = vmax.f32 %v934_v12, %v1377_v28  ;;  %v736_v39 = vcombine.high %v1681_v29, %v1681_v29  ;;  %v653_v61 = vmax.f32 %v630_v43, 0.0  ;;  %v735_v2 = vcombine.high %v1691_v48, %v1691_v48 }
 0x116   : > { %v1183_v41 = vunpack.c.l.b16 %v1428_v32  ;;  %v1206_v42 = vrot.slane %v1182_v33, 7  ;;  %v1060_v46 = vmax.f32 %v935_v27, %v1378_v37  ;;  %v1393_v6 = vrot.slane %v1674_v10, 9 }
 0x117   : > { %v1429_v47 = vpack.c.bf16 %v1059_v38, %v1059_v38  ;;  %v936_v49 = vmax.f32 %v1684_v36, %v736_v39  ;;  %v1712_v7 = vmax.f32 %v1668_v1, %v1391_v52  ;;  %v839_v8 = vcombine.high %v653_v61, %v653_v61 }
 0x118   : > { %v1208_v50 = vsel %vm1207_vm3, %v1206_v42, %v1181_v40  ;;  %v1209_v51 = vrot.slane %v1183_v41, 6  ;;  %v1430_v54 = vpack.c.bf16 %v1060_v46, %v1060_v46  ;;  %v846_v9 = vrot.slane %v653_v61, %v1571_v20 }
 0x119   : > { %v1184_v55 = vunpack.c.l.b16 %v1429_v47  ;;  %v1379_v56 = vrot.slane %v936_v49, 9  ;;  %v613_v58 = vpop.f32.mrb[12].mxu0  ;;  %v633_v16 = vadd.f32 %v1642_v17, %v1665_v57  ;;  %v1719_v12 = vmax.f32 %v1670_v3, %v1392_v60 }
 0x11a   : > { %v1211_v45 = vsel %vm1210_vm4, %v1209_v51, %v1208_v50  ;;  %v615_v62 = vpop.f32.mrb[13].mxu0  ;;  %v1185_v63 = vunpack.c.l.b16 %v1430_v54  ;;  %v853_v18 = vrot.slane %v839_v8, %v1571_v20  ;;  %v854_v22 = vcombine.high %v846_v9, %v846_v9 }
 0x11b   : > { %v1212_v0 = vrot.slane %v1184_v55, 5  ;;  %v1061_v4 = vmax.f32 %v936_v49, %v1379_v56  ;;  %v1703_v5 = vpop.f32.mrb[14].mxu0  ;;  %v606_v1 = vadd.f32 %v1642_v17, %v1676_v19  ;;  %v654_v57 = vmax.f32 %v633_v16, 0.0 }
 0x11c   : > { %v618_v11 = vpop.f32.mrb[15].mxu0  ;;  %v1215_v14 = vrot.slane %v1185_v63, 4  ;;  %v719_v3 = vcombine.high %v1684_v36, %v1684_v36  ;;  %v609_v26 = vadd.f32 %v1642_v17, %v608_v30  ;;  %v638_v31 = vadd.f32 %v1642_v17, %v1678_v21 }
 0x11d   : > { %v1214_v13 = vsel %vm1213_vm5, %v1212_v0, %v1211_v45  ;;  %v1431_v15 = vpack.c.bf16 %v1061_v4, %v1061_v4  ;;  %v647_v19 = vmax.f32 %v606_v1, 0.0  ;;  %v856_v32 = vcombine.high %v654_v57, %v654_v57 }
 0x11e   : > { %v1217_v24 = vsel %vm1216_vm6, %v1215_v14, %v1214_v13  ;;  %v863_v33 = vrot.slane %v654_v57, %v1571_v20  ;;  %v648_v34 = vmax.f32 %v609_v26, 0.0  ;;  %v855_v35 = vcombine.high %v853_v18, %v853_v18 }
 0x11f   : > { %v1250_v27 = vpack.c.b16 %v1217_v24, %v1217_v24  ;;  %v1735_v28 = vunpack.c.l.b16 %v1431_v15  ;;  %v737_v38 = vcombine.high %v647_v19, %v647_v19  ;;  %v744_v36 = vrot.slane %v647_v19, %v1571_v20 }
 0x120   : > { %v655_v39 = vmax.f32 %v638_v31, 0.0  ;;  %v870_v30 = vrot.slane %v856_v32, %v1571_v20  ;;  %v871_v40 = vcombine.high %v863_v33, %v863_v33  ;;  %v754_v41 = vcombine.high %v648_v34, %v648_v34 }
 0x121   : > { %v1264_v37 = vsel %vm1726_vm7, %v1250_v27, %v1263_v25  ;;  %v614_v42 = vadd.f32 %v1642_v17, %v613_v58  ;;  %v751_v21 = vrot.slane %v737_v38, %v1571_v20  ;;  %v752_v43 = vcombine.high %v744_v36, %v744_v36 }
 0x122   : > { %1265 = vst [vmem:[%s1708_s18] sm:$0x7] %v1264_v37  ;;  %v937_v46 = vmax.f32 %v719_v3, %v744_v36  ;;  %v1748_v47 = vrot.slane %v648_v34, %v1571_v20  ;;  %v872_v49 = vcombine.high %v870_v30, %v870_v30  ;;  %v951_v50 = vmax.f32 %v846_v9, %v871_v40 }
 0x123   : > { %v952_v51 = vmax.f32 %v854_v22, %v870_v30  ;;  %v879_v52 = vrot.slane %v655_v39, %v1571_v20  ;;  %v753_v54 = vcombine.high %v751_v21, %v751_v21  ;;  %v938_v55 = vmax.f32 %v1691_v48, %v752_v43 }
 0x124   : > { %v939_v56 = vmax.f32 %v735_v2, %v751_v21  ;;  %v1380_v45 = vrot.slane %v937_v46, 9  ;;  %v953_v60 = vmax.f32 %v853_v18, %v872_v49  ;;  %v1394_v61 = vrot.slane %v951_v50, 9 }
 0x125   : > { %v1395_v58 = vrot.slane %v952_v51, 9  ;;  %v1753_v62 = vrot.slane %v754_v41, %v1571_v20  ;;  %v940_v63 = vmax.f32 %v1681_v29, %v753_v54  ;;  %v1381_v0 = vrot.slane %v938_v55, 9 }
 0x126   : > { %v1382_v4 = vrot.slane %v939_v56, 9  ;;  %v1062_v8 = vmax.f32 %v937_v46, %v1380_v45  ;;  %v1396_v9 = vrot.slane %v953_v60, 9  ;;  %v1076_v11 = vmax.f32 %v951_v50, %v1394_v61 }
 0x127   : > { %v1077_v13 = vmax.f32 %v952_v51, %v1395_v58  ;;  %v880_v14 = vcombine.high %v879_v52, %v879_v52  ;;  %v1383_v15 = vrot.slane %v940_v63, 9  ;;  %v1063_v16 = vmax.f32 %v938_v55, %v1381_v0  ;;  %v1266_v58 = vld [vmem:[%s1708_s18 + $0x4] sm:$0x7] }
 0x128   : > { %v1064_v48 = vmax.f32 %v939_v56, %v1382_v4  ;;  %v1432_v2 = vpack.c.bf16 %v1062_v8, %v1062_v8  ;;  %v1078_v22 = vmax.f32 %v953_v60, %v1396_v9  ;;  %v1446_v18 = vpack.c.bf16 %v1076_v11, %v1076_v11 }
 0x129   : > { %v1447_v1 = vpack.c.bf16 %v1077_v13, %v1077_v13  ;;  %v954_v24 = vmax.f32 %v855_v35, %v879_v52  ;;  %v1065_v25 = vmax.f32 %v940_v63, %v1383_v15  ;;  %v1433_v57 = vpack.c.bf16 %v1063_v16, %v1063_v16 }
 0x12a   : > { %v1434_v3 = vpack.c.bf16 %v1064_v48, %v1064_v48  ;;  %v1187_v26 = vunpack.c.l.b16 %v1432_v2  ;;  %v1448_v29 = vpack.c.bf16 %v1078_v22, %v1078_v22  ;;  %v1201_v27 = vunpack.c.l.b16 %v1446_v18 }
 0x12b   : > { %v1202_v19 = vunpack.c.l.b16 %v1447_v1  ;;  %v955_v31 = vmax.f32 %v863_v33, %v880_v14  ;;  %v1435_v32 = vpack.c.bf16 %v1065_v25, %v1065_v25  ;;  %v1188_v34 = vunpack.c.l.b16 %v1433_v57 }
 0x12c   : > { %v1189_v37 = vunpack.c.l.b16 %v1434_v3  ;;  %v1218_v38 = vrot.slane %v1187_v26, 7  ;;  %v1203_v36 = vunpack.c.l.b16 %v1448_v29  ;;  %v1397_v30 = vrot.slane %v954_v24, 9 }
 0x12d   : > { %v1242_v39 = vrot.slane %v1202_v19, 7  ;;  %v1398_v40 = vrot.slane %v955_v31, 9  ;;  %v1190_v41 = vunpack.c.l.b16 %v1435_v32  ;;  %v1220_v21 = vrot.slane %v1188_v34, 6 }
 0x12e   : > { %v1219_v35 = vsel %vm1207_vm3, %v1218_v38, %v1735_v28  ;;  %v1222_v43 = vrot.slane %v1189_v37, 5  ;;  %v1244_v49 = vrot.slane %v1203_v36, 6  ;;  %v1079_v50 = vmax.f32 %v954_v24, %v1397_v30 }
 0x12f   : > { %v1243_v46 = vsel %vm1207_vm3, %v1242_v39, %v1201_v27  ;;  %v1080_v33 = vmax.f32 %v955_v31, %v1398_v40  ;;  %v1221_v51 = vsel %vm1210_vm4, %v1220_v21, %v1219_v35  ;;  %v1224_v52 = vrot.slane %v1190_v41, 4  ;;  %v1275_v27 = vld [vmem:[%s1708_s18 + $0x10] sm:$0x7] }
 0x130   : > { %v649_v54 = vmax.f32 %v614_v42, 0.0  ;;  %v617_v55 = vadd.f32 %v1642_v17, %v1703_v5  ;;  %v1223_v56 = vsel %vm1213_vm5, %v1222_v43, %v1221_v51  ;;  %v1449_v45 = vpack.c.bf16 %v1079_v50, %v1079_v50 }
 0x131   : > { %v1450_v60 = vpack.c.bf16 %v1080_v33, %v1080_v33  ;;  %v1245_v28 = vsel %vm1210_vm4, %v1244_v49, %v1243_v46  ;;  %v1225_v61 = vsel %vm1216_vm6, %v1224_v52, %v1223_v56  ;;  %v769_v42 = vcombine.high %v1748_v47, %v1748_v47 }
 0x132   : > { %v771_v63 = vcombine.high %v649_v54, %v649_v54  ;;  %v778_v0 = vrot.slane %v649_v54, %v1571_v20  ;;  %v650_v4 = vmax.f32 %v617_v55, 0.0  ;;  %v1251_v8 = vpack.c.b16 %v1225_v61, %v1225_v61 }
 0x133   : > { %v1204_v9 = vunpack.c.l.b16 %v1449_v45  ;;  %v1205_v17 = vunpack.c.l.b16 %v1450_v60  ;;  %v770_v2 = vcombine.high %v1753_v62, %v1753_v62  ;;  %v1075_v25 = vmax.f32 %v1674_v10, %v1393_v6 }
 0x134   : > { %v785_v5 = vrot.slane %v771_v63, %v1571_v20  ;;  %v786_v11 = vcombine.high %v778_v0, %v778_v0  ;;  %v788_v13 = vcombine.high %v650_v4, %v650_v4  ;;  %v795_v14 = vrot.slane %v650_v4, %v1571_v20 }
 0x135   : > { %v1267_v15 = vsel %vm1726_vm7, %v1251_v8, %v1266_v58  ;;  %v1246_v16 = vrot.slane %v1204_v9, 5  ;;  %v1248_v48 = vrot.slane %v1205_v17, 4  ;;  %v1444_v52 = vpack.c.bf16 %v1719_v12, %v1719_v12 }
 0x136   : > { %1268 = vst [vmem:[%s1708_s18 + $0x4] sm:$0x7] %v1267_v15  ;;  %v787_v22 = vcombine.high %v785_v5, %v785_v5  ;;  %v941_v18 = vmax.f32 %v1748_v47, %v786_v11  ;;  %v942_v1 = vmax.f32 %v769_v42, %v785_v5  ;;  %v802_v24 = vrot.slane %v788_v13, %v1571_v20 }
 0x137   : > { %v1247_v57 = vsel %vm1213_vm5, %v1246_v16, %v1245_v28  ;;  %v803_v3 = vcombine.high %v795_v14, %v795_v14  ;;  %v944_v26 = vmax.f32 %v770_v2, %v795_v14  ;;  %v1199_v8 = vunpack.c.l.b16 %v1444_v52 }
 0x138   : > { %v1249_v29 = vsel %vm1216_vm6, %v1248_v48, %v1247_v57  ;;  %v943_v19 = vmax.f32 %v1753_v62, %v787_v22  ;;  %v1384_v31 = vrot.slane %v941_v18, 9  ;;  %v1385_v32 = vrot.slane %v942_v1, 9  ;;  %v1269_v48 = vld [vmem:[%s1708_s18 + $0x8] sm:$0x7] }
 0x139   : > { %v1254_v47 = vpack.c.b16 %v1249_v29, %v1249_v29  ;;  %v804_v34 = vcombine.high %v802_v24, %v802_v24  ;;  %v945_v37 = vmax.f32 %v778_v0, %v803_v3  ;;  %v946_v20 = vmax.f32 %v802_v24, %v821_v59 }
 0x13a   : > { %v1386_v10 = vrot.slane %v943_v19, 9  ;;  %v1066_v6 = vmax.f32 %v941_v18, %v1384_v31  ;;  %v1067_v38 = vmax.f32 %v942_v1, %v1385_v32  ;;  %v1387_v36 = vrot.slane %v944_v26, 9 }
 0x13b   : > { %v1276_v39 = vsel %vm1726_vm7, %v1254_v47, %v1275_v27  ;;  %v947_v30 = vmax.f32 %v804_v34, %v1652_v44  ;;  %v1388_v40 = vrot.slane %v945_v37, 9  ;;  %v1389_v62 = vrot.slane %v946_v20, 9 }
 0x13c   : > { %1277 = vst [vmem:[%s1708_s18 + $0x10] sm:$0x7] %v1276_v39  ;;  %v1068_v41 = vmax.f32 %v943_v19, %v1386_v10  ;;  %v1436_v35 = vpack.c.bf16 %v1066_v6, %v1066_v6  ;;  %v1437_v21 = vpack.c.bf16 %v1067_v38, %v1067_v38  ;;  %v1069_v43 = vmax.f32 %v944_v26, %v1387_v36  ;;  %v1272_v26 = vld [vmem:[%s1708_s18 + $0xc] sm:$0x7] }
 0x13d   : > { %v1390_v46 = vrot.slane %v947_v30, 9  ;;  %v1070_v49 = vmax.f32 %v945_v37, %v1388_v40  ;;  %v1071_v53 = vmax.f32 %v946_v20, %v1389_v62  ;;  %v1443_v59 = vpack.c.bf16 %v1712_v7, %v1712_v7 }
 0x13e   : > { %v1438_v50 = vpack.c.bf16 %v1068_v41, %v1068_v41  ;;  %v1192_v33 = vunpack.c.l.b16 %v1437_v21  ;;  %v1439_v51 = vpack.c.bf16 %v1069_v43, %v1069_v43  ;;  %v1445_v44 = vpack.c.bf16 %v1075_v25, %v1075_v25 }
 0x13f   : > { %v1072_v54 = vmax.f32 %v947_v30, %v1390_v46  ;;  %v1440_v55 = vpack.c.bf16 %v1070_v49, %v1070_v49  ;;  %v1191_v56 = vunpack.c.l.b16 %v1436_v35  ;;  %v1441_v61 = vpack.c.bf16 %v1071_v53, %v1071_v53 }
 0x140   : > { %v1193_v45 = vunpack.c.l.b16 %v1438_v50  ;;  %v1226_v60 = vrot.slane %v1192_v33, 7  ;;  %v1194_v28 = vunpack.c.l.b16 %v1439_v51  ;;  %v1198_v0 = vunpack.c.l.b16 %v1443_v59 }
 0x141   : > { %v1442_v58 = vpack.c.bf16 %v1072_v54, %v1072_v54  ;;  %v1195_v63 = vunpack.c.l.b16 %v1440_v55  ;;  %v1200_v17 = vunpack.c.l.b16 %v1445_v44  ;;  %v1196_v11 = vunpack.c.l.b16 %v1441_v61 }
 0x142   : > { %v1227_v7 = vsel %vm1207_vm3, %v1226_v60, %v1191_v56  ;;  %v1228_v4 = vrot.slane %v1193_v45, 6  ;;  %v1230_v9 = vrot.slane %v1194_v28, 5  ;;  %v1236_v15 = vrot.slane %v1198_v0, 6 }
 0x143   : > { %v1197_v42 = vunpack.c.l.b16 %v1442_v58  ;;  %v1232_v5 = vrot.slane %v1195_v63, 4  ;;  %v1238_v2 = vrot.slane %v1199_v8, 5  ;;  %v1240_v1 = vrot.slane %v1200_v17, 4 }
 0x144   : > { %v1229_v12 = vsel %vm1210_vm4, %v1228_v4, %v1227_v7 }
 0x145   : > { %v1231_v13 = vsel %vm1213_vm5, %v1230_v9, %v1229_v12  ;;  %v1234_v14 = vrot.slane %v1197_v42, 7 }
 0x146   : > { %v1233_v16 = vsel %vm1216_vm6, %v1232_v5, %v1231_v13 }
 0x147   : > { %v1235_v22 = vsel %vm1207_vm3, %v1234_v14, %v1196_v11  ;;  %v1252_v18 = vpack.c.b16 %v1233_v16, %v1233_v16 }
 0x148   : > { %v1237_v24 = vsel %vm1210_vm4, %v1236_v15, %v1235_v22 }
 0x149   : > { %v1239_v25 = vsel %vm1213_vm5, %v1238_v2, %v1237_v24  ;;  %v1270_v57 = vsel %vm1726_vm7, %v1252_v18, %v1269_v48 }
 0x14a   : > { %v1241_v3 = vsel %vm1216_vm6, %v1240_v1, %v1239_v25  ;;  %1271 = vst [vmem:[%s1708_s18 + $0x8] sm:$0x7] %v1270_v57 }
 0x14b   : > { %v1253_v29 = vpack.c.b16 %v1241_v3, %v1241_v3 }
 0x14d   : > { %v1273_v27 = vsel %vm1726_vm7, %v1253_v29, %v1272_v26 }
 0x14e   : > { %1274 = vst [vmem:[%s1708_s18 + $0xc] sm:$0x7] %v1273_v27 }
 0x14f PF: > { %s13_s12 = sadd.s32 1, %s1498_s12  }
 0x150   : > { %p10_p4 = scmp.ge.s32.totalorder %s13_s12, 4  }
 0x152   :  { %12 = sbr.rel (!%p10_p4) target bundleno = 1 (0x1), region = 62 }

// kernel: cnn_cifar_forward.5
= control target key start
LH: loop header
LB: loop body
LE: loop exit
PB: predicated region body
PF: predicated region fallthrough
CT: control target
= control target key end

     0   :  { %vm3345_vm0 = vmmov 0   ;;  %s4115_s1 = inlined_call_operand.vmem [shape: bf16[3200,128], index: 1, kind: input, shape index: {}]   ;;  %s4116_s0 = inlined_call_operand.vmem [shape: bf16[8,3200], index: 0, kind: input, shape index: {}]   ;;  %s4117_s2 = inlined_call_operand.vmem [shape: f32[1,128], index: 2, kind: input, shape index: {}]   ;;  %s4118_s3 = inlined_call_operand.vmem [shape: bf16[128,128], index: 3, kind: input, shape index: {}]   ;;  %s4119_s5 = inlined_call_operand.vmem [shape: bf16[128,128], index: 5, kind: input, shape index: {}]   ;;  %s4120_s4 = inlined_call_operand.vmem [shape: f32[1,128], index: 4, kind: input, shape index: {}]   ;;  %s4121_s6 = inlined_call_operand.vmem [shape: f32[1,128], index: 6, kind: input, shape index: {}]   ;;  %s4122_s7 = inlined_call_operand.vmem [shape: f32[8,128], index: 7, kind: output, shape index: {}]  }
   0x1   :  { %v3099_v0 = vld [vmem:[%s4115_s1 + $0x40] sm:$0xff]   ;;  %v3103_v4 = vld [vmem:[%s4115_s1 + $0x48] sm:$0xff]   ;;  %v3107_v8 = vld [vmem:[%s4115_s1 + $0x50] sm:$0xff]  }
   0x2   :  { %v3100_v1 = vld [vmem:[%s4115_s1] sm:$0xff]   ;;  %2746 = vmatprep.subr.bf16.mxu0 %v3099_v0  ;;  %v3104_v5 = vld [vmem:[%s4115_s1 + $0x8] sm:$0xff]   ;;  %v3108_v9 = vld [vmem:[%s4115_s1 + $0x10] sm:$0xff]  }
   0x3   :  { %v3101_v2 = vld [vmem:[%s4115_s1 + $0xc0] sm:$0xff]   ;;  %2747 = vmatpush3.bf16.msra.mxu0 %v3100_v1  ;;  %v3105_v6 = vld [vmem:[%s4115_s1 + $0xc8] sm:$0xff]   ;;  %v3109_v10 = vld [vmem:[%s4115_s1 + $0xd0] sm:$0xff]  }
   0x4   :  { %v3102_v3 = vld [vmem:[%s4115_s1 + $0x80] sm:$0xff]   ;;  %2768 = vmatprep.subr.bf16.mxu1 %v3101_v2  ;;  %2748 = vmatprep.subr.bf16.mxu0 %v3103_v4  ;;  %v3106_v7 = vld [vmem:[%s4115_s1 + $0x88] sm:$0xff]   ;;  %v3110_v11 = vld [vmem:[%s4115_s1 + $0x90] sm:$0xff]  }
   0x5   :  { %2769 = vmatpush3.bf16.msra.mxu1 %v3102_v3  ;;  %v3111_v12 = vld [vmem:[%s4115_s1 + $0x58] sm:$0xff]   ;;  %v3115_v16 = vld [vmem:[%s4115_s1 + $0x60] sm:$0xff]   ;;  %v3119_v20 = vld [vmem:[%s4115_s1 + $0x68] sm:$0xff]  }
   0x6   :  { %2770 = vmatprep.subr.bf16.mxu1 %v3105_v6  ;;  %v3112_v13 = vld [vmem:[%s4115_s1 + $0x18] sm:$0xff]   ;;  %v3116_v17 = vld [vmem:[%s4115_s1 + $0x20] sm:$0xff]   ;;  %v3120_v21 = vld [vmem:[%s4115_s1 + $0x28] sm:$0xff]  }
   0x7   :  { %2749 = vmatpush3.bf16.msra.mxu0 %v3104_v5  ;;  %v3113_v14 = vld [vmem:[%s4115_s1 + $0xd8] sm:$0xff]   ;;  %v3117_v18 = vld [vmem:[%s4115_s1 + $0xe0] sm:$0xff]   ;;  %v3121_v22 = vld [vmem:[%s4115_s1 + $0xe8] sm:$0xff]  }
   0x8   :  { %2750 = vmatprep.subr.bf16.mxu0 %v3107_v8  ;;  %v3114_v15 = vld [vmem:[%s4115_s1 + $0x98] sm:$0xff]   ;;  %v3118_v19 = vld [vmem:[%s4115_s1 + $0xa0] sm:$0xff]   ;;  %v3122_v23 = vld [vmem:[%s4115_s1 + $0xa8] sm:$0xff]  }
   0x9   :  { %2771 = vmatpush3.bf16.msra.mxu1 %v3106_v7  ;;  %v3123_v24 = vld [vmem:[%s4115_s1 + $0x70] sm:$0xff]   ;;  %v3127_v28 = vld [vmem:[%s4115_s1 + $0x78] sm:$0xff]   ;;  %v27_v31 = vld [vmem:[%s4116_s0] sm:$0xff] }
   0xa   :  { %2772 = vmatprep.subr.bf16.mxu1 %v3109_v10  ;;  %v3124_v25 = vld [vmem:[%s4115_s1 + $0x30] sm:$0xff]   ;;  %v3128_v29 = vld [vmem:[%s4115_s1 + $0x38] sm:$0xff]   ;;  %v2503_v32 = vcombine.low %v27_v31, %v27_v31  ;;  %v2504_v33 = vcombine.high %v27_v31, %v27_v31  ;;  %v3133_v35 = vld [vmem:[%s4115_s1 + $0x140] sm:$0xff]  }
   0xb   :  { %2751 = vmatpush3.bf16.msra.mxu0 %v3108_v9  ;;  %v3125_v26 = vld [vmem:[%s4115_s1 + $0xf0] sm:$0xff]   ;;  %v3129_v30 = vld [vmem:[%s4115_s1 + $0xf8] sm:$0xff]   ;;  %v28_v36 = vld [vmem:[%s4116_s0 + $0x8] sm:$0xff] }
   0xc   :  { %2752 = vmatprep.subr.bf16.mxu0 %v3111_v12  ;;  %v3126_v27 = vld [vmem:[%s4115_s1 + $0xb0] sm:$0xff]   ;;  %v3132_v34 = vld [vmem:[%s4115_s1 + $0xb8] sm:$0xff]   ;;  %1767 = vmatprep.mubr.bf16.mxu0 %v2504_v33  ;;  %v2505_v37 = vcombine.low %v28_v36, %v28_v36  ;;  %v2506_v38 = vcombine.high %v28_v36, %v28_v36  ;;  %v3136_v39 = vld [vmem:[%s4115_s1 + $0x100] sm:$0xff]  }
   0xd   :  { %2773 = vmatpush3.bf16.msra.mxu1 %v3110_v11  ;;  %v3137_v40 = vld [vmem:[%s4115_s1 + $0x1c0] sm:$0xff]   ;;  %v3139_v42 = vld [vmem:[%s4115_s1 + $0x148] sm:$0xff]   ;;  %v3143_v46 = vld [vmem:[%s4115_s1 + $0x150] sm:$0xff]  }
   0xe   :  { %2774 = vmatprep.subr.bf16.mxu1 %v3113_v14  ;;  %1807 = vmatprep.mubr.bf16.mxu1 %v2506_v38  ;;  %v3138_v41 = vld [vmem:[%s4115_s1 + $0x180] sm:$0xff]   ;;  %v3140_v43 = vld [vmem:[%s4115_s1 + $0x108] sm:$0xff]   ;;  %v3144_v47 = vld [vmem:[%s4115_s1 + $0x110] sm:$0xff]  }
   0xf   :  { %2753 = vmatpush3.bf16.msra.mxu0 %v3112_v13  ;;  %v3141_v44 = vld [vmem:[%s4115_s1 + $0x1c8] sm:$0xff]   ;;  %v3145_v48 = vld [vmem:[%s4115_s1 + $0x1d0] sm:$0xff]   ;;  %v3147_v50 = vld [vmem:[%s4115_s1 + $0x158] sm:$0xff]  }
  0x10   :  { %2754 = vmatprep.subr.bf16.mxu0 %v3115_v16  ;;  %v3142_v45 = vld [vmem:[%s4115_s1 + $0x188] sm:$0xff]   ;;  %v3146_v49 = vld [vmem:[%s4115_s1 + $0x190] sm:$0xff]   ;;  %v3148_v51 = vld [vmem:[%s4115_s1 + $0x118] sm:$0xff]  }
  0x11   :  { %2775 = vmatpush3.bf16.msra.mxu1 %v3114_v15  ;;  %v3149_v52 = vld [vmem:[%s4115_s1 + $0x1d8] sm:$0xff]   ;;  %v3151_v54 = vld [vmem:[%s4115_s1 + $0x160] sm:$0xff]   ;;  %v3155_v58 = vld [vmem:[%s4115_s1 + $0x168] sm:$0xff]  }
  0x12   :  { %2776 = vmatprep.subr.bf16.mxu1 %v3117_v18  ;;  %v3150_v53 = vld [vmem:[%s4115_s1 + $0x198] sm:$0xff]   ;;  %v3152_v55 = vld [vmem:[%s4115_s1 + $0x120] sm:$0xff]   ;;  %v3156_v59 = vld [vmem:[%s4115_s1 + $0x128] sm:$0xff]  }
  0x13   :  { %2755 = vmatpush3.bf16.msra.mxu0 %v3116_v17  ;;  %v3153_v56 = vld [vmem:[%s4115_s1 + $0x1e0] sm:$0xff]   ;;  %v3157_v60 = vld [vmem:[%s4115_s1 + $0x1e8] sm:$0xff]   ;;  %v3159_v62 = vld [vmem:[%s4115_s1 + $0x170] sm:$0xff]  }
  0x14   :  { %2756 = vmatprep.subr.bf16.mxu0 %v3119_v20  ;;  %v3154_v57 = vld [vmem:[%s4115_s1 + $0x1a0] sm:$0xff]   ;;  %v3158_v61 = vld [vmem:[%s4115_s1 + $0x1a8] sm:$0xff]   ;;  %v3160_v63 = vld [vmem:[%s4115_s1 + $0x130] sm:$0xff]  }
  0x15   :  { %2777 = vmatpush3.bf16.msra.mxu1 %v3118_v19  ;;  %v3161_v0 = vld [vmem:[%s4115_s1 + $0x1f0] sm:$0xff]   ;;  %v3163_v2 = vld [vmem:[%s4115_s1 + $0x178] sm:$0xff]   ;;  %v3169_v9 = vld [vmem:[%s4115_s1 + $0x240] sm:$0xff]  }
  0x16   :  { %2778 = vmatprep.subr.bf16.mxu1 %v3121_v22  ;;  %v3162_v1 = vld [vmem:[%s4115_s1 + $0x1b0] sm:$0xff]   ;;  %v3164_v3 = vld [vmem:[%s4115_s1 + $0x138] sm:$0xff]   ;;  %v3172_v13 = vld [vmem:[%s4115_s1 + $0x200] sm:$0xff]  }
  0x17   :  { %2757 = vmatpush3.bf16.msra.mxu0 %v3120_v21  ;;  %v3165_v4 = vld [vmem:[%s4115_s1 + $0x1f8] sm:$0xff]   ;;  %v29_v5 = vld [vmem:[%s4116_s0 + $0x10] sm:$0xff]  ;;  %v3173_v14 = vld [vmem:[%s4115_s1 + $0x2c0] sm:$0xff]  }
  0x18   :  { %2758 = vmatprep.subr.bf16.mxu0 %v3123_v24  ;;  %v2507_v6 = vcombine.low %v29_v5, %v29_v5  ;;  %v2508_v7 = vcombine.high %v29_v5, %v29_v5  ;;  %v3168_v8 = vld [vmem:[%s4115_s1 + $0x1b8] sm:$0xff]   ;;  %v3174_v15 = vld [vmem:[%s4115_s1 + $0x280] sm:$0xff]   ;;  %v3175_v16 = vld [vmem:[%s4115_s1 + $0x248] sm:$0xff]  }
  0x19   :  { %2779 = vmatpush3.bf16.msra.mxu1 %v3122_v23  ;;  %v30_v10 = vld [vmem:[%s4116_s0 + $0x18] sm:$0xff]  ;;  %v3176_v17 = vld [vmem:[%s4115_s1 + $0x208] sm:$0xff]   ;;  %v3179_v20 = vld [vmem:[%s4115_s1 + $0x250] sm:$0xff]  }
  0x1a   :  { %2780 = vmatprep.subr.bf16.mxu1 %v3125_v26  ;;  %v2509_v11 = vcombine.low %v30_v10, %v30_v10  ;;  %v2510_v12 = vcombine.high %v30_v10, %v30_v10  ;;  %v3177_v18 = vld [vmem:[%s4115_s1 + $0x2c8] sm:$0xff]   ;;  %v3180_v21 = vld [vmem:[%s4115_s1 + $0x210] sm:$0xff]   ;;  %v3183_v24 = vld [vmem:[%s4115_s1 + $0x258] sm:$0xff]  }
  0x1b   :  { %2759 = vmatpush3.bf16.msra.mxu0 %v3124_v25  ;;  %v3178_v19 = vld [vmem:[%s4115_s1 + $0x288] sm:$0xff]   ;;  %v3181_v22 = vld [vmem:[%s4115_s1 + $0x2d0] sm:$0xff]   ;;  %v3184_v25 = vld [vmem:[%s4115_s1 + $0x218] sm:$0xff]  }
  0x1c   :  { %2760 = vmatprep.subr.bf16.mxu0 %v3127_v28  ;;  %v3182_v23 = vld [vmem:[%s4115_s1 + $0x290] sm:$0xff]   ;;  %v3185_v26 = vld [vmem:[%s4115_s1 + $0x2d8] sm:$0xff]   ;;  %v3187_v28 = vld [vmem:[%s4115_s1 + $0x260] sm:$0xff]  }
  0x1d   :  { %2781 = vmatpush3.bf16.msra.mxu1 %v3126_v27  ;;  %v3186_v27 = vld [vmem:[%s4115_s1 + $0x298] sm:$0xff]   ;;  %v3190_v31 = vld [vmem:[%s4115_s1 + $0x2a0] sm:$0xff]   ;;  %v3192_v33 = vld [vmem:[%s4115_s1 + $0x228] sm:$0xff]  }
  0x1e   :  { %2782 = vmatprep.subr.bf16.mxu1 %v3129_v30  ;;  %v3189_v30 = vld [vmem:[%s4115_s1 + $0x2e0] sm:$0xff]   ;;  %v3195_v36 = vld [vmem:[%s4115_s1 + $0x270] sm:$0xff]  }
  0x1f   :  { %2761 = vmatpush3.bf16.msra.mxu0 %v3128_v29  ;;  %v3188_v29 = vld [vmem:[%s4115_s1 + $0x220] sm:$0xff]   ;;  %v3197_v38 = vld [vmem:[%s4115_s1 + $0x2f0] sm:$0xff]  }
  0x20   :  { %2790 = vmatprep.subr.bf16.mxu0 %v3133_v35  ;;  %v3194_v35 = vld [vmem:[%s4115_s1 + $0x2a8] sm:$0xff]   ;;  %v3226_v5 = vld [vmem:[%s4115_s1 + $0x3a0] sm:$0xff]   ;;  %v3231_v10 = vld [vmem:[%s4115_s1 + $0x370] sm:$0xff]  }
  0x21   :  { %2783 = vmatpush3.bf16.msra.mxu1 %v3132_v34  ;;  %v3193_v34 = vld [vmem:[%s4115_s1 + $0x2e8] sm:$0xff]  }
  0x22   :  { %1768 = vmatmul.mubr.bf16.vlgmr.msra.gmra.mrb[0].mxu0 %v2503_v32  ;;  %2812 = vmatprep.subr.bf16.mxu1 %v3137_v40  ;;  %v3191_v32 = vld [vmem:[%s4115_s1 + $0x268] sm:$0xff]   ;;  %v3199_v40 = vld [vmem:[%s4115_s1 + $0x278] sm:$0xff]  }
  0x23   :  { %2791 = vmatpush3.bf16.msra.mxu0 %v3136_v39  ;;  %1847 = vmatprep.mubr.bf16.mxu0 %v2508_v7  ;;  %v3198_v39 = vld [vmem:[%s4115_s1 + $0x2b0] sm:$0xff]   ;;  %v3228_v7 = vld [vmem:[%s4115_s1 + $0x328] sm:$0xff]  }
  0x24   :  { %1808 = vmatmul.mubr.bf16.vlgmr.msra.gmra.mrb[0].mxu1 %v2505_v37  ;;  %2792 = vmatprep.subr.bf16.mxu0 %v3139_v42  ;;  %v3196_v37 = vld [vmem:[%s4115_s1 + $0x230] sm:$0xff]   ;;  %v3201_v42 = vld [vmem:[%s4115_s1 + $0x2f8] sm:$0xff]  }
  0x25   :  { %2813 = vmatpush3.bf16.msra.mxu1 %v3138_v41  ;;  %1887 = vmatprep.mubr.bf16.mxu1 %v2510_v12  ;;  %v3200_v41 = vld [vmem:[%s4115_s1 + $0x238] sm:$0xff]   ;;  %v3233_v12 = vld [vmem:[%s4115_s1 + $0x3f0] sm:$0xff]  }
  0x26   :  { %2814 = vmatprep.subr.bf16.mxu1 %v3141_v44 }
  0x27   :  { %2793 = vmatpush3.bf16.msra.mxu0 %v3140_v43  ;;  %v31_v43 = vld [vmem:[%s4116_s0 + $0x20] sm:$0xff] }
  0x28   :  { %2794 = vmatprep.subr.bf16.mxu0 %v3143_v46  ;;  %v2511_v44 = vcombine.low %v31_v43, %v31_v43  ;;  %v3204_v46 = vld [vmem:[%s4115_s1 + $0x2b8] sm:$0xff]  }
  0x29   :  { %2815 = vmatpush3.bf16.msra.mxu1 %v3142_v45  ;;  %v2512_v45 = vcombine.high %v31_v43, %v31_v43  ;;  %v3262_v43 = vld [vmem:[%s4115_s1 + $0x4a0] sm:$0xff]  }
  0x2a   :  { %2816 = vmatprep.subr.bf16.mxu1 %v3145_v48  ;;  %v32_v48 = vld [vmem:[%s4116_s0 + $0x28] sm:$0xff] }
  0x2b   :  { %2795 = vmatpush3.bf16.msra.mxu0 %v3144_v47  ;;  %v3205_v47 = vld [vmem:[%s4115_s1 + $0x340] sm:$0xff]  }
  0x2c   :  { %2796 = vmatprep.subr.bf16.mxu0 %v3147_v50  ;;  %v2514_v50 = vcombine.high %v32_v48, %v32_v48 }
  0x2d   :  { %2817 = vmatpush3.bf16.msra.mxu1 %v3146_v49  ;;  %v2513_v49 = vcombine.low %v32_v48, %v32_v48  ;;  %v3267_v48 = vld [vmem:[%s4115_s1 + $0x470] sm:$0xff]  }
  0x2e   :  { %2818 = vmatprep.subr.bf16.mxu1 %v3149_v52  ;;  %v3209_v52 = vld [vmem:[%s4115_s1 + $0x3c0] sm:$0xff]  }
  0x2f   :  { %2797 = vmatpush3.bf16.msra.mxu0 %v3148_v51  ;;  %v3208_v51 = vld [vmem:[%s4115_s1 + $0x300] sm:$0xff]  }
  0x30   :  { %2798 = vmatprep.subr.bf16.mxu0 %v3151_v54  ;;  %v3211_v54 = vld [vmem:[%s4115_s1 + $0x348] sm:$0xff]  }
  0x31   :  { %2819 = vmatpush3.bf16.msra.mxu1 %v3150_v53  ;;  %v3210_v53 = vld [vmem:[%s4115_s1 + $0x380] sm:$0xff]  }
  0x32   :  { %2820 = vmatprep.subr.bf16.mxu1 %v3153_v56  ;;  %v3213_v56 = vld [vmem:[%s4115_s1 + $0x3c8] sm:$0xff]  }
  0x33   :  { %2799 = vmatpush3.bf16.msra.mxu0 %v3152_v55  ;;  %v3212_v55 = vld [vmem:[%s4115_s1 + $0x308] sm:$0xff]  }
  0x34   :  { %2800 = vmatprep.subr.bf16.mxu0 %v3155_v58  ;;  %v3215_v58 = vld [vmem:[%s4115_s1 + $0x350] sm:$0xff]  }
  0x35   :  { %2821 = vmatpush3.bf16.msra.mxu1 %v3154_v57  ;;  %v3214_v57 = vld [vmem:[%s4115_s1 + $0x388] sm:$0xff]  }
  0x36   :  { %2822 = vmatprep.subr.bf16.mxu1 %v3157_v60  ;;  %v3217_v60 = vld [vmem:[%s4115_s1 + $0x3d0] sm:$0xff]  }
  0x37   :  { %2801 = vmatpush3.bf16.msra.mxu0 %v3156_v59  ;;  %v3216_v59 = vld [vmem:[%s4115_s1 + $0x310] sm:$0xff]  }
  0x38   :  { %2802 = vmatprep.subr.bf16.mxu0 %v3159_v62  ;;  %v3219_v62 = vld [vmem:[%s4115_s1 + $0x358] sm:$0xff]  }
  0x39   :  { %2823 = vmatpush3.bf16.msra.mxu1 %v3158_v61  ;;  %v3218_v61 = vld [vmem:[%s4115_s1 + $0x390] sm:$0xff]  }
  0x3a   :  { %2824 = vmatprep.subr.bf16.mxu1 %v3161_v0  ;;  %v3221_v0 = vld [vmem:[%s4115_s1 + $0x3d8] sm:$0xff]  }
  0x3b   :  { %2803 = vmatpush3.bf16.msra.mxu0 %v3160_v63  ;;  %v3220_v63 = vld [vmem:[%s4115_s1 + $0x318] sm:$0xff]  }
  0x3c   :  { %2804 = vmatprep.subr.bf16.mxu0 %v3163_v2  ;;  %v3223_v2 = vld [vmem:[%s4115_s1 + $0x360] sm:$0xff]  }
  0x3d   :  { %2825 = vmatpush3.bf16.msra.mxu1 %v3162_v1  ;;  %v3222_v1 = vld [vmem:[%s4115_s1 + $0x398] sm:$0xff]  }
  0x3e   :  { %2826 = vmatprep.subr.bf16.mxu1 %v3165_v4  ;;  %v3225_v4 = vld [vmem:[%s4115_s1 + $0x3e0] sm:$0xff]  }
  0x3f   :  { %2805 = vmatpush3.bf16.msra.mxu0 %v3164_v3  ;;  %v3224_v3 = vld [vmem:[%s4115_s1 + $0x320] sm:$0xff]  }
  0x40   :  { %2834 = vmatprep.subr.bf16.mxu0 %v3169_v9  ;;  %v3230_v9 = vld [vmem:[%s4115_s1 + $0x3a8] sm:$0xff]  }
  0x41   :  { %2827 = vmatpush3.bf16.msra.mxu1 %v3168_v8  ;;  %v3229_v8 = vld [vmem:[%s4115_s1 + $0x3e8] sm:$0xff]  }
  0x42   :  { %1848 = vmatmul.mubr.bf16.vlgmr.msra.gmra.mrb[4].mxu0 %v2507_v6  ;;  %2856 = vmatprep.subr.bf16.mxu1 %v3173_v14  ;;  %v3227_v6 = vld [vmem:[%s4115_s1 + $0x368] sm:$0xff]   ;;  %v3235_v14 = vld [vmem:[%s4115_s1 + $0x378] sm:$0xff]  }
  0x43   :  { %2835 = vmatpush3.bf16.msra.mxu0 %v3172_v13  ;;  %1927 = vmatprep.mubr.bf16.mxu0 %v2512_v45  ;;  %v3234_v13 = vld [vmem:[%s4115_s1 + $0x3b0] sm:$0xff]   ;;  %v3264_v45 = vld [vmem:[%s4115_s1 + $0x428] sm:$0xff]  }
  0x44   :  { %1888 = vmatmul.mubr.bf16.vlgmr.msra.gmra.mrb[4].mxu1 %v2509_v11  ;;  %2836 = vmatprep.subr.bf16.mxu0 %v3175_v16  ;;  %v3232_v11 = vld [vmem:[%s4115_s1 + $0x330] sm:$0xff]   ;;  %v3237_v16 = vld [vmem:[%s4115_s1 + $0x3f8] sm:$0xff]  }
  0x45   :  { %2857 = vmatpush3.bf16.msra.mxu1 %v3174_v15  ;;  %1967 = vmatprep.mubr.bf16.mxu1 %v2514_v50  ;;  %v3236_v15 = vld [vmem:[%s4115_s1 + $0x338] sm:$0xff]   ;;  %v3269_v50 = vld [vmem:[%s4115_s1 + $0x4f0] sm:$0xff]  }
  0x46   :  { %2858 = vmatprep.subr.bf16.mxu1 %v3177_v18 }
  0x47   :  { %2837 = vmatpush3.bf16.msra.mxu0 %v3176_v17  ;;  %v33_v17 = vld [vmem:[%s4116_s0 + $0x30] sm:$0xff] }
  0x48   :  { %2838 = vmatprep.subr.bf16.mxu0 %v3179_v20  ;;  %v2515_v18 = vcombine.low %v33_v17, %v33_v17  ;;  %v3240_v20 = vld [vmem:[%s4115_s1 + $0x3b8] sm:$0xff]  }
  0x49   :  { %2859 = vmatpush3.bf16.msra.mxu1 %v3178_v19  ;;  %v2516_v19 = vcombine.high %v33_v17, %v33_v17  ;;  %v3298_v17 = vld [vmem:[%s4115_s1 + $0x5a0] sm:$0xff]  }
  0x4a   :  { %2860 = vmatprep.subr.bf16.mxu1 %v3181_v22  ;;  %v34_v22 = vld [vmem:[%s4116_s0 + $0x38] sm:$0xff] }
  0x4b   :  { %2839 = vmatpush3.bf16.msra.mxu0 %v3180_v21  ;;  %v3241_v21 = vld [vmem:[%s4115_s1 + $0x440] sm:$0xff]  }
  0x4c   :  { %2840 = vmatprep.subr.bf16.mxu0 %v3183_v24  ;;  %v2518_v24 = vcombine.high %v34_v22, %v34_v22 }
  0x4d   :  { %2861 = vmatpush3.bf16.msra.mxu1 %v3182_v23  ;;  %v2517_v23 = vcombine.low %v34_v22, %v34_v22  ;;  %v3303_v22 = vld [vmem:[%s4115_s1 + $0x570] sm:$0xff]  }
  0x4e   :  { %2862 = vmatprep.subr.bf16.mxu1 %v3185_v26  ;;  %v3245_v26 = vld [vmem:[%s4115_s1 + $0x4c0] sm:$0xff]  }
  0x4f   :  { %2841 = vmatpush3.bf16.msra.mxu0 %v3184_v25  ;;  %v3244_v25 = vld [vmem:[%s4115_s1 + $0x400] sm:$0xff]  }
  0x50   :  { %2842 = vmatprep.subr.bf16.mxu0 %v3187_v28  ;;  %v3247_v28 = vld [vmem:[%s4115_s1 + $0x448] sm:$0xff]  }
  0x51   :  { %2863 = vmatpush3.bf16.msra.mxu1 %v3186_v27  ;;  %v3246_v27 = vld [vmem:[%s4115_s1 + $0x480] sm:$0xff]  }
  0x52   :  { %2864 = vmatprep.subr.bf16.mxu1 %v3189_v30  ;;  %v3249_v30 = vld [vmem:[%s4115_s1 + $0x4c8] sm:$0xff]  }
  0x53   :  { %2843 = vmatpush3.bf16.msra.mxu0 %v3188_v29  ;;  %v3248_v29 = vld [vmem:[%s4115_s1 + $0x408] sm:$0xff]  }
  0x54   :  { %2844 = vmatprep.subr.bf16.mxu0 %v3191_v32  ;;  %v3251_v32 = vld [vmem:[%s4115_s1 + $0x450] sm:$0xff]  }
  0x55   :  { %2865 = vmatpush3.bf16.msra.mxu1 %v3190_v31  ;;  %v3250_v31 = vld [vmem:[%s4115_s1 + $0x488] sm:$0xff]  }
  0x56   :  { %2866 = vmatprep.subr.bf16.mxu1 %v3193_v34  ;;  %v3253_v34 = vld [vmem:[%s4115_s1 + $0x4d0] sm:$0xff]  }
  0x57   :  { %2845 = vmatpush3.bf16.msra.mxu0 %v3192_v33  ;;  %v3252_v33 = vld [vmem:[%s4115_s1 + $0x410] sm:$0xff]  }
  0x58   :  { %2846 = vmatprep.subr.bf16.mxu0 %v3195_v36  ;;  %v3255_v36 = vld [vmem:[%s4115_s1 + $0x458] sm:$0xff]  }
  0x59   :  { %2867 = vmatpush3.bf16.msra.mxu1 %v3194_v35  ;;  %v3254_v35 = vld [vmem:[%s4115_s1 + $0x490] sm:$0xff]  }
  0x5a   :  { %2868 = vmatprep.subr.bf16.mxu1 %v3197_v38  ;;  %v3257_v38 = vld [vmem:[%s4115_s1 + $0x4d8] sm:$0xff]  }
  0x5b   :  { %2847 = vmatpush3.bf16.msra.mxu0 %v3196_v37  ;;  %v3256_v37 = vld [vmem:[%s4115_s1 + $0x418] sm:$0xff]  }
  0x5c   :  { %2848 = vmatprep.subr.bf16.mxu0 %v3199_v40  ;;  %v3259_v40 = vld [vmem:[%s4115_s1 + $0x460] sm:$0xff]  }
  0x5d   :  { %2869 = vmatpush3.bf16.msra.mxu1 %v3198_v39  ;;  %v3258_v39 = vld [vmem:[%s4115_s1 + $0x498] sm:$0xff]  }
  0x5e   :  { %2870 = vmatprep.subr.bf16.mxu1 %v3201_v42  ;;  %v3261_v42 = vld [vmem:[%s4115_s1 + $0x4e0] sm:$0xff]  }
  0x5f   :  { %2849 = vmatpush3.bf16.msra.mxu0 %v3200_v41  ;;  %v3260_v41 = vld [vmem:[%s4115_s1 + $0x420] sm:$0xff]  }
  0x60   :  { %2878 = vmatprep.subr.bf16.mxu0 %v3205_v47  ;;  %v3266_v47 = vld [vmem:[%s4115_s1 + $0x4a8] sm:$0xff]  }
  0x61   :  { %2871 = vmatpush3.bf16.msra.mxu1 %v3204_v46  ;;  %v3265_v46 = vld [vmem:[%s4115_s1 + $0x4e8] sm:$0xff]  }
  0x62   :  { %1928 = vmatmul.mubr.bf16.vlgmr.msra.gmra.mrb[8].mxu0 %v2511_v44  ;;  %2900 = vmatprep.subr.bf16.mxu1 %v3209_v52  ;;  %v3263_v44 = vld [vmem:[%s4115_s1 + $0x468] sm:$0xff]   ;;  %v3271_v52 = vld [vmem:[%s4115_s1 + $0x478] sm:$0xff]  }
  0x63   :  { %2879 = vmatpush3.bf16.msra.mxu0 %v3208_v51  ;;  %2007 = vmatprep.mubr.bf16.mxu0 %v2516_v19  ;;  %v3270_v51 = vld [vmem:[%s4115_s1 + $0x4b0] sm:$0xff]   ;;  %v3300_v19 = vld [vmem:[%s4115_s1 + $0x528] sm:$0xff]  }
  0x64   :  { %1968 = vmatmul.mubr.bf16.vlgmr.msra.gmra.mrb[8].mxu1 %v2513_v49  ;;  %2880 = vmatprep.subr.bf16.mxu0 %v3211_v54  ;;  %v3268_v49 = vld [vmem:[%s4115_s1 + $0x430] sm:$0xff]   ;;  %v3273_v54 = vld [vmem:[%s4115_s1 + $0x4f8] sm:$0xff]  }
  0x65   :  { %2901 = vmatpush3.bf16.msra.mxu1 %v3210_v53  ;;  %2047 = vmatprep.mubr.bf16.mxu1 %v2518_v24  ;;  %v3272_v53 = vld [vmem:[%s4115_s1 + $0x438] sm:$0xff]   ;;  %v3305_v24 = vld [vmem:[%s4115_s1 + $0x5f0] sm:$0xff]  }
  0x66   :  { %2902 = vmatprep.subr.bf16.mxu1 %v3213_v56 }
  0x67   :  { %2881 = vmatpush3.bf16.msra.mxu0 %v3212_v55  ;;  %v35_v55 = vld [vmem:[%s4116_s0 + $0x40] sm:$0xff] }
  0x68   :  { %2882 = vmatprep.subr.bf16.mxu0 %v3215_v58  ;;  %v2519_v56 = vcombine.low %v35_v55, %v35_v55  ;;  %v3276_v58 = vld [vmem:[%s4115_s1 + $0x4b8] sm:$0xff]  }
  0x69   :  { %2903 = vmatpush3.bf16.msra.mxu1 %v3214_v57  ;;  %v2520_v57 = vcombine.high %v35_v55, %v35_v55 }
  0x6a   :  { %2904 = vmatprep.subr.bf16.mxu1 %v3217_v60  ;;  %v36_v60 = vld [vmem:[%s4116_s0 + $0x48] sm:$0xff] }
  0x6b   :  { %2883 = vmatpush3.bf16.msra.mxu0 %v3216_v59  ;;  %v3277_v59 = vld [vmem:[%s4115_s1 + $0x540] sm:$0xff]  }
  0x6c   :  { %2884 = vmatprep.subr.bf16.mxu0 %v3219_v62  ;;  %v2522_v62 = vcombine.high %v36_v60, %v36_v60 }
  0x6d   :  { %2905 = vmatpush3.bf16.msra.mxu1 %v3218_v61  ;;  %v2521_v61 = vcombine.low %v36_v60, %v36_v60 }
  0x6e   :  { %2906 = vmatprep.subr.bf16.mxu1 %v3221_v0  ;;  %v3281_v0 = vld [vmem:[%s4115_s1 + $0x5c0] sm:$0xff]  }
  0x6f   :  { %2885 = vmatpush3.bf16.msra.mxu0 %v3220_v63  ;;  %v3280_v63 = vld [vmem:[%s4115_s1 + $0x500] sm:$0xff]  }
  0x70   :  { %2886 = vmatprep.subr.bf16.mxu0 %v3223_v2  ;;  %v3283_v2 = vld [vmem:[%s4115_s1 + $0x548] sm:$0xff]  }
  0x71   :  { %2907 = vmatpush3.bf16.msra.mxu1 %v3222_v1  ;;  %v3282_v1 = vld [vmem:[%s4115_s1 + $0x580] sm:$0xff]  }
  0x72   :  { %2908 = vmatprep.subr.bf16.mxu1 %v3225_v4  ;;  %v3285_v4 = vld [vmem:[%s4115_s1 + $0x5c8] sm:$0xff]  }
  0x73   :  { %2887 = vmatpush3.bf16.msra.mxu0 %v3224_v3  ;;  %v3284_v3 = vld [vmem:[%s4115_s1 + $0x508] sm:$0xff]  }
  0x74   :  { %2888 = vmatprep.subr.bf16.mxu0 %v3227_v6  ;;  %v3287_v6 = vld [vmem:[%s4115_s1 + $0x550] sm:$0xff]  }
  0x75   :  { %2909 = vmatpush3.bf16.msra.mxu1 %v3226_v5  ;;  %v3286_v5 = vld [vmem:[%s4115_s1 + $0x588] sm:$0xff]  }
  0x76   :  { %2910 = vmatprep.subr.bf16.mxu1 %v3229_v8  ;;  %v3289_v8 = vld [vmem:[%s4115_s1 + $0x5d0] sm:$0xff]  }
  0x77   :  { %2889 = vmatpush3.bf16.msra.mxu0 %v3228_v7  ;;  %v3288_v7 = vld [vmem:[%s4115_s1 + $0x510] sm:$0xff]  }
  0x78   :  { %2890 = vmatprep.subr.bf16.mxu0 %v3231_v10  ;;  %v3291_v10 = vld [vmem:[%s4115_s1 + $0x558] sm:$0xff]  }
  0x79   :  { %2911 = vmatpush3.bf16.msra.mxu1 %v3230_v9  ;;  %v3290_v9 = vld [vmem:[%s4115_s1 + $0x590] sm:$0xff]  }
  0x7a   :  { %2912 = vmatprep.subr.bf16.mxu1 %v3233_v12  ;;  %v3293_v12 = vld [vmem:[%s4115_s1 + $0x5d8] sm:$0xff]  }
  0x7b   :  { %2891 = vmatpush3.bf16.msra.mxu0 %v3232_v11  ;;  %v3292_v11 = vld [vmem:[%s4115_s1 + $0x518] sm:$0xff]  }
  0x7c   :  { %2892 = vmatprep.subr.bf16.mxu0 %v3235_v14  ;;  %v3295_v14 = vld [vmem:[%s4115_s1 + $0x560] sm:$0xff]  }
  0x7d   :  { %2913 = vmatpush3.bf16.msra.mxu1 %v3234_v13  ;;  %v3294_v13 = vld [vmem:[%s4115_s1 + $0x598] sm:$0xff]  }
  0x7e   :  { %2914 = vmatprep.subr.bf16.mxu1 %v3237_v16  ;;  %v3297_v16 = vld [vmem:[%s4115_s1 + $0x5e0] sm:$0xff]  }
  0x7f   :  { %2893 = vmatpush3.bf16.msra.mxu0 %v3236_v15  ;;  %v3296_v15 = vld [vmem:[%s4115_s1 + $0x520] sm:$0xff]  }
  0x80   :  { %2922 = vmatprep.subr.bf16.mxu0 %v3241_v21  ;;  %v3302_v21 = vld [vmem:[%s4115_s1 + $0x5a8] sm:$0xff]  }
  0x81   :  { %2915 = vmatpush3.bf16.msra.mxu1 %v3240_v20  ;;  %v3301_v20 = vld [vmem:[%s4115_s1 + $0x5e8] sm:$0xff]  }
  0x82   :  { %2008 = vmatmul.mubr.bf16.vlgmr.msra.gmra.mrb[12].mxu0 %v2515_v18  ;;  %2944 = vmatprep.subr.bf16.mxu1 %v3245_v26  ;;  %v3299_v18 = vld [vmem:[%s4115_s1 + $0x568] sm:$0xff]   ;;  %v3307_v26 = vld [vmem:[%s4115_s1 + $0x578] sm:$0xff]  }
  0x83   :  { %2923 = vmatpush3.bf16.msra.mxu0 %v3244_v25  ;;  %2087 = vmatprep.mubr.bf16.mxu0 %v2520_v57  ;;  %v3306_v25 = vld [vmem:[%s4115_s1 + $0x5b0] sm:$0xff]  }
  0x84   :  { %2048 = vmatmul.mubr.bf16.vlgmr.msra.gmra.mrb[12].mxu1 %v2517_v23  ;;  %2924 = vmatprep.subr.bf16.mxu0 %v3247_v28  ;;  %v3304_v23 = vld [vmem:[%s4115_s1 + $0x530] sm:$0xff]   ;;  %v3309_v28 = vld [vmem:[%s4115_s1 + $0x5f8] sm:$0xff]  }
  0x85   :  { %2945 = vmatpush3.bf16.msra.mxu1 %v3246_v27  ;;  %2127 = vmatprep.mubr.bf16.mxu1 %v2522_v62  ;;  %v3308_v27 = vld [vmem:[%s4115_s1 + $0x538] sm:$0xff]  }
  0x86   :  { %2946 = vmatprep.subr.bf16.mxu1 %v3249_v30 }
  0x87   :  { %2925 = vmatpush3.bf16.msra.mxu0 %v3248_v29  ;;  %v37_v29 = vld [vmem:[%s4116_s0 + $0x50] sm:$0xff] }
  0x88   :  { %2926 = vmatprep.subr.bf16.mxu0 %v3251_v32  ;;  %v2523_v30 = vcombine.low %v37_v29, %v37_v29  ;;  %v3312_v32 = vld [vmem:[%s4115_s1 + $0x5b8] sm:$0xff]  }
  0x89   :  { %2947 = vmatpush3.bf16.msra.mxu1 %v3250_v31  ;;  %v2524_v31 = vcombine.high %v37_v29, %v37_v29  ;;  %v3334_v29 = vld [vmem:[%s4119_s5 + $0x10] sm:$0xff]  }
  0x8a   :  { %2948 = vmatprep.subr.bf16.mxu1 %v3253_v34  ;;  %v3344_v34 = vmov 0.0  }
  0x8b   :  { %2927 = vmatpush3.bf16.msra.mxu0 %v3252_v33  ;;  %v38_v33 = vld [vmem:[%s4116_s0 + $0x58] sm:$0xff] }
  0x8c   :  { %2928 = vmatprep.subr.bf16.mxu0 %v3255_v36  ;;  %v2526_v36 = vcombine.high %v38_v33, %v38_v33 }
  0x8d   :  { %2949 = vmatpush3.bf16.msra.mxu1 %v3254_v35  ;;  %v2525_v35 = vcombine.low %v38_v33, %v38_v33 }
  0x8e   :  { %2950 = vmatprep.subr.bf16.mxu1 %v3257_v38  ;;  %v3316_v38 = vld [vmem:[%s4115_s1 + $0x608] sm:$0xff]  }
  0x8f   :  { %2929 = vmatpush3.bf16.msra.mxu0 %v3256_v37  ;;  %v3315_v37 = vld [vmem:[%s4115_s1 + $0x600] sm:$0xff]  }
  0x90   :  { %2930 = vmatprep.subr.bf16.mxu0 %v3259_v40  ;;  %v3318_v40 = vld [vmem:[%s4115_s1 + $0x618] sm:$0xff]  }
  0x91   :  { %2951 = vmatpush3.bf16.msra.mxu1 %v3258_v39  ;;  %v3317_v39 = vld [vmem:[%s4115_s1 + $0x610] sm:$0xff]  }
  0x92   :  { %2952 = vmatprep.subr.bf16.mxu1 %v3261_v42  ;;  %v3320_v42 = vld [vmem:[%s4115_s1 + $0x628] sm:$0xff]  }
  0x93   :  { %2931 = vmatpush3.bf16.msra.mxu0 %v3260_v41  ;;  %v3319_v41 = vld [vmem:[%s4115_s1 + $0x620] sm:$0xff]  }
  0x94   :  { %2932 = vmatprep.subr.bf16.mxu0 %v3263_v44  ;;  %v3322_v44 = vld [vmem:[%s4115_s1 + $0x638] sm:$0xff]  }
  0x95   :  { %2953 = vmatpush3.bf16.msra.mxu1 %v3262_v43  ;;  %v3321_v43 = vld [vmem:[%s4115_s1 + $0x630] sm:$0xff]  }
  0x96   :  { %2954 = vmatprep.subr.bf16.mxu1 %v3265_v46 }
  0x97   :  { %2933 = vmatpush3.bf16.msra.mxu0 %v3264_v45  ;;  %v3323_v45 = vld [vmem:[%s4116_s0 + $0x60] ss:$0 sps:$4 sm:$0xff]  }
  0x98   :  { %2934 = vmatprep.subr.bf16.mxu0 %v3267_v48 }
  0x99   :  { %2955 = vmatpush3.bf16.msra.mxu1 %v3266_v47  ;;  %v2502_v47 = vld [vmem:[%s4117_s2] ss:$0 sm:$0xff] }
  0x9a   :  { %2956 = vmatprep.subr.bf16.mxu1 %v3269_v50 }
  0x9b   :  { %2935 = vmatpush3.bf16.msra.mxu0 %v3268_v49 }
  0x9c   :  { %2936 = vmatprep.subr.bf16.mxu0 %v3271_v52 }
  0x9d   :  { %2957 = vmatpush3.bf16.msra.mxu1 %v3270_v51 }
  0x9e   :  { %2958 = vmatprep.subr.bf16.mxu1 %v3273_v54 }
  0x9f   :  { %2937 = vmatpush3.bf16.msra.mxu0 %v3272_v53 }
  0xa0   :  { %2966 = vmatprep.subr.bf16.mxu0 %v3277_v59 }
  0xa1   :  { %2959 = vmatpush3.bf16.msra.mxu1 %v3276_v58 }
  0xa2   :  { %2088 = vmatmul.mubr.bf16.vlgmr.msra.gmra.mrb[16].mxu0 %v2519_v56  ;;  %2988 = vmatprep.subr.bf16.mxu1 %v3281_v0 }
  0xa3   :  { %2967 = vmatpush3.bf16.msra.mxu0 %v3280_v63  ;;  %2167 = vmatprep.mubr.bf16.mxu0 %v2524_v31  ;;  %v3336_v31 = vld [vmem:[%s4119_s5 + $0x20] sm:$0xff]  }
  0xa4   :  { %2128 = vmatmul.mubr.bf16.vlgmr.msra.gmra.mrb[16].mxu1 %v2521_v61  ;;  %2968 = vmatprep.subr.bf16.mxu0 %v3283_v2 }
  0xa5   :  { %2989 = vmatpush3.bf16.msra.mxu1 %v3282_v1  ;;  %2207 = vmatprep.mubr.bf16.mxu1 %v2526_v36 }
  0xa6   :  { %2990 = vmatprep.subr.bf16.mxu1 %v3285_v4 }
  0xa7   :  { %2969 = vmatpush3.bf16.msra.mxu0 %v3284_v3 }
  0xa8   :  { %2970 = vmatprep.subr.bf16.mxu0 %v3287_v6 }
  0xa9   :  { %2991 = vmatpush3.bf16.msra.mxu1 %v3286_v5 }
  0xaa   :  { %2992 = vmatprep.subr.bf16.mxu1 %v3289_v8  ;;  %v3325_v8 = vld [vmem:[%s4118_s3 + $0x8] sm:$0xff]  }
  0xab   :  { %2971 = vmatpush3.bf16.msra.mxu0 %v3288_v7  ;;  %v3324_v7 = vld [vmem:[%s4118_s3] sm:$0xff]  }
  0xac   :  { %2972 = vmatprep.subr.bf16.mxu0 %v3291_v10  ;;  %v3327_v10 = vld [vmem:[%s4118_s3 + $0x18] sm:$0xff]  }
  0xad   :  { %2993 = vmatpush3.bf16.msra.mxu1 %v3290_v9  ;;  %v3326_v9 = vld [vmem:[%s4118_s3 + $0x10] sm:$0xff]  }
  0xae   :  { %2994 = vmatprep.subr.bf16.mxu1 %v3293_v12  ;;  %v3329_v12 = vld [vmem:[%s4118_s3 + $0x28] sm:$0xff]  }
  0xaf   :  { %2973 = vmatpush3.bf16.msra.mxu0 %v3292_v11  ;;  %v3328_v11 = vld [vmem:[%s4118_s3 + $0x20] sm:$0xff]  }
  0xb0   :  { %2974 = vmatprep.subr.bf16.mxu0 %v3295_v14  ;;  %v3330_v14 = vld [vmem:[%s4118_s3 + $0x30] sm:$0xff]  }
  0xb1   :  { %2995 = vmatpush3.bf16.msra.mxu1 %v3294_v13 }
  0xb2   :  { %2996 = vmatprep.subr.bf16.mxu1 %v3297_v16 }
  0xb3   :  { %2975 = vmatpush3.bf16.msra.mxu0 %v3296_v15 }
  0xb4   :  { %2976 = vmatprep.subr.bf16.mxu0 %v3299_v18 }
  0xb5   :  { %2997 = vmatpush3.bf16.msra.mxu1 %v3298_v17 }
  0xb6   :  { %2998 = vmatprep.subr.bf16.mxu1 %v3301_v20 }
  0xb7   :  { %2977 = vmatpush3.bf16.msra.mxu0 %v3300_v19 }
  0xb8   :  { %2978 = vmatprep.subr.bf16.mxu0 %v3303_v22 }
  0xb9   :  { %2999 = vmatpush3.bf16.msra.mxu1 %v3302_v21 }
  0xba   :  { %3000 = vmatprep.subr.bf16.mxu1 %v3305_v24  ;;  %v3331_v24 = vld [vmem:[%s4118_s3 + $0x38] sm:$0xff]  }
  0xbb   :  { %2979 = vmatpush3.bf16.msra.mxu0 %v3304_v23 }
  0xbc   :  { %2980 = vmatprep.subr.bf16.mxu0 %v3307_v26 }
  0xbd   :  { %3001 = vmatpush3.bf16.msra.mxu1 %v3306_v25 }
  0xbe   :  { %3002 = vmatprep.subr.bf16.mxu1 %v3309_v28  ;;  %v3333_v28 = vld [vmem:[%s4119_s5 + $0x8] sm:$0xff]  }
  0xbf   :  { %2981 = vmatpush3.bf16.msra.mxu0 %v3308_v27  ;;  %v3332_v27 = vld [vmem:[%s4119_s5] sm:$0xff]  }
  0xc0   :  { %3037 = vmatprep.subr.bf16.mxu0 %v3344_v34 }
  0xc1   :  { %3003 = vmatpush3.bf16.msra.mxu1 %v3312_v32  ;;  %v3337_v32 = vld [vmem:[%s4119_s5 + $0x28] sm:$0xff]  }
  0xc2   :  { %2168 = vmatmul.mubr.bf16.vlgmr.msra.gmra.mrb[20].mxu0 %v2523_v30  ;;  %3057 = vmatprep.subr.bf16.mxu1 %v3344_v34  ;;  %v3335_v30 = vld [vmem:[%s4119_s5 + $0x18] sm:$0xff]  }
  0xc3   :  { %3038 = vmatpush3.bf16.msra.mxu0 %v3315_v37  ;;  %3053 = vmatprep.mubr.msk.bf16.mxu0 %vm3345_vm0, %v3344_v34 }
  0xc4   :  { %2208 = vmatmul.mubr.bf16.vlgmr.msra.gmra.mrb[20].mxu1 %v2525_v35  ;;  %3039 = vmatprep.subr.bf16.mxu0 %v3344_v34 }
  0xc5   :  { %3073 = vmatprep.mubr.msk.bf16.mxu1 %vm3345_vm0, %v3344_v34  ;;  %3058 = vmatpush3.bf16.msra.mxu1 %v3324_v7 }
  0xc6   :  { %3059 = vmatprep.subr.bf16.mxu1 %v3344_v34 }
  0xc7   :  { %3040 = vmatpush3.bf16.msra.mxu0 %v3316_v38 }
  0xc8   :  { %3041 = vmatprep.subr.bf16.mxu0 %v3344_v34 }
  0xc9   :  { %3060 = vmatpush3.bf16.msra.mxu1 %v3325_v8 }
  0xca   :  { %3061 = vmatprep.subr.bf16.mxu1 %v3344_v34 }
  0xcb   :  { %3042 = vmatpush3.bf16.msra.mxu0 %v3317_v39 }
  0xcc   :  { %3043 = vmatprep.subr.bf16.mxu0 %v3344_v34 }
  0xcd   :  { %3062 = vmatpush3.bf16.msra.mxu1 %v3326_v9 }
  0xce   :  { %3063 = vmatprep.subr.bf16.mxu1 %v3344_v34 }
  0xcf   :  { %3044 = vmatpush3.bf16.msra.mxu0 %v3318_v40 }
  0xd0   :  { %3045 = vmatprep.subr.bf16.mxu0 %v3344_v34 }
  0xd1   :  { %3064 = vmatpush3.bf16.msra.mxu1 %v3327_v10 }
  0xd2   :  { %3065 = vmatprep.subr.bf16.mxu1 %v3344_v34 }
  0xd3   :  { %3046 = vmatpush3.bf16.msra.mxu0 %v3319_v41 }
  0xd4   :  { %3047 = vmatprep.subr.bf16.mxu0 %v3344_v34 }
  0xd5   :  { %3066 = vmatpush3.bf16.msra.mxu1 %v3328_v11 }
  0xd6   :  { %3067 = vmatprep.subr.bf16.mxu1 %v3344_v34 }
  0xd7   :  { %3048 = vmatpush3.bf16.msra.mxu0 %v3320_v42 }
  0xd8   :  { %3049 = vmatprep.subr.bf16.mxu0 %v3344_v34 }
  0xd9   :  { %3068 = vmatpush3.bf16.msra.mxu1 %v3329_v12 }
  0xda   :  { %3069 = vmatprep.subr.bf16.mxu1 %v3344_v34 }
  0xdb   :  { %3050 = vmatpush3.bf16.msra.mxu0 %v3321_v43 }
  0xdc   :  { %3051 = vmatprep.subr.bf16.mxu0 %v3344_v34 }
  0xdd   :  { %3070 = vmatpush3.bf16.msra.mxu1 %v3330_v14  ;;  %v3339_v14 = vld [vmem:[%s4119_s5 + $0x38] sm:$0xff]  }
  0xde   :  { %3071 = vmatprep.subr.bf16.mxu1 %v3344_v34 }
  0xdf   :  { %3052 = vmatpush3.bf16.msra.mxu0 %v3322_v44 }
  0xe0   :  { %3077 = vmatprep.subr.bf16.mxu0 %v3344_v34 }
  0xe1   :  { %3072 = vmatpush3.bf16.msra.mxu1 %v3331_v24 }
  0xe2   :  { %3054 = vmatmul.mubr.bf16.vlgmr.msra.gmra.mrb[24].mxu0 %v3323_v45 }
  0xe3   :  { %3093 = vmatprep.mubr.msk.bf16.mxu0 %vm3345_vm0, %v3344_v34  ;;  %3078 = vmatpush3.bf16.msra.mxu0 %v3332_v27 }
  0xe4   :  { %3079 = vmatprep.subr.bf16.mxu0 %v3344_v34 }
  0xe7   :  { %3080 = vmatpush3.bf16.msra.mxu0 %v3333_v28 }
  0xe8   :  { %3081 = vmatprep.subr.bf16.mxu0 %v3344_v34 }
  0xeb   :  { %3082 = vmatpush3.bf16.msra.mxu0 %v3334_v29 }
  0xec   :  { %3083 = vmatprep.subr.bf16.mxu0 %v3344_v34 }
  0xef   :  { %3084 = vmatpush3.bf16.msra.mxu0 %v3335_v30 }
  0xf0   :  { %3085 = vmatprep.subr.bf16.mxu0 %v3344_v34 }
  0xf3   :  { %3086 = vmatpush3.bf16.msra.mxu0 %v3336_v31 }
  0xf4   :  { %3087 = vmatprep.subr.bf16.mxu0 %v3344_v34 }
  0xf5   :  { %v2762_v46 = vpop.f32.mrb[0].mxu0 }
  0xf6   :  { %v2763_v48 = vpop.f32.mrb[1].mxu0 }
  0xf7   :  { %v2764_v49 = vadd.f32 %v2763_v48, %v2762_v46  ;;  %v2765_v50 = vpop.f32.mrb[2].mxu0  ;;  %v2784_v51 = vpop.f32.mrb[0].mxu1  ;;  %3088 = vmatpush3.bf16.msra.mxu0 %v3337_v32 }
  0xf8   :  { %v2766_v52 = vpop.f32.mrb[3].mxu0  ;;  %v2785_v53 = vpop.f32.mrb[1].mxu1  ;;  %3089 = vmatprep.subr.bf16.mxu0 %v3344_v34 }
  0xf9   :  { %v1770_v54 = vadd.f32 %v2764_v49, %v2502_v47  ;;  %v2786_v55 = vadd.f32 %v2785_v53, %v2784_v51  ;;  %v2787_v56 = vpop.f32.mrb[2].mxu1 }
  0xfa   :  { %v2788_v57 = vpop.f32.mrb[3].mxu1 }
  0xfb   :  { %v1810_v58 = vadd.f32 %v2786_v55, %v1770_v54 }
 0x115   :  { %v2806_v59 = vpop.f32.mrb[4].mxu0 }
 0x116   :  { %v2807_v60 = vpop.f32.mrb[5].mxu0 }
 0x117   :  { %v2808_v61 = vadd.f32 %v2807_v60, %v2806_v59  ;;  %v2809_v62 = vpop.f32.mrb[6].mxu0  ;;  %v2828_v63 = vpop.f32.mrb[4].mxu1 }
 0x118   :  { %v2810_v0 = vpop.f32.mrb[7].mxu0  ;;  %v2829_v2 = vpop.f32.mrb[5].mxu1 }
 0x119   :  { %v1850_v1 = vadd.f32 %v2808_v61, %v1810_v58  ;;  %v2830_v3 = vadd.f32 %v2829_v2, %v2828_v63  ;;  %v2831_v4 = vpop.f32.mrb[6].mxu1 }
 0x11a   :  { %v2832_v5 = vpop.f32.mrb[7].mxu1 }
 0x11b   :  { %v1890_v6 = vadd.f32 %v2830_v3, %v1850_v1 }
 0x135   :  { %v2850_v13 = vpop.f32.mrb[8].mxu0 }
 0x136   :  { %v2851_v15 = vpop.f32.mrb[9].mxu0 }
 0x137   :  { %v2852_v16 = vadd.f32 %v2851_v15, %v2850_v13  ;;  %v2853_v17 = vpop.f32.mrb[10].mxu0  ;;  %v2872_v18 = vpop.f32.mrb[8].mxu1  ;;  %v3338_v13 = vld [vmem:[%s4119_s5 + $0x30] sm:$0xff]   ;;  %v2728_v15 = vld [vmem:[%s4120_s4] ss:$0 sm:$0xff] }
 0x138   :  { %v2854_v19 = vpop.f32.mrb[11].mxu0  ;;  %v2873_v20 = vpop.f32.mrb[9].mxu1  ;;  %3090 = vmatpush3.bf16.msra.mxu0 %v3338_v13 }
 0x139   :  { %v1930_v21 = vadd.f32 %v2852_v16, %v1890_v6  ;;  %v2874_v22 = vadd.f32 %v2873_v20, %v2872_v18  ;;  %v2875_v23 = vpop.f32.mrb[10].mxu1  ;;  %3091 = vmatprep.subr.bf16.mxu0 %v3344_v34  ;;  %v2737_v34 = vld [vmem:[%s4121_s6] ss:$0 sm:$0xff] }
 0x13a   :  { %v2876_v25 = vpop.f32.mrb[11].mxu1  ;;  %v2481_v23 = vlaneseq }
 0x13b   :  { %v1970_v26 = vadd.f32 %v2874_v22, %v1930_v21 }
 0x13c   :  { %3092 = vmatpush3.bf16.msra.mxu0 %v3339_v14  ;;  %v2482_v24 = vand.u32 127, %v2481_v23 }
 0x13e   :  { %vm2483_vm1 = vcmp.lt.s32.totalorder %v2482_v24, 10 }
 0x155   :  { %v2894_v33 = vpop.f32.mrb[12].mxu0 }
 0x156   :  { %v2895_v35 = vpop.f32.mrb[13].mxu0 }
 0x157   :  { %v2896_v36 = vadd.f32 %v2895_v35, %v2894_v33  ;;  %v2897_v37 = vpop.f32.mrb[14].mxu0  ;;  %v2916_v38 = vpop.f32.mrb[12].mxu1 }
 0x158   :  { %v2898_v39 = vpop.f32.mrb[15].mxu0  ;;  %v2917_v40 = vpop.f32.mrb[13].mxu1 }
 0x159   :  { %v2010_v41 = vadd.f32 %v2896_v36, %v1970_v26  ;;  %v2918_v42 = vadd.f32 %v2917_v40, %v2916_v38  ;;  %v2919_v43 = vpop.f32.mrb[14].mxu1 }
 0x15a   :  { %v2920_v44 = vpop.f32.mrb[15].mxu1 }
 0x15b   :  { %v2050_v45 = vadd.f32 %v2918_v42, %v2010_v41 }
 0x175   :  { %v2938_v46 = vpop.f32.mrb[16].mxu0 }
 0x176   :  { %v2939_v47 = vpop.f32.mrb[17].mxu0 }
 0x177   :  { %v2940_v48 = vadd.f32 %v2939_v47, %v2938_v46  ;;  %v2941_v49 = vpop.f32.mrb[18].mxu0  ;;  %v2960_v50 = vpop.f32.mrb[16].mxu1 }
 0x178   :  { %v2942_v51 = vpop.f32.mrb[19].mxu0  ;;  %v2961_v53 = vpop.f32.mrb[17].mxu1 }
 0x179   :  { %v2090_v52 = vadd.f32 %v2940_v48, %v2050_v45  ;;  %v2962_v54 = vadd.f32 %v2961_v53, %v2960_v50  ;;  %v2963_v55 = vpop.f32.mrb[18].mxu1 }
 0x17a   :  { %v2964_v56 = vpop.f32.mrb[19].mxu1 }
 0x17b   :  { %v2130_v57 = vadd.f32 %v2962_v54, %v2090_v52 }
 0x195   :  { %v2982_v58 = vpop.f32.mrb[20].mxu0 }
 0x196   :  { %v2983_v59 = vpop.f32.mrb[21].mxu0 }
 0x197   :  { %v2984_v60 = vadd.f32 %v2983_v59, %v2982_v58  ;;  %v2985_v61 = vpop.f32.mrb[22].mxu0  ;;  %v3004_v62 = vpop.f32.mrb[20].mxu1 }
 0x198   :  { %v2986_v63 = vpop.f32.mrb[23].mxu0  ;;  %v3005_v0 = vpop.f32.mrb[21].mxu1 }
 0x199   :  { %v2170_v1 = vadd.f32 %v2984_v60, %v2130_v57  ;;  %v3006_v2 = vadd.f32 %v3005_v0, %v3004_v62  ;;  %v3007_v3 = vpop.f32.mrb[22].mxu1 }
 0x19a   :  { %v3008_v4 = vpop.f32.mrb[23].mxu1 }
 0x19b   :  { %v2210_v5 = vadd.f32 %v3006_v2, %v2170_v1 }
 0x1b5   :  { %v2249_v6 = vpop.f32.mrb[24].mxu0 }
 0x1b6   :  { %v2250_v7 = vadd.f32 %v2249_v6, %v2210_v5  ;;  %v3055_v8 = vpop.f32.mrb[25].mxu0 }
 0x1b7   :  { %v2252_v9 = vpop.f32.mrb[26].mxu0 }
 0x1b8   :  { %v2255_v10 = vmax.f32 %v2250_v7, 0.0  ;;  %v3056_v11 = vpop.f32.mrb[27].mxu0 }
 0x1ba   :  { %v2256_v12 = vpack.c.bf16 %v2255_v10, %v2255_v10 }
 0x1bc   :  { %3074 = vmatmul.mubr.bf16.vlgmr.msra.gmra.mrb[24].mxu1 %v2256_v12 }
 0x28f   :  { %v2362_v16 = vpop.f32.mrb[24].mxu1 }
 0x290   :  { %v2363_v17 = vadd.f32 %v2728_v15, %v2362_v16  ;;  %v3075_v18 = vpop.f32.mrb[25].mxu1 }
 0x291   :  { %v2365_v19 = vpop.f32.mrb[26].mxu1 }
 0x292   :  { %v2368_v20 = vmax.f32 %v2363_v17, 0.0  ;;  %v3076_v21 = vpop.f32.mrb[27].mxu1 }
 0x294   :  { %v2369_v22 = vpack.c.bf16 %v2368_v20, %v2368_v20 }
 0x296   :  { %3094 = vmatmul.mubr.bf16.vlgmr.msra.gmra.mrb[28].mxu0 %v2369_v22 }
 0x369   :  { %v2475_v25 = vpop.f32.mrb[28].mxu0 }
 0x36a   :  { %v2476_v26 = vadd.f32 %v2737_v34, %v2475_v25  ;;  %v3095_v27 = vpop.f32.mrb[29].mxu0 }
 0x36b   :  { %v2478_v28 = vpop.f32.mrb[30].mxu0 }
 0x36c   :  { %v3096_v29 = vpop.f32.mrb[31].mxu0  ;;  %v2484_v30 = vsel %vm2483_vm1, %v2476_v26, -inf }
 0x36d   :  { %2485 = vmax.xlane.f32.xlu0 %v2484_v30 }
 0x3fa   :  { %v2486_v31 = vpop.xlane.xlu0 %2485 }
 0x3fb   :  { %v2487_v32 = vsub.f32 %v2484_v30, %v2486_v31 }
 0x3fd   :  { %v2488_v33 = vmul.f32 1.442695, %v2487_v32 }
 0x3ff   :  { %3340 = vpow2.f32 %v2488_v33 }
 0x409   :  { %v3341_v35 = vpop.eup %3340 }
 0x40a   :  { %v2490_v36 = vsel %vm2483_vm1, %v3341_v35, 0.0 }
 0x40b   :  { %2491 = vadd.xlane.f32.xlu0 %v2490_v36 }
 0x498   :  { %v2492_v37 = vpop.xlane.xlu0 %2491 }
 0x499   :  { %3342 = vlog2.f32 %v2492_v37 }
 0x4a3   :  { %v3343_v38 = vpop.eup %3342 }
 0x4a4   :  { %v2494_v39 = vmul.f32 0.6931472, %v3343_v38 }
 0x4a6   :  { %v2495_v40 = vadd.f32 %v2494_v39, %v2486_v31 }
 0x4a8   :  { %v2496_v41 = vsub.f32 %v2484_v30, %v2495_v40 }
 0x4aa   :  { %2497 = vst [vmem:[%s4122_s7] sm:$0xff] %v2496_v41 }

</bundles_post_ra>
